<compile_context>
chip_gen: v7x
topology: tpu7x:2x2x1
jax: 0.10.0
libtpu: 0.0.40
codegen_flags: <defaults>
</compile_context>

<pallas_src>
import jax
import jax.numpy as jnp
from jax.experimental import pallas as pl
from jax.experimental.pallas import tpu as pltpu


IN_FEATURES = 1 * 28 * 28            # 784
IN_PAD = 896                         # 7 * 128 lanes
LANE = 128
LAYER_DIMS = [(IN_FEATURES, 128),
              (128, 256),
              (256, 512),
              (512, 1024),
              (1024, 512),
              (512, IN_FEATURES)]
ACTS = ("relu", "leaky_relu", "leaky_relu", "leaky_relu", "leaky_relu", "tanh")
N_LAYERS = len(LAYER_DIMS)

# Static per-layer metadata: (din_padded, dout_padded, weight-slab row offset,
# bias-slab column offset).  Weight layer i is stored as dout_p/128 column
# chunks of shape (din_p, 128) stacked along the slab's sublane axis.
LAYER_META = []
_row, _col = 0, 0
for _i, (_din, _dout) in enumerate(LAYER_DIMS):
    _din_p = IN_PAD if _i == 0 else _din
    _dout_p = IN_PAD if _i == N_LAYERS - 1 else _dout
    LAYER_META.append((_din_p, _dout_p, _row, _col))
    _row += _din_p * (_dout_p // LANE)
    _col += _dout_p
W_SLAB_ROWS = _row                   # 13952 rows  (~3.4 MB bf16)
B_SLAB_COLS = _col                   # 3328 cols   (~13 KB f32)


def _upset_kernel(x_ref, w_ref, b_ref, o_ref):
    """All 6 Linear+activation layers on one batch tile; weights/biases live
    in two contiguous VMEM slabs (one DMA each, reused across grid steps)."""
    x = x_ref[...].astype(jnp.bfloat16)                  # (BT, 896) bf16 LHS
    for li, (din_p, dout_p, row_off, col_off) in enumerate(LAYER_META):
        # N is chunked at 128 lanes so each weight view is a static,
        # sublane/lane-aligned slice of the slab (no reshape / relayout).
        cols = []
        for j in range(dout_p // LANE):
            w_chunk = w_ref[row_off + j * din_p: row_off + (j + 1) * din_p, :]
            cols.append(jnp.dot(x, w_chunk, preferred_element_type=jnp.float32))
        y = cols[0] if len(cols) == 1 else jnp.concatenate(cols, axis=-1)
        y = y + b_ref[:, col_off:col_off + dout_p]       # (1, dout) bcast, f32
        act = ACTS[li]
        if act == "relu":
            y = jnp.maximum(y, 0.0)
        elif act == "leaky_relu":
            y = jnp.maximum(y, 0.01 * y)                 # single VPU max
        else:
            y = jnp.tanh(y)                              # EUP
        if li == N_LAYERS - 1:
            o_ref[...] = y                               # f32 output tile
        else:
            x = y.astype(jnp.bfloat16)                   # carry bf16 between layers


def upset_forward(img, w_slab, b_slab):
    """img: (B,1,28,28) f32; w_slab: (13952,128) bf16; b_slab: (1,3328) f32."""
    B = img.shape[0]
    b16 = max(16, ((B + 15) // 16) * 16)     # bf16 (16,128) vreg packing
    bt = min(256, b16)                       # batch tile for the parallel axis
    B_pad = ((b16 + bt - 1) // bt) * bt
    grid = (B_pad // bt,)

    x = img.reshape(B, IN_FEATURES).astype(jnp.float32)
    x_pad = jnp.zeros((B_pad, IN_PAD), jnp.float32).at[:B, :IN_FEATURES].set(x)

    out = pl.pallas_call(
        _upset_kernel,
        out_shape=jax.ShapeDtypeStruct((B_pad, IN_PAD), jnp.float32),
        grid_spec=pltpu.PrefetchScalarGridSpec(
            num_scalar_prefetch=0,
            grid=grid,
            in_specs=[
                pl.BlockSpec((bt, IN_PAD), lambda i: (i, 0)),
                # Full-array blocks with constant index_maps: exactly one
                # contiguous DMA per slab; buffer reused across batch tiles.
                pl.BlockSpec((W_SLAB_ROWS, LANE), lambda i: (0, 0)),
                pl.BlockSpec((1, B_SLAB_COLS), lambda i: (0, 0)),
            ],
            out_specs=pl.BlockSpec((bt, IN_PAD), lambda i: (i, 0)),
        ),
        compiler_params=pltpu.CompilerParams(
            dimension_semantics=("parallel",),   # shard batch tiles over TCs
        ),
    )(x_pad, w_slab, b_slab)

    return out[:B, :IN_FEATURES].reshape(B, 1, 28, 28)


# ---------------------------------------------------------------------------
# Parameters (deterministic, PyTorch nn.Linear-style uniform init) + packing.
# ---------------------------------------------------------------------------

def init_params(key):
    """Weights stored (Din, Dout) = PyTorch weight transposed."""
    params = []
    for (din, dout) in LAYER_DIMS:
        key, kw, kb = jax.random.split(key, 3)
        bound = 1.0 / jnp.sqrt(din)
        w = jax.random.uniform(kw, (din, dout), jnp.float32, -bound, bound)
        b = jax.random.uniform(kb, (dout,), jnp.float32, -bound, bound)
        params.append((w, b))
    return params


def quantize_params(params):
    """bf16 weights (halves the dominant HBM weight traffic), f32 biases."""
    # Note: an int8-weight variant (per-column scales) would halve weight
    # traffic again on v5e/v6e, but is not portable to v7x's fp8-only MXU.
    return [(w.astype(jnp.bfloat16), b) for (w, b) in params]


def pack_params(params_q):
    """Pack all layers into one bf16 weight slab + one f32 bias row.

    Weight layer i (din,dout) is zero-padded to (din_p,dout_p) and stored as
    dout_p/128 column chunks of shape (din_p, 128) stacked along axis 0, so
    every per-layer view inside the kernel is a static aligned slice.
    """
    w_rows, b_cols = [], []
    for i, (w, b) in enumerate(params_q):
        din_p, dout_p, _, _ = LAYER_META[i]
        din, dout = w.shape
        w_p = jnp.zeros((din_p, dout_p), jnp.bfloat16).at[:din, :dout].set(w)
        b_p = jnp.zeros((dout_p,), jnp.float32).at[:dout].set(b)
        for j in range(dout_p // LANE):
            w_rows.append(w_p[:, j * LANE:(j + 1) * LANE])
        b_cols.append(b_p)
    w_slab = jnp.concatenate(w_rows, axis=0)        # (13952, 128) bf16
    b_slab = jnp.concatenate(b_cols)[None, :]       # (1, 3328)   f32
    return w_slab, b_slab


def upset_reference(img, params_q):
    """Pure-JAX reference with the same numerics as the kernel
    (bf16 weights & inter-layer activations, f32 accumulation)."""
    B = img.shape[0]
    x = img.reshape(B, IN_FEATURES).astype(jnp.float32).astype(jnp.bfloat16)
    for li, ((w, b), act) in enumerate(zip(params_q, ACTS)):
        y = jnp.dot(x, w, preferred_element_type=jnp.float32) + b
        if act == "relu":
            y = jnp.maximum(y, 0.0)
        elif act == "leaky_relu":
            y = jnp.maximum(y, 0.01 * y)
        else:
            y = jnp.tanh(y)
        x = y if li == N_LAYERS - 1 else y.astype(jnp.bfloat16)
    return x.reshape(B, 1, 28, 28)


if __name__ == "__main__":
    key = jax.random.PRNGKey(0)
    k_img, k_params = jax.random.split(key)

    B = 2
    img = jax.random.normal(k_img, (B, 1, 28, 28), dtype=jnp.float32)

    params = init_params(k_params)        # f32, PyTorch-style init
    params_q = quantize_params(params)    # bf16 weights, f32 biases
    w_slab, b_slab = pack_params(params_q)

    fwd = jax.jit(upset_forward)
    out = jax.block_until_ready(fwd(img, w_slab, b_slab))

    ref = upset_reference(img, params_q)
    assert out.shape == (B, 1, 28, 28)
    assert jnp.allclose(out, ref, atol=2e-2, rtol=2e-2), "mismatch vs reference"

    print("KERNEL_OK")
</pallas_src>

<mosaic_0001>
module attributes {stable_mosaic.version = 11 : i64} {
  func.func @_upset_kernel(%arg0: i32, %arg1: memref<16x896xf32, #tpu.memory_space<vmem>>, %arg2: memref<13952x128xbf16, #tpu.memory_space<vmem>>, %arg3: memref<1x3328xf32, #tpu.memory_space<vmem>>, %arg4: memref<16x896xf32, #tpu.memory_space<vmem>>) attributes {dimension_semantics = [#tpu.dimension_semantics<parallel>], iteration_bounds = array<i64: 1>, scalar_prefetch = 0 : i64, scratch_operands = 0 : i64, tpu.core_type = #tpu.core_type<tc>, window_params = [{transform_indices = @transform_0, window_bounds = array<i64: 16, 896>}, {pipeline_mode = #tpu.pipeline_mode<synchronous>, transform_indices = @transform_1, window_bounds = array<i64: 13952, 128>}, {pipeline_mode = #tpu.pipeline_mode<synchronous>, transform_indices = @transform_2, window_bounds = array<i64: 1, 3328>}, {transform_indices = @transform_3, window_bounds = array<i64: 16, 896>}]} {
    %c0 = arith.constant 0 : index
    %c0_0 = arith.constant 0 : index
    %0 = vector.load %arg1[%c0, %c0_0] : memref<16x896xf32, #tpu.memory_space<vmem>>, vector<16x896xf32>
    %1 = arith.truncf %0 : vector<16x896xf32> to vector<16x896xbf16>
    %c0_1 = arith.constant 0 : index
    %c0_2 = arith.constant 0 : index
    %2 = vector.load %arg2[%c0_1, %c0_2] : memref<13952x128xbf16, #tpu.memory_space<vmem>>, vector<896x128xbf16>
    %cst = arith.constant dense<0.000000e+00> : vector<16x128xf32>
    %3 = tpu.matmul %1, %2, %cst {dimension_numbers = #tpu.dot_dimension_numbers<[1], [0], [0], [1], [0, 0, 1, 1], [], []>} : vector<16x896xbf16>, vector<896x128xbf16>, vector<16x128xf32> -> vector<16x128xf32>
    %c0_3 = arith.constant 0 : index
    %c0_4 = arith.constant 0 : index
    %4 = vector.load %arg3[%c0_3, %c0_4] : memref<1x3328xf32, #tpu.memory_space<vmem>>, vector<1x128xf32>
    %5 = vector.broadcast %4 : vector<1x128xf32> to vector<16x128xf32>
    %6 = arith.addf %3, %5 : vector<16x128xf32>
    %cst_5 = arith.constant 0.000000e+00 : f32
    %7 = vector.broadcast %cst_5 : f32 to vector<16x128xf32>
    %8 = arith.maximumf %6, %7 : vector<16x128xf32>
    %9 = arith.truncf %8 : vector<16x128xf32> to vector<16x128xbf16>
    %c896 = arith.constant 896 : index
    %c0_6 = arith.constant 0 : index
    %10 = vector.load %arg2[%c896, %c0_6] : memref<13952x128xbf16, #tpu.memory_space<vmem>>, vector<128x128xbf16>
    %cst_7 = arith.constant dense<0.000000e+00> : vector<16x128xf32>
    %11 = tpu.matmul %9, %10, %cst_7 {dimension_numbers = #tpu.dot_dimension_numbers<[1], [0], [0], [1], [0, 0, 1, 1], [], []>} : vector<16x128xbf16>, vector<128x128xbf16>, vector<16x128xf32> -> vector<16x128xf32>
    %c1024 = arith.constant 1024 : index
    %c0_8 = arith.constant 0 : index
    %12 = vector.load %arg2[%c1024, %c0_8] : memref<13952x128xbf16, #tpu.memory_space<vmem>>, vector<128x128xbf16>
    %cst_9 = arith.constant dense<0.000000e+00> : vector<16x128xf32>
    %13 = tpu.matmul %9, %12, %cst_9 {dimension_numbers = #tpu.dot_dimension_numbers<[1], [0], [0], [1], [0, 0, 1, 1], [], []>} : vector<16x128xbf16>, vector<128x128xbf16>, vector<16x128xf32> -> vector<16x128xf32>
    %14 = tpu.concatenate %11, %13 in 1 : vector<16x128xf32>, vector<16x128xf32> -> vector<16x256xf32>
    %c0_10 = arith.constant 0 : index
    %c128 = arith.constant 128 : index
    %15 = vector.load %arg3[%c0_10, %c128] : memref<1x3328xf32, #tpu.memory_space<vmem>>, vector<1x256xf32>
    %16 = vector.broadcast %15 : vector<1x256xf32> to vector<16x256xf32>
    %17 = arith.addf %14, %16 : vector<16x256xf32>
    %cst_11 = arith.constant 0.00999999977 : f32
    %18 = vector.broadcast %cst_11 : f32 to vector<16x256xf32>
    %19 = arith.mulf %18, %17 : vector<16x256xf32>
    %20 = arith.maximumf %17, %19 : vector<16x256xf32>
    %21 = arith.truncf %20 : vector<16x256xf32> to vector<16x256xbf16>
    %c1152 = arith.constant 1152 : index
    %c0_12 = arith.constant 0 : index
    %22 = vector.load %arg2[%c1152, %c0_12] : memref<13952x128xbf16, #tpu.memory_space<vmem>>, vector<256x128xbf16>
    %cst_13 = arith.constant dense<0.000000e+00> : vector<16x128xf32>
    %23 = tpu.matmul %21, %22, %cst_13 {dimension_numbers = #tpu.dot_dimension_numbers<[1], [0], [0], [1], [0, 0, 1, 1], [], []>} : vector<16x256xbf16>, vector<256x128xbf16>, vector<16x128xf32> -> vector<16x128xf32>
    %c1408 = arith.constant 1408 : index
    %c0_14 = arith.constant 0 : index
    %24 = vector.load %arg2[%c1408, %c0_14] : memref<13952x128xbf16, #tpu.memory_space<vmem>>, vector<256x128xbf16>
    %cst_15 = arith.constant dense<0.000000e+00> : vector<16x128xf32>
    %25 = tpu.matmul %21, %24, %cst_15 {dimension_numbers = #tpu.dot_dimension_numbers<[1], [0], [0], [1], [0, 0, 1, 1], [], []>} : vector<16x256xbf16>, vector<256x128xbf16>, vector<16x128xf32> -> vector<16x128xf32>
    %c1664 = arith.constant 1664 : index
    %c0_16 = arith.constant 0 : index
    %26 = vector.load %arg2[%c1664, %c0_16] : memref<13952x128xbf16, #tpu.memory_space<vmem>>, vector<256x128xbf16>
    %cst_17 = arith.constant dense<0.000000e+00> : vector<16x128xf32>
    %27 = tpu.matmul %21, %26, %cst_17 {dimension_numbers = #tpu.dot_dimension_numbers<[1], [0], [0], [1], [0, 0, 1, 1], [], []>} : vector<16x256xbf16>, vector<256x128xbf16>, vector<16x128xf32> -> vector<16x128xf32>
    %c1920 = arith.constant 1920 : index
    %c0_18 = arith.constant 0 : index
    %28 = vector.load %arg2[%c1920, %c0_18] : memref<13952x128xbf16, #tpu.memory_space<vmem>>, vector<256x128xbf16>
    %cst_19 = arith.constant dense<0.000000e+00> : vector<16x128xf32>
    %29 = tpu.matmul %21, %28, %cst_19 {dimension_numbers = #tpu.dot_dimension_numbers<[1], [0], [0], [1], [0, 0, 1, 1], [], []>} : vector<16x256xbf16>, vector<256x128xbf16>, vector<16x128xf32> -> vector<16x128xf32>
    %30 = tpu.concatenate %23, %25, %27, %29 in 1 : vector<16x128xf32>, vector<16x128xf32>, vector<16x128xf32>, vector<16x128xf32> -> vector<16x512xf32>
    %c0_20 = arith.constant 0 : index
    %c384 = arith.constant 384 : index
    %31 = vector.load %arg3[%c0_20, %c384] : memref<1x3328xf32, #tpu.memory_space<vmem>>, vector<1x512xf32>
    %32 = vector.broadcast %31 : vector<1x512xf32> to vector<16x512xf32>
    %33 = arith.addf %30, %32 : vector<16x512xf32>
    %cst_21 = arith.constant 0.00999999977 : f32
    %34 = vector.broadcast %cst_21 : f32 to vector<16x512xf32>
    %35 = arith.mulf %34, %33 : vector<16x512xf32>
    %36 = arith.maximumf %33, %35 : vector<16x512xf32>
    %37 = arith.truncf %36 : vector<16x512xf32> to vector<16x512xbf16>
    %c2176 = arith.constant 2176 : index
    %c0_22 = arith.constant 0 : index
    %38 = vector.load %arg2[%c2176, %c0_22] : memref<13952x128xbf16, #tpu.memory_space<vmem>>, vector<512x128xbf16>
    %cst_23 = arith.constant dense<0.000000e+00> : vector<16x128xf32>
    %39 = tpu.matmul %37, %38, %cst_23 {dimension_numbers = #tpu.dot_dimension_numbers<[1], [0], [0], [1], [0, 0, 1, 1], [], []>} : vector<16x512xbf16>, vector<512x128xbf16>, vector<16x128xf32> -> vector<16x128xf32>
    %c2688 = arith.constant 2688 : index
    %c0_24 = arith.constant 0 : index
    %40 = vector.load %arg2[%c2688, %c0_24] : memref<13952x128xbf16, #tpu.memory_space<vmem>>, vector<512x128xbf16>
    %cst_25 = arith.constant dense<0.000000e+00> : vector<16x128xf32>
    %41 = tpu.matmul %37, %40, %cst_25 {dimension_numbers = #tpu.dot_dimension_numbers<[1], [0], [0], [1], [0, 0, 1, 1], [], []>} : vector<16x512xbf16>, vector<512x128xbf16>, vector<16x128xf32> -> vector<16x128xf32>
    %c3200 = arith.constant 3200 : index
    %c0_26 = arith.constant 0 : index
    %42 = vector.load %arg2[%c3200, %c0_26] : memref<13952x128xbf16, #tpu.memory_space<vmem>>, vector<512x128xbf16>
    %cst_27 = arith.constant dense<0.000000e+00> : vector<16x128xf32>
    %43 = tpu.matmul %37, %42, %cst_27 {dimension_numbers = #tpu.dot_dimension_numbers<[1], [0], [0], [1], [0, 0, 1, 1], [], []>} : vector<16x512xbf16>, vector<512x128xbf16>, vector<16x128xf32> -> vector<16x128xf32>
    %c3712 = arith.constant 3712 : index
    %c0_28 = arith.constant 0 : index
    %44 = vector.load %arg2[%c3712, %c0_28] : memref<13952x128xbf16, #tpu.memory_space<vmem>>, vector<512x128xbf16>
    %cst_29 = arith.constant dense<0.000000e+00> : vector<16x128xf32>
    %45 = tpu.matmul %37, %44, %cst_29 {dimension_numbers = #tpu.dot_dimension_numbers<[1], [0], [0], [1], [0, 0, 1, 1], [], []>} : vector<16x512xbf16>, vector<512x128xbf16>, vector<16x128xf32> -> vector<16x128xf32>
    %c4224 = arith.constant 4224 : index
    %c0_30 = arith.constant 0 : index
    %46 = vector.load %arg2[%c4224, %c0_30] : memref<13952x128xbf16, #tpu.memory_space<vmem>>, vector<512x128xbf16>
    %cst_31 = arith.constant dense<0.000000e+00> : vector<16x128xf32>
    %47 = tpu.matmul %37, %46, %cst_31 {dimension_numbers = #tpu.dot_dimension_numbers<[1], [0], [0], [1], [0, 0, 1, 1], [], []>} : vector<16x512xbf16>, vector<512x128xbf16>, vector<16x128xf32> -> vector<16x128xf32>
    %c4736 = arith.constant 4736 : index
    %c0_32 = arith.constant 0 : index
    %48 = vector.load %arg2[%c4736, %c0_32] : memref<13952x128xbf16, #tpu.memory_space<vmem>>, vector<512x128xbf16>
    %cst_33 = arith.constant dense<0.000000e+00> : vector<16x128xf32>
    %49 = tpu.matmul %37, %48, %cst_33 {dimension_numbers = #tpu.dot_dimension_numbers<[1], [0], [0], [1], [0, 0, 1, 1], [], []>} : vector<16x512xbf16>, vector<512x128xbf16>, vector<16x128xf32> -> vector<16x128xf32>
    %c5248 = arith.constant 5248 : index
    %c0_34 = arith.constant 0 : index
    %50 = vector.load %arg2[%c5248, %c0_34] : memref<13952x128xbf16, #tpu.memory_space<vmem>>, vector<512x128xbf16>
    %cst_35 = arith.constant dense<0.000000e+00> : vector<16x128xf32>
    %51 = tpu.matmul %37, %50, %cst_35 {dimension_numbers = #tpu.dot_dimension_numbers<[1], [0], [0], [1], [0, 0, 1, 1], [], []>} : vector<16x512xbf16>, vector<512x128xbf16>, vector<16x128xf32> -> vector<16x128xf32>
    %c5760 = arith.constant 5760 : index
    %c0_36 = arith.constant 0 : index
    %52 = vector.load %arg2[%c5760, %c0_36] : memref<13952x128xbf16, #tpu.memory_space<vmem>>, vector<512x128xbf16>
    %cst_37 = arith.constant dense<0.000000e+00> : vector<16x128xf32>
    %53 = tpu.matmul %37, %52, %cst_37 {dimension_numbers = #tpu.dot_dimension_numbers<[1], [0], [0], [1], [0, 0, 1, 1], [], []>} : vector<16x512xbf16>, vector<512x128xbf16>, vector<16x128xf32> -> vector<16x128xf32>
    %54 = tpu.concatenate %39, %41, %43, %45, %47, %49, %51, %53 in 1 : vector<16x128xf32>, vector<16x128xf32>, vector<16x128xf32>, vector<16x128xf32>, vector<16x128xf32>, vector<16x128xf32>, vector<16x128xf32>, vector<16x128xf32> -> vector<16x1024xf32>
    %c0_38 = arith.constant 0 : index
    %c896_39 = arith.constant 896 : index
    %55 = vector.load %arg3[%c0_38, %c896_39] : memref<1x3328xf32, #tpu.memory_space<vmem>>, vector<1x1024xf32>
    %56 = vector.broadcast %55 : vector<1x1024xf32> to vector<16x1024xf32>
    %57 = arith.addf %54, %56 : vector<16x1024xf32>
    %cst_40 = arith.constant 0.00999999977 : f32
    %58 = vector.broadcast %cst_40 : f32 to vector<16x1024xf32>
    %59 = arith.mulf %58, %57 : vector<16x1024xf32>
    %60 = arith.maximumf %57, %59 : vector<16x1024xf32>
    %61 = arith.truncf %60 : vector<16x1024xf32> to vector<16x1024xbf16>
    %c6272 = arith.constant 6272 : index
    %c0_41 = arith.constant 0 : index
    %62 = vector.load %arg2[%c6272, %c0_41] : memref<13952x128xbf16, #tpu.memory_space<vmem>>, vector<1024x128xbf16>
    %cst_42 = arith.constant dense<0.000000e+00> : vector<16x128xf32>
    %63 = tpu.matmul %61, %62, %cst_42 {dimension_numbers = #tpu.dot_dimension_numbers<[1], [0], [0], [1], [0, 0, 1, 1], [], []>} : vector<16x1024xbf16>, vector<1024x128xbf16>, vector<16x128xf32> -> vector<16x128xf32>
    %c7296 = arith.constant 7296 : index
    %c0_43 = arith.constant 0 : index
    %64 = vector.load %arg2[%c7296, %c0_43] : memref<13952x128xbf16, #tpu.memory_space<vmem>>, vector<1024x128xbf16>
    %cst_44 = arith.constant dense<0.000000e+00> : vector<16x128xf32>
    %65 = tpu.matmul %61, %64, %cst_44 {dimension_numbers = #tpu.dot_dimension_numbers<[1], [0], [0], [1], [0, 0, 1, 1], [], []>} : vector<16x1024xbf16>, vector<1024x128xbf16>, vector<16x128xf32> -> vector<16x128xf32>
    %c8320 = arith.constant 8320 : index
    %c0_45 = arith.constant 0 : index
    %66 = vector.load %arg2[%c8320, %c0_45] : memref<13952x128xbf16, #tpu.memory_space<vmem>>, vector<1024x128xbf16>
    %cst_46 = arith.constant dense<0.000000e+00> : vector<16x128xf32>
    %67 = tpu.matmul %61, %66, %cst_46 {dimension_numbers = #tpu.dot_dimension_numbers<[1], [0], [0], [1], [0, 0, 1, 1], [], []>} : vector<16x1024xbf16>, vector<1024x128xbf16>, vector<16x128xf32> -> vector<16x128xf32>
    %c9344 = arith.constant 9344 : index
    %c0_47 = arith.constant 0 : index
    %68 = vector.load %arg2[%c9344, %c0_47] : memref<13952x128xbf16, #tpu.memory_space<vmem>>, vector<1024x128xbf16>
    %cst_48 = arith.constant dense<0.000000e+00> : vector<16x128xf32>
    %69 = tpu.matmul %61, %68, %cst_48 {dimension_numbers = #tpu.dot_dimension_numbers<[1], [0], [0], [1], [0, 0, 1, 1], [], []>} : vector<16x1024xbf16>, vector<1024x128xbf16>, vector<16x128xf32> -> vector<16x128xf32>
    %70 = tpu.concatenate %63, %65, %67, %69 in 1 : vector<16x128xf32>, vector<16x128xf32>, vector<16x128xf32>, vector<16x128xf32> -> vector<16x512xf32>
    %c0_49 = arith.constant 0 : index
    %c1920_50 = arith.constant 1920 : index
    %71 = vector.load %arg3[%c0_49, %c1920_50] : memref<1x3328xf32, #tpu.memory_space<vmem>>, vector<1x512xf32>
    %72 = vector.broadcast %71 : vector<1x512xf32> to vector<16x512xf32>
    %73 = arith.addf %70, %72 : vector<16x512xf32>
    %cst_51 = arith.constant 0.00999999977 : f32
    %74 = vector.broadcast %cst_51 : f32 to vector<16x512xf32>
    %75 = arith.mulf %74, %73 : vector<16x512xf32>
    %76 = arith.maximumf %73, %75 : vector<16x512xf32>
    %77 = arith.truncf %76 : vector<16x512xf32> to vector<16x512xbf16>
    %c10368 = arith.constant 10368 : index
    %c0_52 = arith.constant 0 : index
    %78 = vector.load %arg2[%c10368, %c0_52] : memref<13952x128xbf16, #tpu.memory_space<vmem>>, vector<512x128xbf16>
    %cst_53 = arith.constant dense<0.000000e+00> : vector<16x128xf32>
    %79 = tpu.matmul %77, %78, %cst_53 {dimension_numbers = #tpu.dot_dimension_numbers<[1], [0], [0], [1], [0, 0, 1, 1], [], []>} : vector<16x512xbf16>, vector<512x128xbf16>, vector<16x128xf32> -> vector<16x128xf32>
    %c10880 = arith.constant 10880 : index
    %c0_54 = arith.constant 0 : index
    %80 = vector.load %arg2[%c10880, %c0_54] : memref<13952x128xbf16, #tpu.memory_space<vmem>>, vector<512x128xbf16>
    %cst_55 = arith.constant dense<0.000000e+00> : vector<16x128xf32>
    %81 = tpu.matmul %77, %80, %cst_55 {dimension_numbers = #tpu.dot_dimension_numbers<[1], [0], [0], [1], [0, 0, 1, 1], [], []>} : vector<16x512xbf16>, vector<512x128xbf16>, vector<16x128xf32> -> vector<16x128xf32>
    %c11392 = arith.constant 11392 : index
    %c0_56 = arith.constant 0 : index
    %82 = vector.load %arg2[%c11392, %c0_56] : memref<13952x128xbf16, #tpu.memory_space<vmem>>, vector<512x128xbf16>
    %cst_57 = arith.constant dense<0.000000e+00> : vector<16x128xf32>
    %83 = tpu.matmul %77, %82, %cst_57 {dimension_numbers = #tpu.dot_dimension_numbers<[1], [0], [0], [1], [0, 0, 1, 1], [], []>} : vector<16x512xbf16>, vector<512x128xbf16>, vector<16x128xf32> -> vector<16x128xf32>
    %c11904 = arith.constant 11904 : index
    %c0_58 = arith.constant 0 : index
    %84 = vector.load %arg2[%c11904, %c0_58] : memref<13952x128xbf16, #tpu.memory_space<vmem>>, vector<512x128xbf16>
    %cst_59 = arith.constant dense<0.000000e+00> : vector<16x128xf32>
    %85 = tpu.matmul %77, %84, %cst_59 {dimension_numbers = #tpu.dot_dimension_numbers<[1], [0], [0], [1], [0, 0, 1, 1], [], []>} : vector<16x512xbf16>, vector<512x128xbf16>, vector<16x128xf32> -> vector<16x128xf32>
    %c12416 = arith.constant 12416 : index
    %c0_60 = arith.constant 0 : index
    %86 = vector.load %arg2[%c12416, %c0_60] : memref<13952x128xbf16, #tpu.memory_space<vmem>>, vector<512x128xbf16>
    %cst_61 = arith.constant dense<0.000000e+00> : vector<16x128xf32>
    %87 = tpu.matmul %77, %86, %cst_61 {dimension_numbers = #tpu.dot_dimension_numbers<[1], [0], [0], [1], [0, 0, 1, 1], [], []>} : vector<16x512xbf16>, vector<512x128xbf16>, vector<16x128xf32> -> vector<16x128xf32>
    %c12928 = arith.constant 12928 : index
    %c0_62 = arith.constant 0 : index
    %88 = vector.load %arg2[%c12928, %c0_62] : memref<13952x128xbf16, #tpu.memory_space<vmem>>, vector<512x128xbf16>
    %cst_63 = arith.constant dense<0.000000e+00> : vector<16x128xf32>
    %89 = tpu.matmul %77, %88, %cst_63 {dimension_numbers = #tpu.dot_dimension_numbers<[1], [0], [0], [1], [0, 0, 1, 1], [], []>} : vector<16x512xbf16>, vector<512x128xbf16>, vector<16x128xf32> -> vector<16x128xf32>
    %c13440 = arith.constant 13440 : index
    %c0_64 = arith.constant 0 : index
    %90 = vector.load %arg2[%c13440, %c0_64] : memref<13952x128xbf16, #tpu.memory_space<vmem>>, vector<512x128xbf16>
    %cst_65 = arith.constant dense<0.000000e+00> : vector<16x128xf32>
    %91 = tpu.matmul %77, %90, %cst_65 {dimension_numbers = #tpu.dot_dimension_numbers<[1], [0], [0], [1], [0, 0, 1, 1], [], []>} : vector<16x512xbf16>, vector<512x128xbf16>, vector<16x128xf32> -> vector<16x128xf32>
    %92 = tpu.concatenate %79, %81, %83, %85, %87, %89, %91 in 1 : vector<16x128xf32>, vector<16x128xf32>, vector<16x128xf32>, vector<16x128xf32>, vector<16x128xf32>, vector<16x128xf32>, vector<16x128xf32> -> vector<16x896xf32>
    %c0_66 = arith.constant 0 : index
    %c2432 = arith.constant 2432 : index
    %93 = vector.load %arg3[%c0_66, %c2432] : memref<1x3328xf32, #tpu.memory_space<vmem>>, vector<1x896xf32>
    %94 = vector.broadcast %93 : vector<1x896xf32> to vector<16x896xf32>
    %95 = arith.addf %92, %94 : vector<16x896xf32>
    %96 = math.tanh %95 : vector<16x896xf32>
    %c0_67 = arith.constant 0 : index
    %c0_68 = arith.constant 0 : index
    %97 = vector.load %arg4[%c0_67, %c0_68] : memref<16x896xf32, #tpu.memory_space<vmem>>, vector<16x896xf32>
    tpu.vector_store %arg4[%c0_67, %c0_68], %96 {strides = array<i32>} : memref<16x896xf32, #tpu.memory_space<vmem>>, vector<16x896xf32>,
    return
  }
  func.func @transform_0(%arg0: i32) -> (i32, i32) {
    %c0_i32 = arith.constant 0 : i32
    %c0_i32_0 = arith.constant 0 : i32
    return %arg0, %c0_i32 : i32, i32
  }
  func.func @transform_1(%arg0: i32) -> (i32, i32) {
    %c0_i32 = arith.constant 0 : i32
    %c0_i32_0 = arith.constant 0 : i32
    %c0_i32_1 = arith.constant 0 : i32
    return %c0_i32, %c0_i32_0 : i32, i32
  }
  func.func @transform_2(%arg0: i32) -> (i32, i32) {
    %c0_i32 = arith.constant 0 : i32
    %c0_i32_0 = arith.constant 0 : i32
    %c0_i32_1 = arith.constant 0 : i32
    return %c0_i32, %c0_i32_0 : i32, i32
  }
  func.func @transform_3(%arg0: i32) -> (i32, i32) {
    %c0_i32 = arith.constant 0 : i32
    %c0_i32_0 = arith.constant 0 : i32
    return %arg0, %c0_i32 : i32, i32
  }
}

</mosaic_0001>

<bundles_post_ra>
// kernel: upset_forward.1
= control target key start
LH: loop header
LB: loop body
LE: loop exit
PB: predicated region body
PF: predicated region fallthrough
CT: control target
= control target key end

     0   :  { %8 = vsyncpa [#allocation3], 0  ;;  %s13190_s0 = inlined_call_operand.vmem [shape: f32[16,896], index: 0, kind: input, shape index: {}]   ;;  %s13191_s1 = inlined_call_operand.hbm [shape: bf16[13952,128], index: 1, kind: input, shape index: {}]   ;;  %s13192_s2 = inlined_call_operand.hbm [shape: f32[1,3328], index: 2, kind: input, shape index: {}]   ;;  %s13193_s3 = inlined_call_operand.vmem [shape: f32[16,896], index: 3, kind: output, shape index: {}]  }
   0x1   :  { %9 = vsyncpa [#allocation5], 0  ;;  %s12733_s12 = smov [#allocation2]   ;;  %s12685_s16 = scalar_lea.hbm %s13191_s1, 111616 }
   0x2   :  { %s17_s13 = sshll.u32 %s12733_s12, 4  ;;  %p12686_p0 = scmp.ne.s32.totalorder %s13191_s1, %s12685_s16  ;;  %s18_s13 = int_to_ptr.vmem [resolvable:$true] %s17_s13 }
   0x3   :  { %p12689_p1 = scmp.lt.u32.totalorder %s12685_s16, %s13191_s1 }
   0x5   :  { %p12691_p2 = pnand %p12689_p1, %p12686_p0 }
   0x7   :  { %12694 = shalt.err (!%p12691_p2)
}
   0x8   :  { %s12695_s21 = scalar_lea.vmem %s18_s13, 111616  ;;  %p12700_p4 = scmp.lt.s32.totalorder %s18_s13, %s18_s13 }
   0x9   :  { %p12696_p3 = scmp.ne.s32.totalorder %s18_s13, %s12695_s21  ;;  %p12701_p5 = scmp.lt.s32.totalorder %s12695_s21, %s12695_s21 }
   0xb   :  { %p12702_p6 = por %p12701_p5, %p12700_p4 }
   0xd   :  { %p12703_p7 = pnand %p12702_p6, %p12696_p3 }
   0xf   :  { %12706 = shalt.err (!%p12703_p7)
}
  0x10   :  { %s12734_s22 = smov 64   ;;  %s12735_s23 = smov 4  }
  0x11   :  { %23 = dma.hbm_to_vmem [thread:$0]  %s13191_s1, 111616, %s18_s13, [#allocation3], %s12734_s22, %s12734_s22, %s12735_s23  }
  0x12   :  { %s12736_s26 = smov [#allocation4]   ;;  %s12707_s30 = scalar_lea.hbm %s13192_s2, 416 }
  0x13   :  { %s30_s27 = sshll.u32 %s12736_s26, 4  ;;  %p12708_p8 = scmp.ne.s32.totalorder %s13192_s2, %s12707_s30  ;;  %s31_s27 = int_to_ptr.vmem [resolvable:$true] %s30_s27 }
  0x14   :  { %p12711_p9 = scmp.lt.u32.totalorder %s12707_s30, %s13192_s2 }
  0x16   :  { %p12713_p10 = pnand %p12711_p9, %p12708_p8 }
  0x18   :  { %12716 = shalt.err (!%p12713_p10)
}
  0x19   :  { %s12717_s8 = scalar_lea.vmem %s31_s27, 416  ;;  %p12722_p12 = scmp.lt.s32.totalorder %s31_s27, %s31_s27 }
  0x1a   :  { %p12718_p11 = scmp.ne.s32.totalorder %s31_s27, %s12717_s8  ;;  %p12723_p13 = scmp.lt.s32.totalorder %s12717_s8, %s12717_s8 }
  0x1c   :  { %p12724_p0 = por %p12723_p13, %p12722_p12 }
  0x1e   :  { %p12725_p1 = pnand %p12724_p0, %p12718_p11 }
  0x20   :  { %12728 = shalt.err (!%p12725_p1)
}
  0x21   :  { %33 = dma.hbm_to_vmem [thread:$0]  %s13192_s2, 416, %s31_s27, [#allocation5]  }
  0x22   :  { %12729 = dma.done.wait [#allocation3], 111616  }
  0x23   :  { %12730 = vsyncadd [#allocation3], 4294855680 }
  0x24   :  { %12731 = dma.done.wait [#allocation5], 416  }
  0x25   :  { %12732 = vsyncadd [#allocation5], 4294966880  ;;  %v11785_v0 = vld [vmem:[#allocation2 + $0x40] sm:$0xff]   ;;  %v11789_v4 = vld [vmem:[#allocation2 + $0x48] sm:$0xff]   ;;  %v12737_v43 = vmov 0.0   ;;  %vm12738_vm0 = vmmov 0  }
  0x26   :  { %v11786_v1 = vld [vmem:[#allocation2] sm:$0xff]   ;;  %10526 = vmatprep.subr.bf16.mxu0 %v11785_v0  ;;  %v11790_v5 = vld [vmem:[#allocation2 + $0x8] sm:$0xff]   ;;  %v11793_v8 = vld [vmem:[#allocation2 + $0x50] sm:$0xff]  }
  0x27   :  { %v11787_v2 = vld [vmem:[#allocation2 + $0xc0] sm:$0xff]   ;;  %10527 = vmatpush3.bf16.msra.mxu0 %v11786_v1  ;;  %v11791_v6 = vld [vmem:[#allocation2 + $0xc8] sm:$0xff]   ;;  %v11794_v9 = vld [vmem:[#allocation2 + $0x10] sm:$0xff]  }
  0x28   :  { %v11788_v3 = vld [vmem:[#allocation2 + $0x80] sm:$0xff]   ;;  %10548 = vmatprep.subr.bf16.mxu1 %v11787_v2  ;;  %10528 = vmatprep.subr.bf16.mxu0 %v11789_v4  ;;  %v11792_v7 = vld [vmem:[#allocation2 + $0x88] sm:$0xff]   ;;  %v11795_v10 = vld [vmem:[#allocation2 + $0xd0] sm:$0xff]  }
  0x29   :  { %10549 = vmatpush3.bf16.msra.mxu1 %v11788_v3  ;;  %v11796_v11 = vld [vmem:[#allocation2 + $0x90] sm:$0xff]   ;;  %v11797_v12 = vld [vmem:[#allocation2 + $0x58] sm:$0xff]   ;;  %v11801_v16 = vld [vmem:[#allocation2 + $0x60] sm:$0xff]  }
  0x2a   :  { %10550 = vmatprep.subr.bf16.mxu1 %v11791_v6  ;;  %v11798_v13 = vld [vmem:[#allocation2 + $0x18] sm:$0xff]   ;;  %v11802_v17 = vld [vmem:[#allocation2 + $0x20] sm:$0xff]   ;;  %v11805_v20 = vld [vmem:[#allocation2 + $0x68] sm:$0xff]  }
  0x2b   :  { %10529 = vmatpush3.bf16.msra.mxu0 %v11790_v5  ;;  %v11799_v14 = vld [vmem:[#allocation2 + $0xd8] sm:$0xff]   ;;  %v11803_v18 = vld [vmem:[#allocation2 + $0xe0] sm:$0xff]   ;;  %v11806_v21 = vld [vmem:[#allocation2 + $0x28] sm:$0xff]  }
  0x2c   :  { %10530 = vmatprep.subr.bf16.mxu0 %v11793_v8  ;;  %v11800_v15 = vld [vmem:[#allocation2 + $0x98] sm:$0xff]   ;;  %v11804_v19 = vld [vmem:[#allocation2 + $0xa0] sm:$0xff]   ;;  %v11807_v22 = vld [vmem:[#allocation2 + $0xe8] sm:$0xff]  }
  0x2d   :  { %10551 = vmatpush3.bf16.msra.mxu1 %v11792_v7  ;;  %v11808_v23 = vld [vmem:[#allocation2 + $0xa8] sm:$0xff]   ;;  %v11809_v24 = vld [vmem:[#allocation2 + $0x70] sm:$0xff]   ;;  %v11813_v28 = vld [vmem:[#allocation2 + $0x78] sm:$0xff]  }
  0x2e   :  { %10552 = vmatprep.subr.bf16.mxu1 %v11795_v10  ;;  %v11810_v25 = vld [vmem:[#allocation2 + $0x30] sm:$0xff]   ;;  %v11814_v29 = vld [vmem:[#allocation2 + $0x38] sm:$0xff]   ;;  %v42_v31 = vld [vmem:[%s13190_s0 + $0x8] sm:$0xff] }
  0x2f   :  { %10531 = vmatpush3.bf16.msra.mxu0 %v11794_v9  ;;  %v11811_v26 = vld [vmem:[#allocation2 + $0xf0] sm:$0xff]   ;;  %v11815_v30 = vld [vmem:[#allocation2 + $0xf8] sm:$0xff]   ;;  %v49_v32 = vld [vmem:[%s13190_s0 + $0x40] sm:$0xff] }
  0x30   :  { %10532 = vmatprep.subr.bf16.mxu0 %v11797_v12  ;;  %v11812_v27 = vld [vmem:[#allocation2 + $0xb0] sm:$0xff]   ;;  %v56_v33 = vpack.c.bf16 %v49_v32, %v42_v31  ;;  %v11816_v34 = vld [vmem:[#allocation2 + $0xb8] sm:$0xff]   ;;  %v41_v35 = vld [vmem:[%s13190_s0] sm:$0xff] }
  0x31   :  { %10553 = vmatpush3.bf16.msra.mxu1 %v11796_v11  ;;  %v48_v36 = vld [vmem:[%s13190_s0 + $0x38] sm:$0xff]  ;;  %v11817_v38 = vld [vmem:[#allocation2 + $0x140] sm:$0xff]   ;;  %v51_v40 = vld [vmem:[%s13190_s0 + $0x50] sm:$0xff] }
  0x32   :  { %10554 = vmatprep.subr.bf16.mxu1 %v11799_v14  ;;  %549 = vmatprep.mubr.bf16.mxu0 %v56_v33  ;;  %v55_v37 = vpack.c.bf16 %v48_v36, %v41_v35  ;;  %v44_v39 = vld [vmem:[%s13190_s0 + $0x18] sm:$0xff]  ;;  %v11818_v42 = vld [vmem:[#allocation2 + $0x100] sm:$0xff]   ;;  %v43_v44 = vld [vmem:[%s13190_s0 + $0x10] sm:$0xff] }
  0x33   :  { %10533 = vmatpush3.bf16.msra.mxu0 %v11798_v13  ;;  %v58_v41 = vpack.c.bf16 %v51_v40, %v44_v39  ;;  %v50_v45 = vld [vmem:[%s13190_s0 + $0x48] sm:$0xff]  ;;  %v11819_v47 = vld [vmem:[#allocation2 + $0x180] sm:$0xff]   ;;  %v11823_v51 = vld [vmem:[#allocation2 + $0x150] sm:$0xff]  }
  0x34   :  { %10534 = vmatprep.subr.bf16.mxu0 %v11801_v16  ;;  %v57_v46 = vpack.c.bf16 %v50_v45, %v43_v44  ;;  %v11820_v48 = vld [vmem:[#allocation2 + $0x148] sm:$0xff]   ;;  %v11824_v52 = vld [vmem:[#allocation2 + $0x110] sm:$0xff]   ;;  %v11826_v54 = vld [vmem:[#allocation2 + $0x158] sm:$0xff]  }
  0x35   :  { %10555 = vmatpush3.bf16.msra.mxu1 %v11800_v15  ;;  %590 = vmatprep.mubr.bf16.mxu1 %v58_v41  ;;  %v11821_v49 = vld [vmem:[#allocation2 + $0x108] sm:$0xff]   ;;  %v11825_v53 = vld [vmem:[#allocation2 + $0x190] sm:$0xff]   ;;  %v11827_v55 = vld [vmem:[#allocation2 + $0x118] sm:$0xff]  }
  0x36   :  { %10556 = vmatprep.subr.bf16.mxu1 %v11803_v18  ;;  %v11822_v50 = vld [vmem:[#allocation2 + $0x188] sm:$0xff]   ;;  %v11829_v56 = vld [vmem:[#allocation2 + $0x160] sm:$0xff]   ;;  %v11828_v57 = vld [vmem:[#allocation2 + $0x198] sm:$0xff]  }
  0x37   :  { %10535 = vmatpush3.bf16.msra.mxu0 %v11802_v17  ;;  %v11830_v58 = vld [vmem:[#allocation2 + $0x120] sm:$0xff]   ;;  %v11832_v59 = vld [vmem:[#allocation2 + $0x168] sm:$0xff]   ;;  %v11835_v62 = vld [vmem:[#allocation2 + $0x170] sm:$0xff]  }
  0x38   :  { %10536 = vmatprep.subr.bf16.mxu0 %v11805_v20  ;;  %v11831_v60 = vld [vmem:[#allocation2 + $0x1a0] sm:$0xff]   ;;  %v11833_v61 = vld [vmem:[#allocation2 + $0x128] sm:$0xff]   ;;  %v11836_v0 = vld [vmem:[#allocation2 + $0x130] sm:$0xff]  }
  0x39   :  { %10557 = vmatpush3.bf16.msra.mxu1 %v11804_v19  ;;  %v11834_v63 = vld [vmem:[#allocation2 + $0x1a8] sm:$0xff]   ;;  %v11838_v1 = vld [vmem:[#allocation2 + $0x178] sm:$0xff]   ;;  %v53_v3 = vld [vmem:[%s13190_s0 + $0x60] sm:$0xff] }
  0x3a   :  { %10558 = vmatprep.subr.bf16.mxu1 %v11807_v22  ;;  %v46_v2 = vld [vmem:[%s13190_s0 + $0x28] sm:$0xff]  ;;  %v11837_v4 = vld [vmem:[#allocation2 + $0x1b0] sm:$0xff]   ;;  %v11839_v5 = vld [vmem:[#allocation2 + $0x138] sm:$0xff]  }
  0x3b   :  { %10537 = vmatpush3.bf16.msra.mxu0 %v11806_v21  ;;  %v60_v6 = vpack.c.bf16 %v53_v3, %v46_v2  ;;  %v45_v7 = vld [vmem:[%s13190_s0 + $0x20] sm:$0xff]  ;;  %v52_v8 = vld [vmem:[%s13190_s0 + $0x58] sm:$0xff]  ;;  %v47_v10 = vld [vmem:[%s13190_s0 + $0x30] sm:$0xff] }
  0x3c   :  { %10538 = vmatprep.subr.bf16.mxu0 %v11809_v24  ;;  %v11840_v9 = vld [vmem:[#allocation2 + $0x1b8] sm:$0xff]   ;;  %v54_v11 = vld [vmem:[%s13190_s0 + $0x68] sm:$0xff]  ;;  %v59_v12 = vpack.c.bf16 %v52_v8, %v45_v7  ;;  %v11841_v14 = vld [vmem:[#allocation2 + $0x1c0] sm:$0xff]  }
  0x3d   :  { %10559 = vmatpush3.bf16.msra.mxu1 %v11808_v23  ;;  %v61_v13 = vpack.c.bf16 %v54_v11, %v47_v10  ;;  %v11842_v15 = vld [vmem:[#allocation2 + $0x200] sm:$0xff]   ;;  %v11843_v16 = vld [vmem:[#allocation2 + $0x1c8] sm:$0xff]   ;;  %v11845_v18 = vld [vmem:[#allocation2 + $0x1d0] sm:$0xff]  }
  0x3e   :  { %10560 = vmatprep.subr.bf16.mxu1 %v11811_v26  ;;  %v11844_v17 = vld [vmem:[#allocation2 + $0x208] sm:$0xff]   ;;  %v11846_v19 = vld [vmem:[#allocation2 + $0x210] sm:$0xff]   ;;  %v11847_v20 = vld [vmem:[#allocation2 + $0x1d8] sm:$0xff]  }
  0x3f   :  { %10539 = vmatpush3.bf16.msra.mxu0 %v11810_v25  ;;  %v11848_v21 = vld [vmem:[#allocation2 + $0x218] sm:$0xff]   ;;  %v11849_v22 = vld [vmem:[#allocation2 + $0x1e0] sm:$0xff]   ;;  %v11851_v24 = vld [vmem:[#allocation2 + $0x1e8] sm:$0xff]  }
  0x40   :  { %10540 = vmatprep.subr.bf16.mxu0 %v11813_v28  ;;  %v11850_v23 = vld [vmem:[#allocation2 + $0x220] sm:$0xff]   ;;  %v11852_v25 = vld [vmem:[#allocation2 + $0x228] sm:$0xff]   ;;  %v11853_v26 = vld [vmem:[#allocation2 + $0x1f0] sm:$0xff]  }
  0x41   :  { %10561 = vmatpush3.bf16.msra.mxu1 %v11812_v27  ;;  %v11854_v27 = vld [vmem:[#allocation2 + $0x230] sm:$0xff]   ;;  %v11855_v28 = vld [vmem:[#allocation2 + $0x1f8] sm:$0xff]   ;;  %v11858_v31 = vld [vmem:[#allocation2 + $0x300] sm:$0xff]  }
  0x42   :  { %10562 = vmatprep.subr.bf16.mxu1 %v11815_v30  ;;  %v11857_v30 = vld [vmem:[#allocation2 + $0x280] sm:$0xff]   ;;  %v11861_v3 = vld [vmem:[#allocation2 + $0x288] sm:$0xff]   ;;  %v11865_v8 = vld [vmem:[#allocation2 + $0x290] sm:$0xff]  }
  0x43   :  { %10541 = vmatpush3.bf16.msra.mxu0 %v11814_v29  ;;  %v11856_v29 = vld [vmem:[#allocation2 + $0x238] sm:$0xff]   ;;  %v9653_v32 = vld [vmem:[#allocation4] ss:$0 sm:$0xff]  ;;  %v11864_v7 = vld [vmem:[#allocation2 + $0x2c8] sm:$0xff]  }
  0x44   :  { %10570 = vmatprep.subr.bf16.mxu0 %v11817_v38  ;;  %v11867_v10 = vld [vmem:[#allocation2 + $0x250] sm:$0xff]  }
  0x45   :  { %10563 = vmatpush3.bf16.msra.mxu1 %v11816_v34  ;;  %v11868_v11 = vld [vmem:[#allocation2 + $0x2d0] sm:$0xff]  }
  0x46   :  { %11719 = vmatprep.subr.bf16.mxu1 %v12737_v43  ;;  %550 = vmatmul.mubr.bf16.vlgmr.msra.gmra.mrb[0].mxu0 %v55_v37 }
  0x47   :  { %10571 = vmatpush3.bf16.msra.mxu0 %v11818_v42  ;;  %631 = vmatprep.mubr.bf16.mxu0 %v60_v6  ;;  %v11863_v6 = vld [vmem:[#allocation2 + $0x248] sm:$0xff]  }
  0x48   :  { %591 = vmatmul.mubr.bf16.vlgmr.msra.gmra.mrb[0].mxu1 %v57_v46  ;;  %10572 = vmatprep.subr.bf16.mxu0 %v11820_v48 }
  0x49   :  { %11720 = vmatpush3.bf16.msra.mxu1 %v11819_v47  ;;  %11735 = vmatprep.mubr.msk.bf16.mxu1 %vm12738_vm0, %v12737_v43 }
  0x4a   :  { %11721 = vmatprep.subr.bf16.mxu1 %v12737_v43 }
  0x4b   :  { %10573 = vmatpush3.bf16.msra.mxu0 %v11821_v49 }
  0x4c   :  { %10574 = vmatprep.subr.bf16.mxu0 %v11823_v51 }
  0x4d   :  { %11722 = vmatpush3.bf16.msra.mxu1 %v11822_v50 }
  0x4e   :  { %11723 = vmatprep.subr.bf16.mxu1 %v12737_v43 }
  0x4f   :  { %10575 = vmatpush3.bf16.msra.mxu0 %v11824_v52 }
  0x50   :  { %10576 = vmatprep.subr.bf16.mxu0 %v11826_v54 }
  0x51   :  { %11724 = vmatpush3.bf16.msra.mxu1 %v11825_v53 }
  0x52   :  { %11725 = vmatprep.subr.bf16.mxu1 %v12737_v43 }
  0x53   :  { %10577 = vmatpush3.bf16.msra.mxu0 %v11827_v55 }
  0x54   :  { %10578 = vmatprep.subr.bf16.mxu0 %v11829_v56 }
  0x55   :  { %11726 = vmatpush3.bf16.msra.mxu1 %v11828_v57 }
  0x56   :  { %11727 = vmatprep.subr.bf16.mxu1 %v12737_v43 }
  0x57   :  { %10579 = vmatpush3.bf16.msra.mxu0 %v11830_v58 }
  0x58   :  { %10580 = vmatprep.subr.bf16.mxu0 %v11832_v59 }
  0x59   :  { %11728 = vmatpush3.bf16.msra.mxu1 %v11831_v60 }
  0x5a   :  { %11729 = vmatprep.subr.bf16.mxu1 %v12737_v43 }
  0x5b   :  { %10581 = vmatpush3.bf16.msra.mxu0 %v11833_v61 }
  0x5c   :  { %10582 = vmatprep.subr.bf16.mxu0 %v11835_v62 }
  0x5d   :  { %11730 = vmatpush3.bf16.msra.mxu1 %v11834_v63  ;;  %v11859_v63 = vld [vmem:[#allocation2 + $0x240] sm:$0xff]  }
  0x5e   :  { %11731 = vmatprep.subr.bf16.mxu1 %v12737_v43 }
  0x5f   :  { %10583 = vmatpush3.bf16.msra.mxu0 %v11836_v0  ;;  %v11860_v0 = vld [vmem:[#allocation2 + $0x2c0] sm:$0xff]  }
  0x60   :  { %10584 = vmatprep.subr.bf16.mxu0 %v11838_v1 }
  0x61   :  { %11732 = vmatpush3.bf16.msra.mxu1 %v11837_v4  ;;  %v11862_v4 = vld [vmem:[#allocation2 + $0x308] sm:$0xff]  }
  0x62   :  { %11733 = vmatprep.subr.bf16.mxu1 %v12737_v43 }
  0x63   :  { %10585 = vmatpush3.bf16.msra.mxu0 %v11839_v5 }
  0x64   :  { %11739 = vmatprep.subr.bf16.mxu0 %v12737_v43 }
  0x65   :  { %11734 = vmatpush3.bf16.msra.mxu1 %v11840_v9  ;;  %v11866_v9 = vld [vmem:[#allocation2 + $0x310] sm:$0xff]  }
  0x66   :  { %632 = vmatmul.mubr.bf16.vlgmr.msra.gmra.mrb[4].mxu0 %v59_v12  ;;  %11759 = vmatprep.subr.bf16.mxu1 %v12737_v43  ;;  %v11869_v12 = vld [vmem:[#allocation2 + $0x298] sm:$0xff]  }
  0x67   :  { %11755 = vmatprep.mubr.msk.bf16.mxu0 %vm12738_vm0, %v12737_v43  ;;  %11740 = vmatpush3.bf16.msra.mxu0 %v11841_v14  ;;  %v11871_v14 = vld [vmem:[#allocation2 + $0x258] sm:$0xff]  }
  0x68   :  { %11736 = vmatmul.mubr.bf16.vlgmr.msra.gmra.mrb[4].mxu1 %v61_v13  ;;  %11741 = vmatprep.subr.bf16.mxu0 %v12737_v43  ;;  %v11870_v13 = vld [vmem:[#allocation2 + $0x318] sm:$0xff]  }
  0x69   :  { %11775 = vmatprep.mubr.msk.bf16.mxu1 %vm12738_vm0, %v12737_v43  ;;  %11760 = vmatpush3.bf16.msra.mxu1 %v11842_v15  ;;  %v11872_v15 = vld [vmem:[#allocation2 + $0x2d8] sm:$0xff]  }
  0x6a   :  { %11761 = vmatprep.subr.bf16.mxu1 %v12737_v43 }
  0x6b   :  { %11742 = vmatpush3.bf16.msra.mxu0 %v11843_v16  ;;  %v11873_v16 = vld [vmem:[#allocation2 + $0x2a0] sm:$0xff]  }
  0x6c   :  { %11743 = vmatprep.subr.bf16.mxu0 %v12737_v43 }
  0x6d   :  { %11762 = vmatpush3.bf16.msra.mxu1 %v11844_v17  ;;  %v11874_v17 = vld [vmem:[#allocation2 + $0x320] sm:$0xff]  }
  0x6e   :  { %11763 = vmatprep.subr.bf16.mxu1 %v12737_v43 }
  0x6f   :  { %11744 = vmatpush3.bf16.msra.mxu0 %v11845_v18  ;;  %v11875_v18 = vld [vmem:[#allocation2 + $0x260] sm:$0xff]  }
  0x70   :  { %11745 = vmatprep.subr.bf16.mxu0 %v12737_v43 }
  0x71   :  { %11764 = vmatpush3.bf16.msra.mxu1 %v11846_v19  ;;  %v11876_v19 = vld [vmem:[#allocation2 + $0x2e0] sm:$0xff]  }
  0x72   :  { %11765 = vmatprep.subr.bf16.mxu1 %v12737_v43 }
  0x73   :  { %11746 = vmatpush3.bf16.msra.mxu0 %v11847_v20  ;;  %v11877_v20 = vld [vmem:[#allocation2 + $0x2a8] sm:$0xff]  }
  0x74   :  { %11747 = vmatprep.subr.bf16.mxu0 %v12737_v43 }
  0x75   :  { %11766 = vmatpush3.bf16.msra.mxu1 %v11848_v21  ;;  %v11878_v21 = vld [vmem:[#allocation2 + $0x328] sm:$0xff]  }
  0x76   :  { %11767 = vmatprep.subr.bf16.mxu1 %v12737_v43 }
  0x77   :  { %11748 = vmatpush3.bf16.msra.mxu0 %v11849_v22  ;;  %v11879_v22 = vld [vmem:[#allocation2 + $0x268] sm:$0xff]  }
  0x78   :  { %11749 = vmatprep.subr.bf16.mxu0 %v12737_v43 }
  0x79   :  { %11768 = vmatpush3.bf16.msra.mxu1 %v11850_v23  ;;  %v11880_v23 = vld [vmem:[#allocation2 + $0x2e8] sm:$0xff]  }
  0x7a   :  { %11769 = vmatprep.subr.bf16.mxu1 %v12737_v43 }
  0x7b   :  { %11750 = vmatpush3.bf16.msra.mxu0 %v11851_v24  ;;  %v11881_v24 = vld [vmem:[#allocation2 + $0x2b0] sm:$0xff]  }
  0x7c   :  { %11751 = vmatprep.subr.bf16.mxu0 %v12737_v43 }
  0x7d   :  { %11770 = vmatpush3.bf16.msra.mxu1 %v11852_v25  ;;  %v11882_v25 = vld [vmem:[#allocation2 + $0x330] sm:$0xff]  }
  0x7e   :  { %11771 = vmatprep.subr.bf16.mxu1 %v12737_v43 }
  0x7f   :  { %11752 = vmatpush3.bf16.msra.mxu0 %v11853_v26  ;;  %v11883_v26 = vld [vmem:[#allocation2 + $0x270] sm:$0xff]  }
  0x80   :  { %11753 = vmatprep.subr.bf16.mxu0 %v12737_v43 }
  0x81   :  { %11772 = vmatpush3.bf16.msra.mxu1 %v11854_v27  ;;  %v11884_v27 = vld [vmem:[#allocation2 + $0x2f0] sm:$0xff]  }
  0x82   :  { %11773 = vmatprep.subr.bf16.mxu1 %v12737_v43 }
  0x83   :  { %11754 = vmatpush3.bf16.msra.mxu0 %v11855_v28  ;;  %v11885_v28 = vld [vmem:[#allocation2 + $0x2b8] sm:$0xff]  }
  0x84   :  { %10619 = vmatprep.subr.bf16.mxu0 %v11857_v30  ;;  %v11887_v30 = vld [vmem:[#allocation2 + $0x278] sm:$0xff]  }
  0x85   :  { %11774 = vmatpush3.bf16.msra.mxu1 %v11856_v29  ;;  %v11886_v29 = vld [vmem:[#allocation2 + $0x338] sm:$0xff]  }
  0x86   :  { %10641 = vmatprep.subr.bf16.mxu1 %v11858_v31  ;;  %v11888_v31 = vld [vmem:[#allocation2 + $0x2f8] sm:$0xff]  }
 0x119   :  { %v10542_v33 = vpop.f32.mrb[0].mxu0 }
 0x11a   :  { %v10543_v34 = vpop.f32.mrb[1].mxu0 }
 0x11b   :  { %v10544_v35 = vadd.f32 %v10543_v34, %v10542_v33  ;;  %v10545_v36 = vpop.f32.mrb[2].mxu0  ;;  %v10564_v37 = vpop.f32.mrb[0].mxu1  ;;  %v11890_v33 = vld [vmem:[#allocation2 + $0x400] sm:$0xff]   ;;  %v896_v34 = vlaneseq }
 0x11c   :  { %v10546_v38 = vpop.f32.mrb[3].mxu0  ;;  %v10565_v41 = vpop.f32.mrb[1].mxu1 }
 0x11d   :  { %v552_v39 = vadd.f32 %v10544_v35, %v9653_v32  ;;  %v10547_v40 = vadd.f32 %v10546_v38, %v10545_v36  ;;  %v10566_v42 = vadd.f32 %v10565_v41, %v10564_v37  ;;  %v10567_v43 = vpop.f32.mrb[2].mxu1  ;;  %v12855_v35 = vshrl.u32 %v896_v34, 7  ;;  %v894_v38 = vld [vmem:[#allocation4 + $0x1] sm:$0x3]  ;;  %v11926_v34 = vld [vmem:[#allocation2 + $0x450] sm:$0xff]  }
 0x11e   :  { %v10568_v45 = vpop.f32.mrb[3].mxu1 }
 0x11f   :  { %v555_v44 = vadd.f32 %v10547_v40, %v9653_v32  ;;  %v593_v46 = vadd.f32 %v10566_v42, %v552_v39  ;;  %v10569_v47 = vadd.f32 %v10568_v45, %v10567_v43  ;;  %v11889_v32 = vld [vmem:[#allocation2 + $0x380] sm:$0xff]   ;;  %v12858_v36 = vsub.s32 0, %v12855_v35 }
 0x120   :  { %v12861_v37 = vsub.s32 1, %v12855_v35 }
 0x121   :  { %v596_v48 = vadd.f32 %v10569_v47, %v555_v44  ;;  %v899_v39 = vrot.slane %v894_v38, %v12858_v36 }
 0x122   :  { %v903_v40 = vrot.slane %v894_v38, %v12861_v37  ;;  %v11927_v38 = vld [vmem:[#allocation2 + $0x498] sm:$0xff]  }
 0x139   :  { %v10586_v49 = vpop.f32.mrb[4].mxu0 }
 0x13a   :  { %v10587_v50 = vpop.f32.mrb[5].mxu0 }
 0x13b   :  { %v10588_v51 = vadd.f32 %v10587_v50, %v10586_v49  ;;  %v10589_v52 = vpop.f32.mrb[6].mxu0  ;;  %v674_v53 = vpop.f32.mrb[4].mxu1 }
 0x13c   :  { %v10590_v54 = vpop.f32.mrb[7].mxu0  ;;  %v11737_v57 = vpop.f32.mrb[5].mxu1 }
 0x13d   :  { %v634_v55 = vadd.f32 %v10588_v51, %v593_v46  ;;  %v10591_v56 = vadd.f32 %v10590_v54, %v10589_v52  ;;  %v677_v58 = vpop.f32.mrb[6].mxu1 }
 0x13e   :  { %v11738_v61 = vpop.f32.mrb[7].mxu1 }
 0x13f   :  { %v675_v59 = vadd.f32 %v674_v53, %v634_v55  ;;  %v637_v60 = vadd.f32 %v10591_v56, %v596_v48  ;;  %v11891_v61 = vld [vmem:[#allocation2 + $0x340] sm:$0xff]  }
 0x141   :  { %v678_v62 = vadd.f32 %v677_v58, %v637_v60  ;;  %v681_v1 = vmax.f32 %v675_v59, 0.0 }
 0x143   :  { %v682_v2 = vmax.f32 %v678_v62, 0.0  ;;  %v11892_v62 = vld [vmem:[#allocation2 + $0x3c0] sm:$0xff]  }
 0x145   :  { %v683_v5 = vpack.c.bf16 %v682_v2, %v681_v1  ;;  %v11893_v1 = vld [vmem:[#allocation2 + $0x388] sm:$0xff]  }
 0x146   :  { %v11894_v2 = vld [vmem:[#allocation2 + $0x408] sm:$0xff]  }
 0x147   :  { %11756 = vmatmul.mubr.bf16.vlgmr.msra.gmra.mrb[8].mxu0 %v683_v5  ;;  %11776 = vmatmul.mubr.bf16.vlgmr.msra.gmra.mrb[8].mxu1 %v683_v5  ;;  %v11897_v5 = vld [vmem:[#allocation2 + $0x390] sm:$0xff]  }
 0x148   :  { %10620 = vmatpush3.bf16.msra.mxu0 %v11859_v63  ;;  %10642 = vmatpush3.bf16.msra.mxu1 %v11860_v0 }
 0x149   :  { %10621 = vmatprep.subr.bf16.mxu0 %v11861_v3  ;;  %10643 = vmatprep.subr.bf16.mxu1 %v11862_v4  ;;  %v11895_v3 = vld [vmem:[#allocation2 + $0x348] sm:$0xff]  }
 0x14a   :  { %v11896_v4 = vld [vmem:[#allocation2 + $0x3c8] sm:$0xff]  }
 0x14c   :  { %10622 = vmatpush3.bf16.msra.mxu0 %v11863_v6  ;;  %10644 = vmatpush3.bf16.msra.mxu1 %v11864_v7  ;;  %v11898_v6 = vld [vmem:[#allocation2 + $0x410] sm:$0xff]  }
 0x14d   :  { %10623 = vmatprep.subr.bf16.mxu0 %v11865_v8  ;;  %10645 = vmatprep.subr.bf16.mxu1 %v11866_v9  ;;  %v11899_v7 = vld [vmem:[#allocation2 + $0x350] sm:$0xff]   ;;  %v11901_v9 = vld [vmem:[#allocation2 + $0x398] sm:$0xff]  }
 0x14e   :  { %v11900_v8 = vld [vmem:[#allocation2 + $0x3d0] sm:$0xff]  }
 0x150   :  { %10624 = vmatpush3.bf16.msra.mxu0 %v11867_v10  ;;  %10646 = vmatpush3.bf16.msra.mxu1 %v11868_v11  ;;  %v11902_v10 = vld [vmem:[#allocation2 + $0x418] sm:$0xff]  }
 0x151   :  { %10625 = vmatprep.subr.bf16.mxu0 %v11869_v12  ;;  %10647 = vmatprep.subr.bf16.mxu1 %v11870_v13  ;;  %v11903_v11 = vld [vmem:[#allocation2 + $0x358] sm:$0xff]   ;;  %v11905_v13 = vld [vmem:[#allocation2 + $0x3a0] sm:$0xff]  }
 0x152   :  { %v11904_v12 = vld [vmem:[#allocation2 + $0x3d8] sm:$0xff]  }
 0x154   :  { %10626 = vmatpush3.bf16.msra.mxu0 %v11871_v14  ;;  %10648 = vmatpush3.bf16.msra.mxu1 %v11872_v15  ;;  %v11906_v14 = vld [vmem:[#allocation2 + $0x420] sm:$0xff]  }
 0x155   :  { %10627 = vmatprep.subr.bf16.mxu0 %v11873_v16  ;;  %10649 = vmatprep.subr.bf16.mxu1 %v11874_v17  ;;  %v11907_v15 = vld [vmem:[#allocation2 + $0x360] sm:$0xff]   ;;  %v11909_v17 = vld [vmem:[#allocation2 + $0x3a8] sm:$0xff]  }
 0x156   :  { %v11908_v16 = vld [vmem:[#allocation2 + $0x3e0] sm:$0xff]  }
 0x158   :  { %10628 = vmatpush3.bf16.msra.mxu0 %v11875_v18  ;;  %10650 = vmatpush3.bf16.msra.mxu1 %v11876_v19  ;;  %v11910_v18 = vld [vmem:[#allocation2 + $0x428] sm:$0xff]  }
 0x159   :  { %10629 = vmatprep.subr.bf16.mxu0 %v11877_v20  ;;  %10651 = vmatprep.subr.bf16.mxu1 %v11878_v21  ;;  %v11911_v19 = vld [vmem:[#allocation2 + $0x368] sm:$0xff]   ;;  %v11913_v21 = vld [vmem:[#allocation2 + $0x3b0] sm:$0xff]  }
 0x15a   :  { %v11912_v20 = vld [vmem:[#allocation2 + $0x3e8] sm:$0xff]  }
 0x15c   :  { %10630 = vmatpush3.bf16.msra.mxu0 %v11879_v22  ;;  %10652 = vmatpush3.bf16.msra.mxu1 %v11880_v23  ;;  %v11914_v22 = vld [vmem:[#allocation2 + $0x430] sm:$0xff]  }
 0x15d   :  { %10631 = vmatprep.subr.bf16.mxu0 %v11881_v24  ;;  %10653 = vmatprep.subr.bf16.mxu1 %v11882_v25  ;;  %v11915_v23 = vld [vmem:[#allocation2 + $0x370] sm:$0xff]   ;;  %v11917_v25 = vld [vmem:[#allocation2 + $0x3b8] sm:$0xff]  }
 0x15e   :  { %v11916_v24 = vld [vmem:[#allocation2 + $0x3f0] sm:$0xff]  }
 0x160   :  { %10632 = vmatpush3.bf16.msra.mxu0 %v11883_v26  ;;  %10654 = vmatpush3.bf16.msra.mxu1 %v11884_v27  ;;  %v11918_v26 = vld [vmem:[#allocation2 + $0x438] sm:$0xff]  }
 0x161   :  { %10633 = vmatprep.subr.bf16.mxu0 %v11885_v28  ;;  %10655 = vmatprep.subr.bf16.mxu1 %v11886_v29  ;;  %v11919_v27 = vld [vmem:[#allocation2 + $0x378] sm:$0xff]   ;;  %v11921_v29 = vld [vmem:[#allocation2 + $0x480] sm:$0xff]  }
 0x162   :  { %v11920_v28 = vld [vmem:[#allocation2 + $0x3f8] sm:$0xff]  }
 0x164   :  { %10634 = vmatpush3.bf16.msra.mxu0 %v11887_v30  ;;  %10656 = vmatpush3.bf16.msra.mxu1 %v11888_v31  ;;  %v11922_v30 = vld [vmem:[#allocation2 + $0x440] sm:$0xff]   ;;  %v11923_v31 = vld [vmem:[#allocation2 + $0x488] sm:$0xff]  }
 0x165   :  { %10663 = vmatprep.subr.bf16.mxu0 %v11889_v32  ;;  %10685 = vmatprep.subr.bf16.mxu1 %v11890_v33  ;;  %v11924_v32 = vld [vmem:[#allocation2 + $0x448] sm:$0xff]   ;;  %v11925_v33 = vld [vmem:[#allocation2 + $0x490] sm:$0xff]  }
 0x21a   :  { %v782_v41 = vpop.f32.mrb[8].mxu0  ;;  %v887_v42 = vpop.f32.mrb[8].mxu1 }
 0x21b   :  { %v906_v43 = vadd.f32 %v899_v39, %v782_v41  ;;  %v907_v44 = vadd.f32 %v903_v40, %v887_v42  ;;  %v11757_v45 = vpop.f32.mrb[9].mxu0  ;;  %v11777_v46 = vpop.f32.mrb[9].mxu1  ;;  %v11930_v41 = vld [vmem:[#allocation2 + $0x460] sm:$0xff]   ;;  %v11931_v42 = vld [vmem:[#allocation2 + $0x4a8] sm:$0xff]  }
 0x21c   :  { %v785_v47 = vpop.f32.mrb[10].mxu0  ;;  %v890_v48 = vpop.f32.mrb[10].mxu1  ;;  %v11934_v45 = vld [vmem:[#allocation2 + $0x470] sm:$0xff]   ;;  %v11935_v46 = vld [vmem:[#allocation2 + $0x4b8] sm:$0xff]  }
 0x21d   :  { %v910_v49 = vmul.f32 0.01, %v906_v43  ;;  %v911_v50 = vmul.f32 0.01, %v907_v44  ;;  %v908_v51 = vadd.f32 %v899_v39, %v785_v47  ;;  %v909_v52 = vadd.f32 %v903_v40, %v890_v48  ;;  %v11758_v53 = vpop.f32.mrb[11].mxu0  ;;  %v11778_v54 = vpop.f32.mrb[11].mxu1 }
 0x21e   :  { %v11928_v39 = vld [vmem:[#allocation2 + $0x458] sm:$0xff]   ;;  %v11929_v40 = vld [vmem:[#allocation2 + $0x4a0] sm:$0xff]   ;;  %v11945_v53 = vld [vmem:[#allocation2 + $0x510] sm:$0xff]  }
 0x21f   :  { %v912_v55 = vmul.f32 0.01, %v908_v51  ;;  %v913_v56 = vmul.f32 0.01, %v909_v52  ;;  %v914_v57 = vmax.f32 %v906_v43, %v910_v49  ;;  %v915_v58 = vmax.f32 %v907_v44, %v911_v50  ;;  %v11932_v43 = vld [vmem:[#allocation2 + $0x468] sm:$0xff]   ;;  %v11933_v44 = vld [vmem:[#allocation2 + $0x4b0] sm:$0xff]  }
 0x220   :  { %v11936_v47 = vld [vmem:[#allocation2 + $0x478] sm:$0xff]   ;;  %v11937_v48 = vld [vmem:[#allocation2 + $0x500] sm:$0xff]   ;;  %v11946_v54 = vld [vmem:[#allocation2 + $0x4d0] sm:$0xff]  }
 0x221   :  { %v916_v59 = vmax.f32 %v908_v51, %v912_v55  ;;  %v917_v60 = vmax.f32 %v909_v52, %v913_v56  ;;  %v11938_v49 = vld [vmem:[#allocation2 + $0x4c0] sm:$0xff]   ;;  %v11941_v51 = vld [vmem:[#allocation2 + $0x508] sm:$0xff]   ;;  %v11949_v55 = vld [vmem:[#allocation2 + $0x518] sm:$0xff]  }
 0x222   :  { %v11939_v50 = vld [vmem:[#allocation2 + $0x580] sm:$0xff]   ;;  %v11942_v52 = vld [vmem:[#allocation2 + $0x4c8] sm:$0xff]   ;;  %v11950_v56 = vld [vmem:[#allocation2 + $0x4d8] sm:$0xff]  }
 0x223   :  { %v12865_v63 = vpack.c.bf16 %v916_v59, %v914_v57  ;;  %v919_v0 = vpack.c.bf16 %v917_v60, %v915_v58  ;;  %v11953_v57 = vld [vmem:[#allocation2 + $0x520] sm:$0xff]   ;;  %v11957_v59 = vld [vmem:[#allocation2 + $0x528] sm:$0xff]  }
 0x224   :  { %v11954_v58 = vld [vmem:[#allocation2 + $0x4e0] sm:$0xff]   ;;  %v11958_v60 = vld [vmem:[#allocation2 + $0x4e8] sm:$0xff]  }
 0x225   :  { %1080 = vmatprep.mubr.bf16.mxu0 %v919_v0  ;;  %1249 = vmatprep.mubr.bf16.mxu1 %v919_v0 }
 0x226   :  { %1081 = vmatmul.mubr.bf16.vlgmr.msra.gmra.mrb[12].mxu0 %v12865_v63  ;;  %1250 = vmatmul.mubr.bf16.vlgmr.msra.gmra.mrb[12].mxu1 %v12865_v63 }
 0x227   :  { %10664 = vmatpush3.bf16.msra.mxu0 %v11891_v61  ;;  %10686 = vmatpush3.bf16.msra.mxu1 %v11892_v62  ;;  %v11961_v61 = vld [vmem:[#allocation2 + $0x530] sm:$0xff]  }
 0x228   :  { %1418 = vmatprep.mubr.bf16.mxu0 %v919_v0  ;;  %1587 = vmatprep.mubr.bf16.mxu1 %v919_v0  ;;  %v11962_v62 = vld [vmem:[#allocation2 + $0x4f0] sm:$0xff]   ;;  %v11966_v0 = vld [vmem:[#allocation2 + $0x4f8] sm:$0xff]  }
 0x229   :  { %10665 = vmatprep.subr.bf16.mxu0 %v11893_v1  ;;  %10687 = vmatprep.subr.bf16.mxu1 %v11894_v2  ;;  %v11969_v1 = vld [vmem:[#allocation2 + $0x600] sm:$0xff]  }
 0x22a   :  { %v1596_v2 = vld [vmem:[#allocation4 + $0x3] sm:$0xf] }
 0x22b   :  { %10666 = vmatpush3.bf16.msra.mxu0 %v11895_v3  ;;  %10688 = vmatpush3.bf16.msra.mxu1 %v11896_v4 }
 0x22c   :  { %10667 = vmatprep.subr.bf16.mxu0 %v11897_v5  ;;  %10689 = vmatprep.subr.bf16.mxu1 %v11898_v6  ;;  %v1601_v5 = vrot.slane %v1596_v2, %v12858_v36  ;;  %v1605_v6 = vrot.slane %v1596_v2, %v12861_v37 }
 0x22f   :  { %10668 = vmatpush3.bf16.msra.mxu0 %v11899_v7  ;;  %10690 = vmatpush3.bf16.msra.mxu1 %v11900_v8 }
 0x230   :  { %10669 = vmatprep.subr.bf16.mxu0 %v11901_v9  ;;  %10691 = vmatprep.subr.bf16.mxu1 %v11902_v10 }
 0x233   :  { %10670 = vmatpush3.bf16.msra.mxu0 %v11903_v11  ;;  %10692 = vmatpush3.bf16.msra.mxu1 %v11904_v12 }
 0x234   :  { %10671 = vmatprep.subr.bf16.mxu0 %v11905_v13  ;;  %10693 = vmatprep.subr.bf16.mxu1 %v11906_v14 }
 0x237   :  { %10672 = vmatpush3.bf16.msra.mxu0 %v11907_v15  ;;  %10694 = vmatpush3.bf16.msra.mxu1 %v11908_v16 }
 0x238   :  { %10673 = vmatprep.subr.bf16.mxu0 %v11909_v17  ;;  %10695 = vmatprep.subr.bf16.mxu1 %v11910_v18 }
 0x23b   :  { %10674 = vmatpush3.bf16.msra.mxu0 %v11911_v19  ;;  %10696 = vmatpush3.bf16.msra.mxu1 %v11912_v20 }
 0x23c   :  { %10675 = vmatprep.subr.bf16.mxu0 %v11913_v21  ;;  %10697 = vmatprep.subr.bf16.mxu1 %v11914_v22 }
 0x23f   :  { %10676 = vmatpush3.bf16.msra.mxu0 %v11915_v23  ;;  %10698 = vmatpush3.bf16.msra.mxu1 %v11916_v24 }
 0x240   :  { %10677 = vmatprep.subr.bf16.mxu0 %v11917_v25  ;;  %10699 = vmatprep.subr.bf16.mxu1 %v11918_v26 }
 0x243   :  { %10678 = vmatpush3.bf16.msra.mxu0 %v11919_v27  ;;  %10700 = vmatpush3.bf16.msra.mxu1 %v11920_v28 }
 0x244   :  { %10707 = vmatprep.subr.bf16.mxu0 %v11921_v29  ;;  %10729 = vmatprep.subr.bf16.mxu1 %v11937_v48 }
 0x246   :  { %1419 = vmatmul.mubr.bf16.vlgmr.msra.gmra.mrb[16].mxu0 %v12865_v63  ;;  %1588 = vmatmul.mubr.bf16.vlgmr.msra.gmra.mrb[16].mxu1 %v12865_v63  ;;  %v11965_v63 = vld [vmem:[#allocation2 + $0x538] sm:$0xff]  }
 0x247   :  { %10708 = vmatpush3.bf16.msra.mxu0 %v11922_v30  ;;  %10730 = vmatpush3.bf16.msra.mxu1 %v11938_v49 }
 0x248   :  { %10709 = vmatprep.subr.bf16.mxu0 %v11923_v31  ;;  %10731 = vmatprep.subr.bf16.mxu1 %v11941_v51  ;;  %v11940_v31 = vld [vmem:[#allocation2 + $0x540] sm:$0xff]  }
 0x24b   :  { %10710 = vmatpush3.bf16.msra.mxu0 %v11924_v32  ;;  %10732 = vmatpush3.bf16.msra.mxu1 %v11942_v52  ;;  %v11943_v32 = vld [vmem:[#allocation2 + $0x588] sm:$0xff]  }
 0x24c   :  { %10711 = vmatprep.subr.bf16.mxu0 %v11925_v33  ;;  %10733 = vmatprep.subr.bf16.mxu1 %v11945_v53  ;;  %v11944_v33 = vld [vmem:[#allocation2 + $0x548] sm:$0xff]   ;;  %v11963_v53 = vld [vmem:[#allocation2 + $0x5b0] sm:$0xff]  }
 0x24f   :  { %10712 = vmatpush3.bf16.msra.mxu0 %v11926_v34  ;;  %10734 = vmatpush3.bf16.msra.mxu1 %v11946_v54  ;;  %v11947_v34 = vld [vmem:[#allocation2 + $0x590] sm:$0xff]  }
 0x250   :  { %10713 = vmatprep.subr.bf16.mxu0 %v11927_v38  ;;  %10735 = vmatprep.subr.bf16.mxu1 %v11949_v55  ;;  %v11948_v38 = vld [vmem:[#allocation2 + $0x550] sm:$0xff]  }
 0x253   :  { %10714 = vmatpush3.bf16.msra.mxu0 %v11928_v39  ;;  %10736 = vmatpush3.bf16.msra.mxu1 %v11950_v56  ;;  %v11951_v39 = vld [vmem:[#allocation2 + $0x598] sm:$0xff]  }
 0x254   :  { %10715 = vmatprep.subr.bf16.mxu0 %v11929_v40  ;;  %10737 = vmatprep.subr.bf16.mxu1 %v11953_v57  ;;  %v11952_v40 = vld [vmem:[#allocation2 + $0x558] sm:$0xff]  }
 0x257   :  { %10716 = vmatpush3.bf16.msra.mxu0 %v11930_v41  ;;  %10738 = vmatpush3.bf16.msra.mxu1 %v11954_v58  ;;  %v11955_v41 = vld [vmem:[#allocation2 + $0x5a0] sm:$0xff]  }
 0x258   :  { %10717 = vmatprep.subr.bf16.mxu0 %v11931_v42  ;;  %10739 = vmatprep.subr.bf16.mxu1 %v11957_v59  ;;  %v11956_v42 = vld [vmem:[#allocation2 + $0x560] sm:$0xff]  }
 0x25b   :  { %10718 = vmatpush3.bf16.msra.mxu0 %v11932_v43  ;;  %10740 = vmatpush3.bf16.msra.mxu1 %v11958_v60  ;;  %v12881_v43 = vsub.s32 2, %v12855_v35 }
 0x25c   :  { %10719 = vmatprep.subr.bf16.mxu0 %v11933_v44  ;;  %10741 = vmatprep.subr.bf16.mxu1 %v11961_v61  ;;  %v12884_v44 = vsub.s32 3, %v12855_v35 }
 0x25d   :  { %v1609_v48 = vrot.slane %v1596_v2, %v12881_v43 }
 0x25e   :  { %v1613_v49 = vrot.slane %v1596_v2, %v12884_v44 }
 0x25f   :  { %10720 = vmatpush3.bf16.msra.mxu0 %v11934_v45  ;;  %10742 = vmatpush3.bf16.msra.mxu1 %v11962_v62  ;;  %v11959_v45 = vld [vmem:[#allocation2 + $0x5a8] sm:$0xff]  }
 0x260   :  { %10721 = vmatprep.subr.bf16.mxu0 %v11935_v46  ;;  %10743 = vmatprep.subr.bf16.mxu1 %v11965_v63 }
 0x263   :  { %10722 = vmatpush3.bf16.msra.mxu0 %v11936_v47  ;;  %10744 = vmatpush3.bf16.msra.mxu1 %v11966_v0  ;;  %v11964_v0 = vld [vmem:[#allocation2 + $0x570] sm:$0xff]  }
 0x264   :  { %10751 = vmatprep.subr.bf16.mxu0 %v11939_v50  ;;  %10773 = vmatprep.subr.bf16.mxu1 %v11969_v1  ;;  %v11960_v50 = vld [vmem:[#allocation2 + $0x568] sm:$0xff]   ;;  %v11967_v1 = vld [vmem:[#allocation2 + $0x5b8] sm:$0xff]  }
 0x2f9   :  { %v10635_v3 = vpop.f32.mrb[12].mxu0  ;;  %v10657_v4 = vpop.f32.mrb[12].mxu1 }
 0x2fa   :  { %v10636_v7 = vpop.f32.mrb[13].mxu0  ;;  %v10658_v8 = vpop.f32.mrb[13].mxu1 }
 0x2fb   :  { %v10637_v9 = vadd.f32 %v10636_v7, %v10635_v3  ;;  %v10659_v10 = vadd.f32 %v10658_v8, %v10657_v4  ;;  %v10638_v11 = vpop.f32.mrb[14].mxu0  ;;  %v10660_v12 = vpop.f32.mrb[14].mxu1  ;;  %v11968_v8 = vld [vmem:[#allocation2 + $0x578] sm:$0xff]  }
 0x2fc   :  { %v10639_v13 = vpop.f32.mrb[15].mxu0  ;;  %v10661_v14 = vpop.f32.mrb[15].mxu1 }
 0x2fd   :  { %v1618_v15 = vadd.f32 %v10637_v9, %v1601_v5  ;;  %v1619_v16 = vadd.f32 %v10659_v10, %v1605_v6  ;;  %v10640_v17 = vadd.f32 %v10639_v13, %v10638_v11  ;;  %v10662_v18 = vadd.f32 %v10661_v14, %v10660_v12  ;;  %v11971_v9 = vld [vmem:[#allocation2 + $0x680] sm:$0xff]  }
 0x2ff   :  { %v1626_v19 = vmul.f32 0.01, %v1618_v15  ;;  %v1627_v20 = vmul.f32 0.01, %v1619_v16  ;;  %v1622_v21 = vadd.f32 %v10640_v17, %v1601_v5  ;;  %v1623_v22 = vadd.f32 %v10662_v18, %v1605_v6  ;;  %v11972_v17 = vld [vmem:[#allocation2 + $0x640] sm:$0xff]   ;;  %v11973_v18 = vld [vmem:[#allocation2 + $0x608] sm:$0xff]  }
 0x301   :  { %v1630_v23 = vmul.f32 0.01, %v1622_v21  ;;  %v1631_v24 = vmul.f32 0.01, %v1623_v22  ;;  %v1634_v25 = vmax.f32 %v1618_v15, %v1626_v19  ;;  %v1635_v26 = vmax.f32 %v1619_v16, %v1627_v20  ;;  %v11970_v16 = vld [vmem:[#allocation2 + $0x5c0] sm:$0xff]   ;;  %v11975_v19 = vld [vmem:[#allocation2 + $0x688] sm:$0xff]  }
 0x302   :  { %v11974_v20 = vld [vmem:[#allocation2 + $0x5c8] sm:$0xff]  }
 0x303   :  { %v1638_v27 = vmax.f32 %v1622_v21, %v1630_v23  ;;  %v1639_v28 = vmax.f32 %v1623_v22, %v1631_v24  ;;  %v11976_v21 = vld [vmem:[#allocation2 + $0x648] sm:$0xff]   ;;  %v11977_v22 = vld [vmem:[#allocation2 + $0x610] sm:$0xff]  }
 0x304   :  { %v11979_v23 = vld [vmem:[#allocation2 + $0x690] sm:$0xff]  }
 0x305   :  { %v12873_v29 = vpack.c.bf16 %v1638_v27, %v1634_v25  ;;  %v12875_v30 = vpack.c.bf16 %v1639_v28, %v1635_v26  ;;  %v11978_v24 = vld [vmem:[#allocation2 + $0x5d0] sm:$0xff]   ;;  %v11981_v26 = vld [vmem:[#allocation2 + $0x618] sm:$0xff]  }
 0x306   :  { %v11980_v25 = vld [vmem:[#allocation2 + $0x650] sm:$0xff]   ;;  %v11983_v27 = vld [vmem:[#allocation2 + $0x698] sm:$0xff]  }
 0x307   :  { %1934 = vmatprep.mubr.bf16.mxu0 %v12875_v30  ;;  %v11982_v28 = vld [vmem:[#allocation2 + $0x5d8] sm:$0xff]  }
 0x308   :  { %1935 = vmatmul.mubr.bf16.vlgmr.msra.gmra.mrb[20].mxu0 %v12873_v29 }
 0x309   :  { %10752 = vmatpush3.bf16.msra.mxu0 %v11940_v31  ;;  %2272 = vmatprep.mubr.bf16.mxu0 %v12875_v30  ;;  %v11984_v31 = vld [vmem:[#allocation2 + $0x658] sm:$0xff]  }
 0x30a   :  { %10753 = vmatprep.subr.bf16.mxu0 %v11943_v32  ;;  %v11985_v32 = vld [vmem:[#allocation2 + $0x620] sm:$0xff]  }
 0x30d   :  { %10754 = vmatpush3.bf16.msra.mxu0 %v11944_v33  ;;  %v11987_v33 = vld [vmem:[#allocation2 + $0x6a0] sm:$0xff]  }
 0x30e   :  { %10755 = vmatprep.subr.bf16.mxu0 %v11947_v34  ;;  %v11986_v34 = vld [vmem:[#allocation2 + $0x5e0] sm:$0xff]  }
 0x311   :  { %10756 = vmatpush3.bf16.msra.mxu0 %v11948_v38  ;;  %v11988_v38 = vld [vmem:[#allocation2 + $0x660] sm:$0xff]  }
 0x312   :  { %10757 = vmatprep.subr.bf16.mxu0 %v11951_v39  ;;  %v11989_v39 = vld [vmem:[#allocation2 + $0x628] sm:$0xff]  }
 0x315   :  { %10758 = vmatpush3.bf16.msra.mxu0 %v11952_v40  ;;  %v11991_v40 = vld [vmem:[#allocation2 + $0x6a8] sm:$0xff]  }
 0x316   :  { %10759 = vmatprep.subr.bf16.mxu0 %v11955_v41  ;;  %v11990_v41 = vld [vmem:[#allocation2 + $0x5e8] sm:$0xff]  }
 0x319   :  { %v10679_v46 = vpop.f32.mrb[16].mxu0  ;;  %v10701_v47 = vpop.f32.mrb[16].mxu1  ;;  %10760 = vmatpush3.bf16.msra.mxu0 %v11956_v42  ;;  %v11992_v42 = vld [vmem:[#allocation2 + $0x668] sm:$0xff]  }
 0x31a   :  { %v10680_v51 = vpop.f32.mrb[17].mxu0  ;;  %v10702_v52 = vpop.f32.mrb[17].mxu1  ;;  %10761 = vmatprep.subr.bf16.mxu0 %v11959_v45  ;;  %v11993_v45 = vld [vmem:[#allocation2 + $0x630] sm:$0xff]  }
 0x31b   :  { %v10681_v54 = vadd.f32 %v10680_v51, %v10679_v46  ;;  %v10703_v55 = vadd.f32 %v10702_v52, %v10701_v47  ;;  %v10682_v56 = vpop.f32.mrb[18].mxu0  ;;  %v10704_v57 = vpop.f32.mrb[18].mxu1  ;;  %v11995_v46 = vld [vmem:[#allocation2 + $0x6b0] sm:$0xff]   ;;  %v11998_v51 = vld [vmem:[#allocation2 + $0x5f8] sm:$0xff]  }
 0x31c   :  { %v10683_v58 = vpop.f32.mrb[19].mxu0  ;;  %v10705_v59 = vpop.f32.mrb[19].mxu1  ;;  %v11994_v47 = vld [vmem:[#allocation2 + $0x5f0] sm:$0xff]   ;;  %v12000_v52 = vld [vmem:[#allocation2 + $0x678] sm:$0xff]  }
 0x31d   :  { %v1620_v60 = vadd.f32 %v10681_v54, %v1609_v48  ;;  %v1621_v61 = vadd.f32 %v10703_v55, %v1613_v49  ;;  %v10684_v62 = vadd.f32 %v10683_v58, %v10682_v56  ;;  %v10706_v63 = vadd.f32 %v10705_v59, %v10704_v57  ;;  %10762 = vmatpush3.bf16.msra.mxu0 %v11960_v50  ;;  %v11999_v50 = vld [vmem:[#allocation2 + $0x6b8] sm:$0xff]   ;;  %v12003_v54 = vld [vmem:[#allocation2 + $0x780] sm:$0xff]   ;;  %v12005_v57 = vld [vmem:[#allocation2 + $0x708] sm:$0xff]  }
 0x31e   :  { %10763 = vmatprep.subr.bf16.mxu0 %v11963_v53  ;;  %v12001_v53 = vld [vmem:[#allocation2 + $0x700] sm:$0xff]   ;;  %v12007_v58 = vld [vmem:[#allocation2 + $0x788] sm:$0xff]  }
 0x31f   :  { %v1628_v2 = vmul.f32 0.01, %v1620_v60  ;;  %v1629_v3 = vmul.f32 0.01, %v1621_v61  ;;  %v1624_v4 = vadd.f32 %v10684_v62, %v1609_v48  ;;  %v1625_v5 = vadd.f32 %v10706_v63, %v1613_v49  ;;  %v11996_v48 = vld [vmem:[#allocation2 + $0x670] sm:$0xff]   ;;  %v11997_v49 = vld [vmem:[#allocation2 + $0x638] sm:$0xff]  }
 0x320   :  { %v12002_v55 = vld [vmem:[#allocation2 + $0x6c0] sm:$0xff]   ;;  %v12006_v59 = vld [vmem:[#allocation2 + $0x6c8] sm:$0xff]   ;;  %v12011_v62 = vld [vmem:[#allocation2 + $0x790] sm:$0xff]  }
 0x321   :  { %v1632_v6 = vmul.f32 0.01, %v1624_v4  ;;  %v1633_v7 = vmul.f32 0.01, %v1625_v5  ;;  %10764 = vmatpush3.bf16.msra.mxu0 %v11964_v0  ;;  %v1636_v10 = vmax.f32 %v1620_v60, %v1628_v2  ;;  %v1637_v11 = vmax.f32 %v1621_v61, %v1629_v3  ;;  %v12004_v56 = vld [vmem:[#allocation2 + $0x740] sm:$0xff]   ;;  %v12008_v60 = vld [vmem:[#allocation2 + $0x748] sm:$0xff]  }
 0x322   :  { %10765 = vmatprep.subr.bf16.mxu0 %v11967_v1  ;;  %v12009_v61 = vld [vmem:[#allocation2 + $0x710] sm:$0xff]   ;;  %v12013_v1 = vld [vmem:[#allocation2 + $0x718] sm:$0xff]  }
 0x323   :  { %v1640_v12 = vmax.f32 %v1624_v4, %v1632_v6  ;;  %v1641_v13 = vmax.f32 %v1625_v5, %v1633_v7  ;;  %v12010_v63 = vld [vmem:[#allocation2 + $0x6d0] sm:$0xff]   ;;  %v12015_v2 = vld [vmem:[#allocation2 + $0x798] sm:$0xff]   ;;  %v12017_v5 = vld [vmem:[#allocation2 + $0x720] sm:$0xff]  }
 0x324   :  { %v12012_v0 = vld [vmem:[#allocation2 + $0x750] sm:$0xff]   ;;  %v12014_v3 = vld [vmem:[#allocation2 + $0x6d8] sm:$0xff]   ;;  %v12019_v6 = vld [vmem:[#allocation2 + $0x7a0] sm:$0xff]  }
 0x325   :  { %v12888_v14 = vpack.c.bf16 %v1640_v12, %v1636_v10  ;;  %v12890_v15 = vpack.c.bf16 %v1641_v13, %v1637_v11  ;;  %10766 = vmatpush3.bf16.msra.mxu0 %v11968_v8  ;;  %v12016_v4 = vld [vmem:[#allocation2 + $0x758] sm:$0xff]   ;;  %v12018_v7 = vld [vmem:[#allocation2 + $0x6e0] sm:$0xff]   ;;  %v12023_v10 = vld [vmem:[#allocation2 + $0x7a8] sm:$0xff]  }
 0x326   :  { %10795 = vmatprep.subr.bf16.mxu0 %v11971_v9  ;;  %v12020_v8 = vld [vmem:[#allocation2 + $0x760] sm:$0xff]   ;;  %v12021_v9 = vld [vmem:[#allocation2 + $0x728] sm:$0xff]   ;;  %v12025_v13 = vld [vmem:[#allocation2 + $0x730] sm:$0xff]  }
 0x327   :  { %1975 = vmatprep.mubr.bf16.mxu1 %v12890_v15  ;;  %v12022_v11 = vld [vmem:[#allocation2 + $0x6e8] sm:$0xff]  }
 0x328   :  { %1976 = vmatmul.mubr.bf16.vlgmr.msra.gmra.mrb[20].mxu1 %v12888_v14  ;;  %2273 = vmatmul.mubr.bf16.vlgmr.msra.gmra.mrb[24].mxu0 %v12873_v29  ;;  %v12024_v12 = vld [vmem:[#allocation2 + $0x768] sm:$0xff]  }
 0x329   :  { %10774 = vmatpush3.bf16.msra.mxu1 %v11970_v16  ;;  %2313 = vmatprep.mubr.bf16.mxu1 %v12890_v15  ;;  %v12027_v16 = vld [vmem:[#allocation2 + $0x7b0] sm:$0xff]  }
 0x32a   :  { %10796 = vmatpush3.bf16.msra.mxu0 %v11972_v17  ;;  %2610 = vmatprep.mubr.bf16.mxu0 %v12875_v30  ;;  %v12026_v17 = vld [vmem:[#allocation2 + $0x6f0] sm:$0xff]  }
 0x32b   :  { %10775 = vmatprep.subr.bf16.mxu1 %v11973_v18  ;;  %10797 = vmatprep.subr.bf16.mxu0 %v11975_v19  ;;  %v12028_v18 = vld [vmem:[#allocation2 + $0x770] sm:$0xff]   ;;  %v12029_v19 = vld [vmem:[#allocation2 + $0x738] sm:$0xff]  }
 0x32d   :  { %10776 = vmatpush3.bf16.msra.mxu1 %v11974_v20  ;;  %v12031_v20 = vld [vmem:[#allocation2 + $0x7b8] sm:$0xff]  }
 0x32e   :  { %10798 = vmatpush3.bf16.msra.mxu0 %v11976_v21  ;;  %10777 = vmatprep.subr.bf16.mxu1 %v11977_v22  ;;  %v12030_v21 = vld [vmem:[#allocation2 + $0x6f8] sm:$0xff]  }
 0x32f   :  { %10799 = vmatprep.subr.bf16.mxu0 %v11979_v23  ;;  %v12032_v22 = vld [vmem:[#allocation2 + $0x778] sm:$0xff]   ;;  %v12033_v23 = vld [vmem:[#allocation2 + $0x800] sm:$0xff]  }
 0x331   :  { %10778 = vmatpush3.bf16.msra.mxu1 %v11978_v24  ;;  %v12035_v24 = vld [vmem:[#allocation2 + $0x880] sm:$0xff]  }
 0x332   :  { %10800 = vmatpush3.bf16.msra.mxu0 %v11980_v25  ;;  %10779 = vmatprep.subr.bf16.mxu1 %v11981_v26  ;;  %v12034_v25 = vld [vmem:[#allocation2 + $0x7c0] sm:$0xff]  }
 0x333   :  { %10801 = vmatprep.subr.bf16.mxu0 %v11983_v27  ;;  %v12036_v26 = vld [vmem:[#allocation2 + $0x840] sm:$0xff]   ;;  %v12037_v27 = vld [vmem:[#allocation2 + $0x808] sm:$0xff]  }
 0x335   :  { %10780 = vmatpush3.bf16.msra.mxu1 %v11982_v28  ;;  %v12039_v28 = vld [vmem:[#allocation2 + $0x888] sm:$0xff]  }
 0x336   :  { %10802 = vmatpush3.bf16.msra.mxu0 %v11984_v31  ;;  %10781 = vmatprep.subr.bf16.mxu1 %v11985_v32  ;;  %v12038_v31 = vld [vmem:[#allocation2 + $0x7c8] sm:$0xff]  }
 0x337   :  { %10803 = vmatprep.subr.bf16.mxu0 %v11987_v33  ;;  %v12040_v32 = vld [vmem:[#allocation2 + $0x848] sm:$0xff]   ;;  %v12041_v33 = vld [vmem:[#allocation2 + $0x810] sm:$0xff]  }
 0x339   :  { %10782 = vmatpush3.bf16.msra.mxu1 %v11986_v34  ;;  %v12043_v34 = vld [vmem:[#allocation2 + $0x890] sm:$0xff]  }
 0x33a   :  { %10804 = vmatpush3.bf16.msra.mxu0 %v11988_v38  ;;  %10783 = vmatprep.subr.bf16.mxu1 %v11989_v39  ;;  %v12042_v38 = vld [vmem:[#allocation2 + $0x7d0] sm:$0xff]  }
 0x33b   :  { %10805 = vmatprep.subr.bf16.mxu0 %v11991_v40  ;;  %v12044_v39 = vld [vmem:[#allocation2 + $0x850] sm:$0xff]   ;;  %v12045_v40 = vld [vmem:[#allocation2 + $0x818] sm:$0xff]  }
 0x33d   :  { %10784 = vmatpush3.bf16.msra.mxu1 %v11990_v41  ;;  %v12047_v41 = vld [vmem:[#allocation2 + $0x898] sm:$0xff]  }
 0x33e   :  { %10806 = vmatpush3.bf16.msra.mxu0 %v11992_v42  ;;  %10785 = vmatprep.subr.bf16.mxu1 %v11993_v45  ;;  %v12046_v42 = vld [vmem:[#allocation2 + $0x7d8] sm:$0xff]  }
 0x33f   :  { %10807 = vmatprep.subr.bf16.mxu0 %v11995_v46  ;;  %v12048_v45 = vld [vmem:[#allocation2 + $0x858] sm:$0xff]   ;;  %v12049_v46 = vld [vmem:[#allocation2 + $0x820] sm:$0xff]  }
 0x341   :  { %10786 = vmatpush3.bf16.msra.mxu1 %v11994_v47  ;;  %v12051_v47 = vld [vmem:[#allocation2 + $0x8a0] sm:$0xff]  }
 0x342   :  { %10808 = vmatpush3.bf16.msra.mxu0 %v11996_v48  ;;  %10787 = vmatprep.subr.bf16.mxu1 %v11997_v49  ;;  %v12050_v48 = vld [vmem:[#allocation2 + $0x7e0] sm:$0xff]  }
 0x343   :  { %10809 = vmatprep.subr.bf16.mxu0 %v11999_v50  ;;  %v12052_v49 = vld [vmem:[#allocation2 + $0x860] sm:$0xff]   ;;  %v12053_v50 = vld [vmem:[#allocation2 + $0x828] sm:$0xff]  }
 0x345   :  { %10788 = vmatpush3.bf16.msra.mxu1 %v11998_v51  ;;  %v12055_v51 = vld [vmem:[#allocation2 + $0x8a8] sm:$0xff]  }
 0x346   :  { %10810 = vmatpush3.bf16.msra.mxu0 %v12000_v52  ;;  %10817 = vmatprep.subr.bf16.mxu1 %v12001_v53  ;;  %v12054_v52 = vld [vmem:[#allocation2 + $0x7e8] sm:$0xff]  }
 0x347   :  { %10839 = vmatprep.subr.bf16.mxu0 %v12003_v54  ;;  %v12056_v53 = vld [vmem:[#allocation2 + $0x868] sm:$0xff]   ;;  %v12057_v54 = vld [vmem:[#allocation2 + $0x830] sm:$0xff]  }
 0x348   :  { %2314 = vmatmul.mubr.bf16.vlgmr.msra.gmra.mrb[24].mxu1 %v12888_v14 }
 0x349   :  { %2611 = vmatmul.mubr.bf16.vlgmr.msra.gmra.mrb[28].mxu0 %v12873_v29  ;;  %10818 = vmatpush3.bf16.msra.mxu1 %v12002_v55  ;;  %v12059_v55 = vld [vmem:[#allocation2 + $0x8b0] sm:$0xff]  }
 0x34a   :  { %2651 = vmatprep.mubr.bf16.mxu1 %v12890_v15  ;;  %10840 = vmatpush3.bf16.msra.mxu0 %v12004_v56  ;;  %v12058_v56 = vld [vmem:[#allocation2 + $0x7f0] sm:$0xff]  }
 0x34b   :  { %2948 = vmatprep.mubr.bf16.mxu0 %v12875_v30  ;;  %10819 = vmatprep.subr.bf16.mxu1 %v12005_v57  ;;  %v12060_v57 = vld [vmem:[#allocation2 + $0x870] sm:$0xff]  }
 0x34c   :  { %10841 = vmatprep.subr.bf16.mxu0 %v12007_v58  ;;  %v12061_v58 = vld [vmem:[#allocation2 + $0x838] sm:$0xff]  }
 0x34d   :  { %10820 = vmatpush3.bf16.msra.mxu1 %v12006_v59  ;;  %v12063_v59 = vld [vmem:[#allocation2 + $0x8b8] sm:$0xff]  }
 0x34e   :  { %10842 = vmatpush3.bf16.msra.mxu0 %v12008_v60  ;;  %10821 = vmatprep.subr.bf16.mxu1 %v12009_v61  ;;  %v12062_v60 = vld [vmem:[#allocation2 + $0x7f8] sm:$0xff]  }
 0x34f   :  { %10843 = vmatprep.subr.bf16.mxu0 %v12011_v62  ;;  %v12064_v61 = vld [vmem:[#allocation2 + $0x878] sm:$0xff]   ;;  %v12065_v62 = vld [vmem:[#allocation2 + $0x900] sm:$0xff]  }
 0x351   :  { %10822 = vmatpush3.bf16.msra.mxu1 %v12010_v63  ;;  %v12067_v63 = vld [vmem:[#allocation2 + $0x980] sm:$0xff]  }
 0x352   :  { %10844 = vmatpush3.bf16.msra.mxu0 %v12012_v0  ;;  %10823 = vmatprep.subr.bf16.mxu1 %v12013_v1  ;;  %v12066_v0 = vld [vmem:[#allocation2 + $0x8c0] sm:$0xff]  }
 0x353   :  { %10845 = vmatprep.subr.bf16.mxu0 %v12015_v2  ;;  %v12068_v1 = vld [vmem:[#allocation2 + $0x940] sm:$0xff]   ;;  %v12069_v2 = vld [vmem:[#allocation2 + $0x908] sm:$0xff]  }
 0x355   :  { %10824 = vmatpush3.bf16.msra.mxu1 %v12014_v3  ;;  %v12071_v3 = vld [vmem:[#allocation2 + $0x988] sm:$0xff]  }
 0x356   :  { %10846 = vmatpush3.bf16.msra.mxu0 %v12016_v4  ;;  %10825 = vmatprep.subr.bf16.mxu1 %v12017_v5  ;;  %v12070_v4 = vld [vmem:[#allocation2 + $0x8c8] sm:$0xff]  }
 0x357   :  { %10847 = vmatprep.subr.bf16.mxu0 %v12019_v6  ;;  %v12072_v5 = vld [vmem:[#allocation2 + $0x948] sm:$0xff]   ;;  %v12073_v6 = vld [vmem:[#allocation2 + $0x910] sm:$0xff]  }
 0x359   :  { %10826 = vmatpush3.bf16.msra.mxu1 %v12018_v7  ;;  %v12075_v7 = vld [vmem:[#allocation2 + $0x990] sm:$0xff]  }
 0x35a   :  { %10848 = vmatpush3.bf16.msra.mxu0 %v12020_v8  ;;  %10827 = vmatprep.subr.bf16.mxu1 %v12021_v9  ;;  %v12074_v8 = vld [vmem:[#allocation2 + $0x8d0] sm:$0xff]  }
 0x35b   :  { %10849 = vmatprep.subr.bf16.mxu0 %v12023_v10  ;;  %v12076_v9 = vld [vmem:[#allocation2 + $0x950] sm:$0xff]   ;;  %v12077_v10 = vld [vmem:[#allocation2 + $0x918] sm:$0xff]  }
 0x35d   :  { %10828 = vmatpush3.bf16.msra.mxu1 %v12022_v11  ;;  %v12079_v11 = vld [vmem:[#allocation2 + $0x998] sm:$0xff]  }
 0x35e   :  { %10850 = vmatpush3.bf16.msra.mxu0 %v12024_v12  ;;  %10829 = vmatprep.subr.bf16.mxu1 %v12025_v13  ;;  %v12078_v12 = vld [vmem:[#allocation2 + $0x8d8] sm:$0xff]  }
 0x35f   :  { %10851 = vmatprep.subr.bf16.mxu0 %v12027_v16  ;;  %v12080_v13 = vld [vmem:[#allocation2 + $0x958] sm:$0xff]   ;;  %v12081_v16 = vld [vmem:[#allocation2 + $0x920] sm:$0xff]  }
 0x361   :  { %10830 = vmatpush3.bf16.msra.mxu1 %v12026_v17  ;;  %v12083_v17 = vld [vmem:[#allocation2 + $0x9a0] sm:$0xff]  }
 0x362   :  { %10852 = vmatpush3.bf16.msra.mxu0 %v12028_v18  ;;  %10831 = vmatprep.subr.bf16.mxu1 %v12029_v19  ;;  %v12082_v18 = vld [vmem:[#allocation2 + $0x8e0] sm:$0xff]  }
 0x363   :  { %10853 = vmatprep.subr.bf16.mxu0 %v12031_v20  ;;  %v12084_v19 = vld [vmem:[#allocation2 + $0x960] sm:$0xff]   ;;  %v12085_v20 = vld [vmem:[#allocation2 + $0x928] sm:$0xff]  }
 0x365   :  { %10832 = vmatpush3.bf16.msra.mxu1 %v12030_v21  ;;  %v12087_v21 = vld [vmem:[#allocation2 + $0x9a8] sm:$0xff]  }
 0x366   :  { %10854 = vmatpush3.bf16.msra.mxu0 %v12032_v22  ;;  %10861 = vmatprep.subr.bf16.mxu1 %v12033_v23  ;;  %v12086_v22 = vld [vmem:[#allocation2 + $0x8e8] sm:$0xff]  }
 0x367   :  { %10883 = vmatprep.subr.bf16.mxu0 %v12035_v24  ;;  %v12088_v23 = vld [vmem:[#allocation2 + $0x968] sm:$0xff]   ;;  %v12089_v24 = vld [vmem:[#allocation2 + $0x930] sm:$0xff]  }
 0x368   :  { %2652 = vmatmul.mubr.bf16.vlgmr.msra.gmra.mrb[28].mxu1 %v12888_v14 }
 0x369   :  { %2949 = vmatmul.mubr.bf16.vlgmr.msra.gmra.mrb[32].mxu0 %v12873_v29  ;;  %10862 = vmatpush3.bf16.msra.mxu1 %v12034_v25  ;;  %v12091_v25 = vld [vmem:[#allocation2 + $0x9b0] sm:$0xff]  }
 0x36a   :  { %2989 = vmatprep.mubr.bf16.mxu1 %v12890_v15  ;;  %10884 = vmatpush3.bf16.msra.mxu0 %v12036_v26  ;;  %v12090_v26 = vld [vmem:[#allocation2 + $0x8f0] sm:$0xff]  }
 0x36b   :  { %3286 = vmatprep.mubr.bf16.mxu0 %v12875_v30  ;;  %10863 = vmatprep.subr.bf16.mxu1 %v12037_v27  ;;  %v12092_v27 = vld [vmem:[#allocation2 + $0x970] sm:$0xff]  }
 0x36c   :  { %10885 = vmatprep.subr.bf16.mxu0 %v12039_v28  ;;  %v12093_v28 = vld [vmem:[#allocation2 + $0x938] sm:$0xff]  }
 0x36d   :  { %10864 = vmatpush3.bf16.msra.mxu1 %v12038_v31  ;;  %v12095_v31 = vld [vmem:[#allocation2 + $0x9b8] sm:$0xff]  }
 0x36e   :  { %10886 = vmatpush3.bf16.msra.mxu0 %v12040_v32  ;;  %10865 = vmatprep.subr.bf16.mxu1 %v12041_v33  ;;  %v12094_v32 = vld [vmem:[#allocation2 + $0x8f8] sm:$0xff]  }
 0x36f   :  { %10887 = vmatprep.subr.bf16.mxu0 %v12043_v34  ;;  %v12096_v33 = vld [vmem:[#allocation2 + $0x978] sm:$0xff]   ;;  %v12097_v34 = vld [vmem:[#allocation2 + $0xa00] sm:$0xff]  }
 0x371   :  { %10866 = vmatpush3.bf16.msra.mxu1 %v12042_v38  ;;  %v12099_v38 = vld [vmem:[#allocation2 + $0xa80] sm:$0xff]  }
 0x372   :  { %10888 = vmatpush3.bf16.msra.mxu0 %v12044_v39  ;;  %10867 = vmatprep.subr.bf16.mxu1 %v12045_v40  ;;  %v12098_v39 = vld [vmem:[#allocation2 + $0x9c0] sm:$0xff]  }
 0x373   :  { %10889 = vmatprep.subr.bf16.mxu0 %v12047_v41  ;;  %v12100_v40 = vld [vmem:[#allocation2 + $0xa40] sm:$0xff]   ;;  %v12101_v41 = vld [vmem:[#allocation2 + $0xa08] sm:$0xff]  }
 0x375   :  { %10868 = vmatpush3.bf16.msra.mxu1 %v12046_v42  ;;  %v12103_v42 = vld [vmem:[#allocation2 + $0xa88] sm:$0xff]  }
 0x376   :  { %10890 = vmatpush3.bf16.msra.mxu0 %v12048_v45  ;;  %10869 = vmatprep.subr.bf16.mxu1 %v12049_v46  ;;  %v12102_v45 = vld [vmem:[#allocation2 + $0x9c8] sm:$0xff]  }
 0x377   :  { %10891 = vmatprep.subr.bf16.mxu0 %v12051_v47  ;;  %v12104_v46 = vld [vmem:[#allocation2 + $0xa48] sm:$0xff]   ;;  %v12105_v47 = vld [vmem:[#allocation2 + $0xa10] sm:$0xff]  }
 0x379   :  { %10870 = vmatpush3.bf16.msra.mxu1 %v12050_v48  ;;  %v12107_v48 = vld [vmem:[#allocation2 + $0xa90] sm:$0xff]  }
 0x37a   :  { %10892 = vmatpush3.bf16.msra.mxu0 %v12052_v49  ;;  %10871 = vmatprep.subr.bf16.mxu1 %v12053_v50  ;;  %v12106_v49 = vld [vmem:[#allocation2 + $0x9d0] sm:$0xff]  }
 0x37b   :  { %10893 = vmatprep.subr.bf16.mxu0 %v12055_v51  ;;  %v12108_v50 = vld [vmem:[#allocation2 + $0xa50] sm:$0xff]   ;;  %v12109_v51 = vld [vmem:[#allocation2 + $0xa18] sm:$0xff]  }
 0x37d   :  { %10872 = vmatpush3.bf16.msra.mxu1 %v12054_v52  ;;  %v12111_v52 = vld [vmem:[#allocation2 + $0xa98] sm:$0xff]  }
 0x37e   :  { %10894 = vmatpush3.bf16.msra.mxu0 %v12056_v53  ;;  %10873 = vmatprep.subr.bf16.mxu1 %v12057_v54  ;;  %v12110_v53 = vld [vmem:[#allocation2 + $0x9d8] sm:$0xff]  }
 0x37f   :  { %10895 = vmatprep.subr.bf16.mxu0 %v12059_v55  ;;  %v12112_v54 = vld [vmem:[#allocation2 + $0xa58] sm:$0xff]   ;;  %v12113_v55 = vld [vmem:[#allocation2 + $0xa20] sm:$0xff]  }
 0x381   :  { %10874 = vmatpush3.bf16.msra.mxu1 %v12058_v56  ;;  %v12115_v56 = vld [vmem:[#allocation2 + $0xaa0] sm:$0xff]  }
 0x382   :  { %10896 = vmatpush3.bf16.msra.mxu0 %v12060_v57  ;;  %10875 = vmatprep.subr.bf16.mxu1 %v12061_v58  ;;  %v12114_v57 = vld [vmem:[#allocation2 + $0x9e0] sm:$0xff]  }
 0x383   :  { %10897 = vmatprep.subr.bf16.mxu0 %v12063_v59  ;;  %v12116_v58 = vld [vmem:[#allocation2 + $0xa60] sm:$0xff]   ;;  %v12117_v59 = vld [vmem:[#allocation2 + $0xa28] sm:$0xff]  }
 0x385   :  { %10876 = vmatpush3.bf16.msra.mxu1 %v12062_v60  ;;  %v12119_v60 = vld [vmem:[#allocation2 + $0xaa8] sm:$0xff]  }
 0x386   :  { %10898 = vmatpush3.bf16.msra.mxu0 %v12064_v61  ;;  %10905 = vmatprep.subr.bf16.mxu1 %v12065_v62  ;;  %v12118_v61 = vld [vmem:[#allocation2 + $0x9e8] sm:$0xff]  }
 0x387   :  { %10927 = vmatprep.subr.bf16.mxu0 %v12067_v63  ;;  %v12120_v62 = vld [vmem:[#allocation2 + $0xa68] sm:$0xff]   ;;  %v12121_v63 = vld [vmem:[#allocation2 + $0xa30] sm:$0xff]  }
 0x388   :  { %2990 = vmatmul.mubr.bf16.vlgmr.msra.gmra.mrb[32].mxu1 %v12888_v14 }
 0x389   :  { %3287 = vmatmul.mubr.bf16.vlgmr.msra.gmra.mrb[36].mxu0 %v12873_v29  ;;  %10906 = vmatpush3.bf16.msra.mxu1 %v12066_v0  ;;  %v12123_v0 = vld [vmem:[#allocation2 + $0xab0] sm:$0xff]  }
 0x38a   :  { %3327 = vmatprep.mubr.bf16.mxu1 %v12890_v15  ;;  %10928 = vmatpush3.bf16.msra.mxu0 %v12068_v1  ;;  %v12122_v1 = vld [vmem:[#allocation2 + $0x9f0] sm:$0xff]  }
 0x38b   :  { %3624 = vmatprep.mubr.bf16.mxu0 %v12875_v30  ;;  %10907 = vmatprep.subr.bf16.mxu1 %v12069_v2  ;;  %v12124_v2 = vld [vmem:[#allocation2 + $0xa70] sm:$0xff]  }
 0x38c   :  { %10929 = vmatprep.subr.bf16.mxu0 %v12071_v3  ;;  %v12125_v3 = vld [vmem:[#allocation2 + $0xa38] sm:$0xff]  }
 0x38d   :  { %10908 = vmatpush3.bf16.msra.mxu1 %v12070_v4  ;;  %v12127_v4 = vld [vmem:[#allocation2 + $0xab8] sm:$0xff]  }
 0x38e   :  { %10930 = vmatpush3.bf16.msra.mxu0 %v12072_v5  ;;  %10909 = vmatprep.subr.bf16.mxu1 %v12073_v6  ;;  %v12126_v5 = vld [vmem:[#allocation2 + $0x9f8] sm:$0xff]  }
 0x38f   :  { %10931 = vmatprep.subr.bf16.mxu0 %v12075_v7  ;;  %v12128_v6 = vld [vmem:[#allocation2 + $0xa78] sm:$0xff]   ;;  %v12129_v7 = vld [vmem:[#allocation2 + $0xb00] sm:$0xff]  }
 0x391   :  { %10910 = vmatpush3.bf16.msra.mxu1 %v12074_v8  ;;  %v12131_v8 = vld [vmem:[#allocation2 + $0xb80] sm:$0xff]  }
 0x392   :  { %10932 = vmatpush3.bf16.msra.mxu0 %v12076_v9  ;;  %10911 = vmatprep.subr.bf16.mxu1 %v12077_v10  ;;  %v12130_v9 = vld [vmem:[#allocation2 + $0xac0] sm:$0xff]  }
 0x393   :  { %10933 = vmatprep.subr.bf16.mxu0 %v12079_v11  ;;  %v12132_v10 = vld [vmem:[#allocation2 + $0xb40] sm:$0xff]   ;;  %v12133_v11 = vld [vmem:[#allocation2 + $0xb08] sm:$0xff]  }
 0x395   :  { %10912 = vmatpush3.bf16.msra.mxu1 %v12078_v12  ;;  %v12135_v12 = vld [vmem:[#allocation2 + $0xb88] sm:$0xff]  }
 0x396   :  { %10934 = vmatpush3.bf16.msra.mxu0 %v12080_v13  ;;  %10913 = vmatprep.subr.bf16.mxu1 %v12081_v16  ;;  %v12134_v13 = vld [vmem:[#allocation2 + $0xac8] sm:$0xff]  }
 0x397   :  { %10935 = vmatprep.subr.bf16.mxu0 %v12083_v17  ;;  %v12136_v16 = vld [vmem:[#allocation2 + $0xb48] sm:$0xff]   ;;  %v12137_v17 = vld [vmem:[#allocation2 + $0xb10] sm:$0xff]  }
 0x399   :  { %10914 = vmatpush3.bf16.msra.mxu1 %v12082_v18  ;;  %v12139_v18 = vld [vmem:[#allocation2 + $0xb90] sm:$0xff]  }
 0x39a   :  { %10936 = vmatpush3.bf16.msra.mxu0 %v12084_v19  ;;  %10915 = vmatprep.subr.bf16.mxu1 %v12085_v20  ;;  %v12138_v19 = vld [vmem:[#allocation2 + $0xad0] sm:$0xff]  }
 0x39b   :  { %10937 = vmatprep.subr.bf16.mxu0 %v12087_v21  ;;  %v12140_v20 = vld [vmem:[#allocation2 + $0xb50] sm:$0xff]   ;;  %v12141_v21 = vld [vmem:[#allocation2 + $0xb18] sm:$0xff]  }
 0x39d   :  { %10916 = vmatpush3.bf16.msra.mxu1 %v12086_v22  ;;  %v12143_v22 = vld [vmem:[#allocation2 + $0xb98] sm:$0xff]  }
 0x39e   :  { %10938 = vmatpush3.bf16.msra.mxu0 %v12088_v23  ;;  %10917 = vmatprep.subr.bf16.mxu1 %v12089_v24  ;;  %v12142_v23 = vld [vmem:[#allocation2 + $0xad8] sm:$0xff]  }
 0x39f   :  { %10939 = vmatprep.subr.bf16.mxu0 %v12091_v25  ;;  %v12144_v24 = vld [vmem:[#allocation2 + $0xb58] sm:$0xff]   ;;  %v12145_v25 = vld [vmem:[#allocation2 + $0xb20] sm:$0xff]  }
 0x3a1   :  { %10918 = vmatpush3.bf16.msra.mxu1 %v12090_v26  ;;  %v12147_v26 = vld [vmem:[#allocation2 + $0xba0] sm:$0xff]  }
 0x3a2   :  { %10940 = vmatpush3.bf16.msra.mxu0 %v12092_v27  ;;  %10919 = vmatprep.subr.bf16.mxu1 %v12093_v28  ;;  %v12148_v27 = vld [vmem:[#allocation2 + $0xb60] sm:$0xff]   ;;  %v12149_v28 = vld [vmem:[#allocation2 + $0xb28] sm:$0xff]  }
 0x3a3   :  { %10941 = vmatprep.subr.bf16.mxu0 %v12095_v31  ;;  %v12151_v31 = vld [vmem:[#allocation2 + $0xba8] sm:$0xff]  }
 0x3a5   :  { %10920 = vmatpush3.bf16.msra.mxu1 %v12094_v32  ;;  %v12150_v32 = vld [vmem:[#allocation2 + $0xae8] sm:$0xff]  }
 0x3a6   :  { %10942 = vmatpush3.bf16.msra.mxu0 %v12096_v33  ;;  %10949 = vmatprep.subr.bf16.mxu1 %v12097_v34  ;;  %v12152_v33 = vld [vmem:[#allocation2 + $0xb68] sm:$0xff]   ;;  %v12153_v34 = vld [vmem:[#allocation2 + $0xb30] sm:$0xff]  }
 0x3a7   :  { %10971 = vmatprep.subr.bf16.mxu0 %v12099_v38 }
 0x3a8   :  { %3328 = vmatmul.mubr.bf16.vlgmr.msra.gmra.mrb[36].mxu1 %v12888_v14 }
 0x3a9   :  { %3625 = vmatmul.mubr.bf16.vlgmr.msra.gmra.mrb[40].mxu0 %v12873_v29  ;;  %10950 = vmatpush3.bf16.msra.mxu1 %v12098_v39  ;;  %v12155_v39 = vld [vmem:[#allocation2 + $0xbb0] sm:$0xff]  }
 0x3aa   :  { %3665 = vmatprep.mubr.bf16.mxu1 %v12890_v15  ;;  %10972 = vmatpush3.bf16.msra.mxu0 %v12100_v40 }
 0x3ab   :  { %3962 = vmatprep.mubr.bf16.mxu0 %v12875_v30  ;;  %10951 = vmatprep.subr.bf16.mxu1 %v12101_v41 }
 0x3ac   :  { %10973 = vmatprep.subr.bf16.mxu0 %v12103_v42 }
 0x3ad   :  { %10952 = vmatpush3.bf16.msra.mxu1 %v12102_v45  ;;  %v12154_v45 = vld [vmem:[#allocation2 + $0xaf0] sm:$0xff]  }
 0x3ae   :  { %10974 = vmatpush3.bf16.msra.mxu0 %v12104_v46  ;;  %10953 = vmatprep.subr.bf16.mxu1 %v12105_v47  ;;  %v12156_v47 = vld [vmem:[#allocation2 + $0xb70] sm:$0xff]  }
 0x3af   :  { %10975 = vmatprep.subr.bf16.mxu0 %v12107_v48  ;;  %v12157_v48 = vld [vmem:[#allocation2 + $0xb38] sm:$0xff]  }
 0x3b1   :  { %10954 = vmatpush3.bf16.msra.mxu1 %v12106_v49 }
 0x3b2   :  { %10976 = vmatpush3.bf16.msra.mxu0 %v12108_v50  ;;  %10955 = vmatprep.subr.bf16.mxu1 %v12109_v51  ;;  %v12159_v50 = vld [vmem:[#allocation2 + $0xbb8] sm:$0xff]  }
 0x3b3   :  { %10977 = vmatprep.subr.bf16.mxu0 %v12111_v52  ;;  %v12158_v51 = vld [vmem:[#allocation2 + $0xaf8] sm:$0xff]  }
 0x3b4   :  { %v12160_v52 = vld [vmem:[#allocation2 + $0xb78] sm:$0xff]  }
 0x3b5   :  { %10956 = vmatpush3.bf16.msra.mxu1 %v12110_v53  ;;  %v12161_v53 = vld [vmem:[#allocation2 + $0xc00] sm:$0xff]  }
 0x3b6   :  { %10978 = vmatpush3.bf16.msra.mxu0 %v12112_v54  ;;  %10957 = vmatprep.subr.bf16.mxu1 %v12113_v55  ;;  %v12177_v54 = vld [vmem:[#allocation2 + $0xc80] sm:$0xff]  }
 0x3b7   :  { %10979 = vmatprep.subr.bf16.mxu0 %v12115_v56  ;;  %v12162_v55 = vld [vmem:[#allocation2 + $0xbc0] sm:$0xff]   ;;  %v12163_v56 = vld [vmem:[#allocation2 + $0xc08] sm:$0xff]  }
 0x3b9   :  { %10958 = vmatpush3.bf16.msra.mxu1 %v12114_v57  ;;  %v12178_v57 = vld [vmem:[#allocation2 + $0xc40] sm:$0xff]  }
 0x3ba   :  { %10980 = vmatpush3.bf16.msra.mxu0 %v12116_v58  ;;  %10959 = vmatprep.subr.bf16.mxu1 %v12117_v59  ;;  %v12179_v58 = vld [vmem:[#allocation2 + $0xc88] sm:$0xff]  }
 0x3bb   :  { %10981 = vmatprep.subr.bf16.mxu0 %v12119_v60  ;;  %v12164_v59 = vld [vmem:[#allocation2 + $0xbc8] sm:$0xff]   ;;  %v12165_v60 = vld [vmem:[#allocation2 + $0xc10] sm:$0xff]  }
 0x3bd   :  { %10960 = vmatpush3.bf16.msra.mxu1 %v12118_v61  ;;  %v12180_v61 = vld [vmem:[#allocation2 + $0xc48] sm:$0xff]  }
 0x3be   :  { %10982 = vmatpush3.bf16.msra.mxu0 %v12120_v62  ;;  %10961 = vmatprep.subr.bf16.mxu1 %v12121_v63  ;;  %v12181_v62 = vld [vmem:[#allocation2 + $0xc90] sm:$0xff]  }
 0x3bf   :  { %10983 = vmatprep.subr.bf16.mxu0 %v12123_v0  ;;  %v12166_v63 = vld [vmem:[#allocation2 + $0xbd0] sm:$0xff]   ;;  %v12167_v0 = vld [vmem:[#allocation2 + $0xc18] sm:$0xff]  }
 0x3c1   :  { %10962 = vmatpush3.bf16.msra.mxu1 %v12122_v1  ;;  %v12182_v1 = vld [vmem:[#allocation2 + $0xc50] sm:$0xff]  }
 0x3c2   :  { %10984 = vmatpush3.bf16.msra.mxu0 %v12124_v2  ;;  %10963 = vmatprep.subr.bf16.mxu1 %v12125_v3  ;;  %v12183_v2 = vld [vmem:[#allocation2 + $0xc98] sm:$0xff]   ;;  %v12169_v3 = vld [vmem:[#allocation2 + $0xc20] sm:$0xff]  }
 0x3c3   :  { %10985 = vmatprep.subr.bf16.mxu0 %v12127_v4  ;;  %v12185_v4 = vld [vmem:[#allocation2 + $0xca0] sm:$0xff]  }
 0x3c5   :  { %10964 = vmatpush3.bf16.msra.mxu1 %v12126_v5  ;;  %v12170_v5 = vld [vmem:[#allocation2 + $0xbe0] sm:$0xff]  }
 0x3c6   :  { %10986 = vmatpush3.bf16.msra.mxu0 %v12128_v6  ;;  %10993 = vmatprep.subr.bf16.mxu1 %v12129_v7  ;;  %v12171_v6 = vld [vmem:[#allocation2 + $0xc28] sm:$0xff]   ;;  %v12186_v7 = vld [vmem:[#allocation2 + $0xc60] sm:$0xff]  }
 0x3c7   :  { %11015 = vmatprep.subr.bf16.mxu0 %v12131_v8  ;;  %v12187_v8 = vld [vmem:[#allocation2 + $0xca8] sm:$0xff]  }
 0x3c8   :  { %3666 = vmatmul.mubr.bf16.vlgmr.msra.gmra.mrb[40].mxu1 %v12888_v14 }
 0x3c9   :  { %3963 = vmatmul.mubr.bf16.vlgmr.msra.gmra.mrb[44].mxu0 %v12873_v29  ;;  %10994 = vmatpush3.bf16.msra.mxu1 %v12130_v9  ;;  %v12172_v9 = vld [vmem:[#allocation2 + $0xbe8] sm:$0xff]  }
 0x3ca   :  { %4003 = vmatprep.mubr.bf16.mxu1 %v12890_v15  ;;  %11016 = vmatpush3.bf16.msra.mxu0 %v12132_v10  ;;  %v12924_v10 = vld [vmem:[#allocation4 + $0x7] sm:$0xff] }
 0x3cb   :  { %4300 = vmatprep.mubr.bf16.mxu0 %v12875_v30  ;;  %10995 = vmatprep.subr.bf16.mxu1 %v12133_v11  ;;  %v12146_v30 = vld [vmem:[#allocation2 + $0xae0] sm:$0xff]   ;;  %v12173_v11 = vld [vmem:[#allocation2 + $0xc30] sm:$0xff]  }
 0x3cc   :  { %11017 = vmatprep.subr.bf16.mxu0 %v12135_v12 }
 0x3cd   :  { %10996 = vmatpush3.bf16.msra.mxu1 %v12134_v13 }
 0x3ce   :  { %11018 = vmatpush3.bf16.msra.mxu0 %v12136_v16  ;;  %10997 = vmatprep.subr.bf16.mxu1 %v12137_v17  ;;  %v12188_v16 = vld [vmem:[#allocation2 + $0xc68] sm:$0xff]  }
 0x3cf   :  { %11019 = vmatprep.subr.bf16.mxu0 %v12139_v18 }
 0x3d1   :  { %10998 = vmatpush3.bf16.msra.mxu1 %v12138_v19  ;;  %v12189_v19 = vld [vmem:[#allocation2 + $0xcb0] sm:$0xff]  }
 0x3d2   :  { %11020 = vmatpush3.bf16.msra.mxu0 %v12140_v20  ;;  %10999 = vmatprep.subr.bf16.mxu1 %v12141_v21  ;;  %v4355_v21 = vrot.slane %v12924_v10, %v12858_v36 }
 0x3d3   :  { %11021 = vmatprep.subr.bf16.mxu0 %v12143_v22 }
 0x3d5   :  { %11000 = vmatpush3.bf16.msra.mxu1 %v12142_v23 }
 0x3d6   :  { %11022 = vmatpush3.bf16.msra.mxu0 %v12144_v24  ;;  %11001 = vmatprep.subr.bf16.mxu1 %v12145_v25  ;;  %v12174_v25 = vld [vmem:[#allocation2 + $0xbf0] sm:$0xff]  }
 0x3d7   :  { %11023 = vmatprep.subr.bf16.mxu0 %v12147_v26 }
 0x3d9   :  { %11002 = vmatpush3.bf16.msra.mxu1 %v12146_v30 }
 0x3da   :  { %11024 = vmatpush3.bf16.msra.mxu0 %v12148_v27  ;;  %11003 = vmatprep.subr.bf16.mxu1 %v12149_v28  ;;  %v12175_v27 = vld [vmem:[#allocation2 + $0xc38] sm:$0xff]  }
 0x3db   :  { %v10723_v38 = vpop.f32.mrb[20].mxu0  ;;  %11025 = vmatprep.subr.bf16.mxu0 %v12151_v31 }
 0x3dc   :  { %v10724_v40 = vpop.f32.mrb[21].mxu0 }
 0x3dd   :  { %11004 = vmatpush3.bf16.msra.mxu1 %v12150_v32  ;;  %v12917_v41 = vadd.f32 %v10724_v40, %v10723_v38  ;;  %v10726_v42 = vpop.f32.mrb[22].mxu0  ;;  %v12176_v40 = vld [vmem:[#allocation2 + $0xbf8] sm:$0xff]  }
 0x3de   :  { %11026 = vmatpush3.bf16.msra.mxu0 %v12152_v33  ;;  %v10727_v46 = vpop.f32.mrb[23].mxu0  ;;  %11005 = vmatprep.subr.bf16.mxu1 %v12153_v34  ;;  %v12190_v33 = vld [vmem:[#allocation2 + $0xc70] sm:$0xff]   ;;  %v12191_v34 = vld [vmem:[#allocation2 + $0xcb8] sm:$0xff]  }
 0x3df   :  { %v12919_v49 = vadd.f32 %v10727_v46, %v10726_v42  ;;  %11027 = vmatprep.subr.bf16.mxu0 %v12155_v39  ;;  %v12193_v42 = vld [vmem:[#allocation2 + $0xd00] sm:$0xff]  }
 0x3e1   :  { %11006 = vmatpush3.bf16.msra.mxu1 %v12154_v45 }
 0x3e2   :  { %11028 = vmatpush3.bf16.msra.mxu0 %v12156_v47  ;;  %11007 = vmatprep.subr.bf16.mxu1 %v12157_v48  ;;  %v12192_v47 = vld [vmem:[#allocation2 + $0xc78] sm:$0xff]   ;;  %v12194_v48 = vld [vmem:[#allocation2 + $0xcc0] sm:$0xff]  }
 0x3e3   :  { %11029 = vmatprep.subr.bf16.mxu0 %v12159_v50  ;;  %v12195_v50 = vld [vmem:[#allocation2 + $0xd08] sm:$0xff]  }
 0x3e5   :  { %11008 = vmatpush3.bf16.msra.mxu1 %v12158_v51 }
 0x3e6   :  { %11030 = vmatpush3.bf16.msra.mxu0 %v12160_v52  ;;  %11037 = vmatprep.subr.bf16.mxu1 %v12161_v53  ;;  %v12209_v53 = vld [vmem:[#allocation2 + $0xd80] sm:$0xff]  }
 0x3e7   :  { %11059 = vmatprep.subr.bf16.mxu0 %v12177_v54  ;;  %v12196_v54 = vld [vmem:[#allocation2 + $0xcc8] sm:$0xff]  }
 0x3e8   :  { %4004 = vmatmul.mubr.bf16.vlgmr.msra.gmra.mrb[44].mxu1 %v12888_v14 }
 0x3e9   :  { %4301 = vmatmul.mubr.bf16.vlgmr.msra.gmra.mrb[48].mxu0 %v12873_v29  ;;  %11038 = vmatpush3.bf16.msra.mxu1 %v12162_v55  ;;  %v12168_v29 = vld [vmem:[#allocation2 + $0xbd8] sm:$0xff]   ;;  %v12197_v55 = vld [vmem:[#allocation2 + $0xd10] sm:$0xff]  }
 0x3ea   :  { %4341 = vmatprep.mubr.bf16.mxu1 %v12890_v15  ;;  %11039 = vmatprep.subr.bf16.mxu1 %v12163_v56  ;;  %v12184_v15 = vld [vmem:[#allocation2 + $0xc58] sm:$0xff]   ;;  %v12198_v56 = vld [vmem:[#allocation2 + $0xcd0] sm:$0xff]  }
 0x3eb   :  { %11060 = vmatpush3.bf16.msra.mxu0 %v12178_v57  ;;  %v12199_v57 = vld [vmem:[#allocation2 + $0xd18] sm:$0xff]  }
 0x3ec   :  { %11061 = vmatprep.subr.bf16.mxu0 %v12179_v58  ;;  %v12200_v58 = vld [vmem:[#allocation2 + $0xcd8] sm:$0xff]  }
 0x3ed   :  { %11040 = vmatpush3.bf16.msra.mxu1 %v12164_v59  ;;  %v12201_v59 = vld [vmem:[#allocation2 + $0xd20] sm:$0xff]  }
 0x3ee   :  { %11041 = vmatprep.subr.bf16.mxu1 %v12165_v60  ;;  %v12202_v60 = vld [vmem:[#allocation2 + $0xce0] sm:$0xff]  }
 0x3ef   :  { %11062 = vmatpush3.bf16.msra.mxu0 %v12180_v61  ;;  %v12203_v61 = vld [vmem:[#allocation2 + $0xd28] sm:$0xff]  }
 0x3f0   :  { %11063 = vmatprep.subr.bf16.mxu0 %v12181_v62  ;;  %v12205_v62 = vld [vmem:[#allocation2 + $0xd30] sm:$0xff]  }
 0x3f1   :  { %11042 = vmatpush3.bf16.msra.mxu1 %v12166_v63 }
 0x3f2   :  { %11043 = vmatprep.subr.bf16.mxu1 %v12167_v0 }
 0x3f3   :  { %11064 = vmatpush3.bf16.msra.mxu0 %v12182_v1 }
 0x3f4   :  { %11065 = vmatprep.subr.bf16.mxu0 %v12183_v2 }
 0x3f5   :  { %11044 = vmatpush3.bf16.msra.mxu1 %v12168_v29  ;;  %v4359_v29 = vrot.slane %v12924_v10, %v12861_v37 }
 0x3f6   :  { %11045 = vmatprep.subr.bf16.mxu1 %v12169_v3 }
 0x3f7   :  { %11066 = vmatpush3.bf16.msra.mxu0 %v12184_v15 }
 0x3f8   :  { %11067 = vmatprep.subr.bf16.mxu0 %v12185_v4  ;;  %v12206_v4 = vld [vmem:[#allocation2 + $0xcf0] sm:$0xff]  }
 0x3f9   :  { %11046 = vmatpush3.bf16.msra.mxu1 %v12170_v5 }
 0x3fa   :  { %11047 = vmatprep.subr.bf16.mxu1 %v12171_v6 }
 0x3fb   :  { %v10745_v12 = vpop.f32.mrb[20].mxu1  ;;  %v10767_v13 = vpop.f32.mrb[24].mxu0  ;;  %11068 = vmatpush3.bf16.msra.mxu0 %v12186_v7 }
 0x3fc   :  { %v10746_v17 = vpop.f32.mrb[21].mxu1  ;;  %v10768_v18 = vpop.f32.mrb[25].mxu0  ;;  %11069 = vmatprep.subr.bf16.mxu0 %v12187_v8  ;;  %v12207_v8 = vld [vmem:[#allocation2 + $0xd38] sm:$0xff]  }
 0x3fd   :  { %v10747_v20 = vadd.f32 %v10746_v17, %v10745_v12  ;;  %v12928_v22 = vadd.f32 %v10768_v18, %v10767_v13  ;;  %11048 = vmatpush3.bf16.msra.mxu1 %v12172_v9  ;;  %v10748_v23 = vpop.f32.mrb[22].mxu1  ;;  %v10770_v24 = vpop.f32.mrb[26].mxu0  ;;  %v12208_v18 = vld [vmem:[#allocation2 + $0xcf8] sm:$0xff]  }
 0x3fe   :  { %v10749_v26 = vpop.f32.mrb[23].mxu1  ;;  %v10771_v30 = vpop.f32.mrb[27].mxu0  ;;  %11049 = vmatprep.subr.bf16.mxu1 %v12173_v11 }
 0x3ff   :  { %v1978_v28 = vadd.f32 %v10747_v20, %v12917_v41  ;;  %v10750_v31 = vadd.f32 %v10749_v26, %v10748_v23  ;;  %v12931_v32 = vadd.f32 %v10771_v30, %v10770_v24  ;;  %11070 = vmatpush3.bf16.msra.mxu0 %v12188_v16  ;;  %v12210_v26 = vld [vmem:[#allocation2 + $0xd40] sm:$0xff]   ;;  %v12211_v30 = vld [vmem:[#allocation2 + $0xd88] sm:$0xff]  }
 0x400   :  { %11071 = vmatprep.subr.bf16.mxu0 %v12189_v19 }
 0x401   :  { %v4392_v38 = vadd.f32 %v4355_v21, %v1978_v28  ;;  %v1981_v39 = vadd.f32 %v10750_v31, %v12919_v49  ;;  %11050 = vmatpush3.bf16.msra.mxu1 %v12174_v25  ;;  %v12214_v28 = vld [vmem:[#allocation2 + $0xd50] sm:$0xff]   ;;  %v12215_v31 = vld [vmem:[#allocation2 + $0xd98] sm:$0xff]  }
 0x402   :  { %11051 = vmatprep.subr.bf16.mxu1 %v12175_v27  ;;  %v12213_v27 = vld [vmem:[#allocation2 + $0xd90] sm:$0xff]  }
 0x403   :  { %v4408_v45 = vmul.f32 0.01, %v4392_v38  ;;  %v4400_v46 = vadd.f32 %v4355_v21, %v1981_v39  ;;  %11072 = vmatpush3.bf16.msra.mxu0 %v12190_v33  ;;  %v12217_v33 = vld [vmem:[#allocation2 + $0xda0] sm:$0xff]  }
 0x404   :  { %11073 = vmatprep.subr.bf16.mxu0 %v12191_v34  ;;  %v12218_v34 = vld [vmem:[#allocation2 + $0xd60] sm:$0xff]  }
 0x405   :  { %v4416_v41 = vmul.f32 0.01, %v4400_v46  ;;  %11052 = vmatpush3.bf16.msra.mxu1 %v12176_v40  ;;  %v4424_v51 = vmax.f32 %v4392_v38, %v4408_v45  ;;  %v12219_v38 = vld [vmem:[#allocation2 + $0xda8] sm:$0xff]  }
 0x406   :  { %11081 = vmatprep.subr.bf16.mxu1 %v12193_v42 }
 0x407   :  { %v4432_v52 = vmax.f32 %v4400_v46, %v4416_v41  ;;  %11074 = vmatpush3.bf16.msra.mxu0 %v12192_v47  ;;  %v4363_v46 = vrot.slane %v12924_v10, %v12881_v43 }
 0x408   :  { %4342 = vmatmul.mubr.bf16.vlgmr.msra.gmra.mrb[48].mxu1 %v12888_v14  ;;  %11103 = vmatprep.subr.bf16.mxu0 %v12209_v53  ;;  %v12204_v14 = vld [vmem:[#allocation2 + $0xce8] sm:$0xff]   ;;  %v12221_v53 = vld [vmem:[#allocation2 + $0xdb0] sm:$0xff]  }
 0x409   :  { %v12935_v49 = vpack.c.bf16 %v4432_v52, %v4424_v51  ;;  %11082 = vmatpush3.bf16.msra.mxu1 %v12194_v48  ;;  %v12220_v48 = vld [vmem:[#allocation2 + $0xd68] sm:$0xff]  }
 0x40a   :  { %11083 = vmatprep.subr.bf16.mxu1 %v12195_v50 }
 0x40d   :  { %11084 = vmatpush3.bf16.msra.mxu1 %v12196_v54 }
 0x40e   :  { %11085 = vmatprep.subr.bf16.mxu1 %v12197_v55 }
 0x411   :  { %11086 = vmatpush3.bf16.msra.mxu1 %v12198_v56 }
 0x412   :  { %11087 = vmatprep.subr.bf16.mxu1 %v12199_v57 }
 0x415   :  { %11088 = vmatpush3.bf16.msra.mxu1 %v12200_v58 }
 0x416   :  { %11089 = vmatprep.subr.bf16.mxu1 %v12201_v59 }
 0x419   :  { %11090 = vmatpush3.bf16.msra.mxu1 %v12202_v60  ;;  %v12222_v60 = vld [vmem:[#allocation2 + $0xd70] sm:$0xff]  }
 0x41a   :  { %11091 = vmatprep.subr.bf16.mxu1 %v12203_v61  ;;  %v12223_v61 = vld [vmem:[#allocation2 + $0xdb8] sm:$0xff]  }
 0x41b   :  { %v10789_v63 = vpop.f32.mrb[24].mxu1 }
 0x41c   :  { %v10790_v0 = vpop.f32.mrb[25].mxu1  ;;  %v10811_v1 = vpop.f32.mrb[28].mxu0 }
 0x41d   :  { %v10791_v2 = vadd.f32 %v10790_v0, %v10789_v63  ;;  %v10792_v3 = vpop.f32.mrb[26].mxu1  ;;  %v10812_v15 = vpop.f32.mrb[29].mxu0  ;;  %11092 = vmatpush3.bf16.msra.mxu1 %v12204_v14  ;;  %v12224_v0 = vld [vmem:[#allocation2 + $0xd78] sm:$0xff]  }
 0x41e   :  { %v10813_v5 = vadd.f32 %v10812_v15, %v10811_v1  ;;  %v10793_v6 = vpop.f32.mrb[27].mxu1  ;;  %v10814_v7 = vpop.f32.mrb[30].mxu0  ;;  %11093 = vmatprep.subr.bf16.mxu1 %v12205_v62  ;;  %v12225_v1 = vld [vmem:[#allocation2 + $0xe80] sm:$0xff]  }
 0x41f   :  { %v2316_v9 = vadd.f32 %v10791_v2, %v12928_v22  ;;  %v10794_v11 = vadd.f32 %v10793_v6, %v10792_v3  ;;  %v10815_v12 = vpop.f32.mrb[31].mxu0  ;;  %v12212_v22 = vld [vmem:[#allocation2 + $0xd48] sm:$0xff]   ;;  %v12241_v15 = vld [vmem:[#allocation2 + $0xe00] sm:$0xff]  }
 0x420   :  { %v10816_v13 = vadd.f32 %v10815_v12, %v10814_v7 }
 0x421   :  { %v4393_v16 = vadd.f32 %v4359_v29, %v2316_v9  ;;  %v2319_v17 = vadd.f32 %v10794_v11, %v12931_v32  ;;  %11094 = vmatpush3.bf16.msra.mxu1 %v12206_v4  ;;  %v12216_v32 = vld [vmem:[#allocation2 + $0xd58] sm:$0xff]  }
 0x422   :  { %11095 = vmatprep.subr.bf16.mxu1 %v12207_v8  ;;  %v4367_v8 = vrot.slane %v12924_v10, %v12884_v44 }
 0x423   :  { %v4409_v19 = vmul.f32 0.01, %v4393_v16  ;;  %v4401_v20 = vadd.f32 %v4359_v29, %v2319_v17 }
 0x425   :  { %v4417_v21 = vmul.f32 0.01, %v4401_v20  ;;  %11096 = vmatpush3.bf16.msra.mxu1 %v12208_v18  ;;  %v4425_v23 = vmax.f32 %v4393_v16, %v4409_v19 }
 0x426   :  { %11125 = vmatprep.subr.bf16.mxu1 %v12241_v15 }
 0x427   :  { %v4433_v24 = vmax.f32 %v4401_v20, %v4417_v21 }
 0x429   :  { %v12941_v25 = vpack.c.bf16 %v4433_v24, %v4425_v23 }
 0x42b   :  { %4992 = vmatprep.mubr.bf16.mxu0 %v12941_v25 }
 0x42c   :  { %4993 = vmatmul.mubr.bf16.vlgmr.msra.gmra.mrb[52].mxu0 %v12935_v49 }
 0x42d   :  { %11104 = vmatpush3.bf16.msra.mxu0 %v12210_v26 }
 0x42e   :  { %11105 = vmatprep.subr.bf16.mxu0 %v12211_v30 }
 0x431   :  { %11106 = vmatpush3.bf16.msra.mxu0 %v12212_v22 }
 0x432   :  { %11107 = vmatprep.subr.bf16.mxu0 %v12213_v27 }
 0x435   :  { %11108 = vmatpush3.bf16.msra.mxu0 %v12214_v28 }
 0x436   :  { %11109 = vmatprep.subr.bf16.mxu0 %v12215_v31  ;;  %v12243_v31 = vld [vmem:[#allocation2 + $0xdc0] sm:$0xff]  }
 0x439   :  { %11110 = vmatpush3.bf16.msra.mxu0 %v12216_v32  ;;  %v12245_v32 = vld [vmem:[#allocation2 + $0xe08] sm:$0xff]  }
 0x43a   :  { %11111 = vmatprep.subr.bf16.mxu0 %v12217_v33  ;;  %v12247_v33 = vld [vmem:[#allocation2 + $0xdc8] sm:$0xff]  }
 0x43b   :  { %v10833_v39 = vpop.f32.mrb[28].mxu1 }
 0x43c   :  { %v10834_v40 = vpop.f32.mrb[29].mxu1  ;;  %v10855_v42 = vpop.f32.mrb[32].mxu0 }
 0x43d   :  { %v10835_v45 = vadd.f32 %v10834_v40, %v10833_v39  ;;  %v10836_v47 = vpop.f32.mrb[30].mxu1  ;;  %v10856_v41 = vpop.f32.mrb[33].mxu0  ;;  %11112 = vmatpush3.bf16.msra.mxu0 %v12218_v34  ;;  %v12249_v34 = vld [vmem:[#allocation2 + $0xe10] sm:$0xff]   ;;  %v12253_v39 = vld [vmem:[#allocation2 + $0xe18] sm:$0xff]  }
 0x43e   :  { %v10857_v50 = vadd.f32 %v10856_v41, %v10855_v42  ;;  %v10837_v51 = vpop.f32.mrb[31].mxu1  ;;  %v10858_v52 = vpop.f32.mrb[34].mxu0  ;;  %11113 = vmatprep.subr.bf16.mxu0 %v12219_v38  ;;  %v12251_v38 = vld [vmem:[#allocation2 + $0xdd0] sm:$0xff]   ;;  %v12255_v40 = vld [vmem:[#allocation2 + $0xdd8] sm:$0xff]   ;;  %v12257_v42 = vld [vmem:[#allocation2 + $0xe20] sm:$0xff]  }
 0x43f   :  { %v2654_v54 = vadd.f32 %v10835_v45, %v10813_v5  ;;  %v10838_v55 = vadd.f32 %v10837_v51, %v10836_v47  ;;  %v10859_v56 = vpop.f32.mrb[35].mxu0  ;;  %v4370_v45 = vsub.s32 4, %v12855_v35  ;;  %v12261_v47 = vld [vmem:[#allocation2 + $0xe28] sm:$0xff]  }
 0x440   :  { %v10860_v57 = vadd.f32 %v10859_v56, %v10858_v52 }
 0x441   :  { %v4394_v58 = vadd.f32 %v4363_v46, %v2654_v54  ;;  %v2657_v59 = vadd.f32 %v10838_v55, %v10816_v13  ;;  %11114 = vmatpush3.bf16.msra.mxu0 %v12220_v48  ;;  %v4371_v52 = vrot.slane %v12924_v10, %v4370_v45  ;;  %v12263_v55 = vld [vmem:[#allocation2 + $0xde8] sm:$0xff]  }
 0x442   :  { %11115 = vmatprep.subr.bf16.mxu0 %v12221_v53 }
 0x443   :  { %v4410_v14 = vmul.f32 0.01, %v4394_v58  ;;  %v4402_v62 = vadd.f32 %v4363_v46, %v2657_v59  ;;  %v12259_v46 = vld [vmem:[#allocation2 + $0xde0] sm:$0xff]   ;;  %v12265_v59 = vld [vmem:[#allocation2 + $0xe30] sm:$0xff]  }
 0x445   :  { %v4418_v63 = vmul.f32 0.01, %v4402_v62  ;;  %11116 = vmatpush3.bf16.msra.mxu0 %v12222_v60  ;;  %v4426_v2 = vmax.f32 %v4394_v58, %v4410_v14 }
 0x446   :  { %11117 = vmatprep.subr.bf16.mxu0 %v12223_v61 }
 0x447   :  { %v4434_v29 = vmax.f32 %v4402_v62, %v4418_v63 }
 0x449   :  { %v12947_v3 = vpack.c.bf16 %v4434_v29, %v4426_v2  ;;  %11118 = vmatpush3.bf16.msra.mxu0 %v12224_v0  ;;  %v12269_v2 = vld [vmem:[#allocation2 + $0xe38] sm:$0xff]  }
 0x44a   :  { %11147 = vmatprep.subr.bf16.mxu0 %v12225_v1  ;;  %v12267_v1 = vld [vmem:[#allocation2 + $0xdf0] sm:$0xff]  }
 0x45b   :  { %v10877_v4 = vpop.f32.mrb[32].mxu1 }
 0x45c   :  { %v10878_v5 = vpop.f32.mrb[33].mxu1  ;;  %v10899_v6 = vpop.f32.mrb[36].mxu0 }
 0x45d   :  { %v10879_v7 = vadd.f32 %v10878_v5, %v10877_v4  ;;  %v10880_v9 = vpop.f32.mrb[34].mxu1  ;;  %v10900_v11 = vpop.f32.mrb[37].mxu0  ;;  %v12271_v5 = vld [vmem:[#allocation2 + $0xdf8] sm:$0xff]  }
 0x45e   :  { %v10901_v12 = vadd.f32 %v10900_v11, %v10899_v6  ;;  %v10881_v13 = vpop.f32.mrb[35].mxu1  ;;  %v10902_v16 = vpop.f32.mrb[38].mxu0  ;;  %v12273_v6 = vld [vmem:[#allocation2 + $0xf00] sm:$0xff]   ;;  %v4374_v11 = vsub.s32 5, %v12855_v35 }
 0x45f   :  { %v2992_v17 = vadd.f32 %v10879_v7, %v10857_v50  ;;  %v10882_v18 = vadd.f32 %v10881_v13, %v10880_v9  ;;  %v10903_v19 = vpop.f32.mrb[39].mxu0 }
 0x460   :  { %v10904_v20 = vadd.f32 %v10903_v19, %v10902_v16 }
 0x461   :  { %v4395_v21 = vadd.f32 %v4367_v8, %v2992_v17  ;;  %v2995_v23 = vadd.f32 %v10882_v18, %v10860_v57  ;;  %v4375_v18 = vrot.slane %v12924_v10, %v4374_v11 }
 0x463   :  { %v4411_v24 = vmul.f32 0.01, %v4395_v21  ;;  %v4403_v26 = vadd.f32 %v4367_v8, %v2995_v23 }
 0x465   :  { %v4419_v30 = vmul.f32 0.01, %v4403_v26  ;;  %v4427_v22 = vmax.f32 %v4395_v21, %v4411_v24 }
 0x467   :  { %v4435_v27 = vmax.f32 %v4403_v26, %v4419_v30 }
 0x469   :  { %v12951_v28 = vpack.c.bf16 %v4435_v27, %v4427_v22 }
 0x46b   :  { %5033 = vmatprep.mubr.bf16.mxu1 %v12951_v28 }
 0x46c   :  { %5034 = vmatmul.mubr.bf16.vlgmr.msra.gmra.mrb[52].mxu1 %v12947_v3 }
 0x46d   :  { %11126 = vmatpush3.bf16.msra.mxu1 %v12243_v31 }
 0x46e   :  { %11127 = vmatprep.subr.bf16.mxu1 %v12245_v32 }
 0x471   :  { %11128 = vmatpush3.bf16.msra.mxu1 %v12247_v33 }
 0x472   :  { %11129 = vmatprep.subr.bf16.mxu1 %v12249_v34 }
 0x475   :  { %11130 = vmatpush3.bf16.msra.mxu1 %v12251_v38 }
 0x476   :  { %11131 = vmatprep.subr.bf16.mxu1 %v12253_v39 }
 0x479   :  { %11132 = vmatpush3.bf16.msra.mxu1 %v12255_v40 }
 0x47a   :  { %11133 = vmatprep.subr.bf16.mxu1 %v12257_v42 }
 0x47b   :  { %v10921_v41 = vpop.f32.mrb[36].mxu1 }
 0x47c   :  { %v10922_v48 = vpop.f32.mrb[37].mxu1  ;;  %v10943_v50 = vpop.f32.mrb[40].mxu0 }
 0x47d   :  { %v10923_v51 = vadd.f32 %v10922_v48, %v10921_v41  ;;  %v10924_v53 = vpop.f32.mrb[38].mxu1  ;;  %v10944_v54 = vpop.f32.mrb[41].mxu0  ;;  %11134 = vmatpush3.bf16.msra.mxu1 %v12259_v46  ;;  %v12226_v46 = vld [vmem:[#allocation2 + $0xe40] sm:$0xff]   ;;  %v12228_v41 = vld [vmem:[#allocation2 + $0xe48] sm:$0xff]   ;;  %v12229_v48 = vld [vmem:[#allocation2 + $0xe90] sm:$0xff]  }
 0x47e   :  { %v10945_v56 = vadd.f32 %v10944_v54, %v10943_v50  ;;  %v10925_v57 = vpop.f32.mrb[39].mxu1  ;;  %v10946_v58 = vpop.f32.mrb[42].mxu0  ;;  %11135 = vmatprep.subr.bf16.mxu1 %v12261_v47  ;;  %v12227_v47 = vld [vmem:[#allocation2 + $0xe88] sm:$0xff]   ;;  %v12230_v50 = vld [vmem:[#allocation2 + $0xe50] sm:$0xff]   ;;  %v4378_v54 = vsub.s32 6, %v12855_v35 }
 0x47f   :  { %v3330_v60 = vadd.f32 %v10923_v51, %v10901_v12  ;;  %v10926_v61 = vadd.f32 %v10925_v57, %v10924_v53  ;;  %v10947_v14 = vpop.f32.mrb[43].mxu0  ;;  %v12231_v51 = vld [vmem:[#allocation2 + $0xe98] sm:$0xff]   ;;  %v12233_v53 = vld [vmem:[#allocation2 + $0xea0] sm:$0xff]  }
 0x480   :  { %v10948_v62 = vadd.f32 %v10947_v14, %v10946_v58 }
 0x481   :  { %v4396_v63 = vadd.f32 %v4371_v52, %v3330_v60  ;;  %v3333_v0 = vadd.f32 %v10926_v61, %v10904_v20  ;;  %11136 = vmatpush3.bf16.msra.mxu1 %v12263_v55  ;;  %v12234_v55 = vld [vmem:[#allocation2 + $0xe60] sm:$0xff]   ;;  %v4379_v61 = vrot.slane %v12924_v10, %v4378_v54 }
 0x482   :  { %11137 = vmatprep.subr.bf16.mxu1 %v12265_v59 }
 0x483   :  { %v4412_v29 = vmul.f32 0.01, %v4396_v63  ;;  %v4404_v15 = vadd.f32 %v4371_v52, %v3333_v0  ;;  %v12232_v52 = vld [vmem:[#allocation2 + $0xe58] sm:$0xff]  }
 0x485   :  { %v4420_v4 = vmul.f32 0.01, %v4404_v15  ;;  %11138 = vmatpush3.bf16.msra.mxu1 %v12267_v1  ;;  %v4428_v7 = vmax.f32 %v4396_v63, %v4412_v29  ;;  %v12236_v63 = vld [vmem:[#allocation2 + $0xe68] sm:$0xff]   ;;  %v12237_v29 = vld [vmem:[#allocation2 + $0xeb0] sm:$0xff]  }
 0x486   :  { %11139 = vmatprep.subr.bf16.mxu1 %v12269_v2 }
 0x487   :  { %v4436_v8 = vmax.f32 %v4404_v15, %v4420_v4 }
 0x489   :  { %v12959_v9 = vpack.c.bf16 %v4436_v8, %v4428_v7  ;;  %11140 = vmatpush3.bf16.msra.mxu1 %v12271_v5 }
 0x48a   :  { %11169 = vmatprep.subr.bf16.mxu1 %v12273_v6 }
 0x49b   :  { %v10965_v12 = vpop.f32.mrb[40].mxu1 }
 0x49c   :  { %v10966_v13 = vpop.f32.mrb[41].mxu1  ;;  %v10987_v16 = vpop.f32.mrb[44].mxu0 }
 0x49d   :  { %v10967_v17 = vadd.f32 %v10966_v13, %v10965_v12  ;;  %v10968_v19 = vpop.f32.mrb[42].mxu1  ;;  %v10988_v20 = vpop.f32.mrb[45].mxu0  ;;  %v12238_v12 = vld [vmem:[#allocation2 + $0xe70] sm:$0xff]   ;;  %v12239_v13 = vld [vmem:[#allocation2 + $0xeb8] sm:$0xff]  }
 0x49e   :  { %v10989_v21 = vadd.f32 %v10988_v20, %v10987_v16  ;;  %v10969_v23 = vpop.f32.mrb[43].mxu1  ;;  %v10990_v24 = vpop.f32.mrb[46].mxu0  ;;  %v12242_v20 = vld [vmem:[#allocation2 + $0xf80] sm:$0xff]  }
 0x49f   :  { %v3668_v26 = vadd.f32 %v10967_v17, %v10945_v56  ;;  %v10970_v30 = vadd.f32 %v10969_v23, %v10968_v19  ;;  %v10991_v22 = vpop.f32.mrb[47].mxu0  ;;  %v12235_v56 = vld [vmem:[#allocation2 + $0xea8] sm:$0xff]   ;;  %v12240_v19 = vld [vmem:[#allocation2 + $0xe78] sm:$0xff]  }
 0x4a0   :  { %v10992_v27 = vadd.f32 %v10991_v22, %v10990_v24  ;;  %v12248_v22 = vld [vmem:[#allocation2 + $0xf48] sm:$0xff]  }
 0x4a1   :  { %v4397_v31 = vadd.f32 %v4375_v18, %v3668_v26  ;;  %v3671_v32 = vadd.f32 %v10970_v30, %v10948_v62  ;;  %v12246_v30 = vld [vmem:[#allocation2 + $0xf88] sm:$0xff]  }
 0x4a3   :  { %v4413_v33 = vmul.f32 0.01, %v4397_v31  ;;  %v4405_v34 = vadd.f32 %v4375_v18, %v3671_v32  ;;  %v12254_v32 = vld [vmem:[#allocation2 + $0xf98] sm:$0xff]  }
 0x4a5   :  { %v4421_v38 = vmul.f32 0.01, %v4405_v34  ;;  %v4429_v39 = vmax.f32 %v4397_v31, %v4413_v33  ;;  %v12252_v31 = vld [vmem:[#allocation2 + $0xf50] sm:$0xff]   ;;  %v12256_v33 = vld [vmem:[#allocation2 + $0xf58] sm:$0xff]  }
 0x4a7   :  { %v4437_v40 = vmax.f32 %v4405_v34, %v4421_v38  ;;  %v12258_v34 = vld [vmem:[#allocation2 + $0xfa0] sm:$0xff]   ;;  %v4382_v38 = vsub.s32 7, %v12855_v35 }
 0x4a9   :  { %v12965_v42 = vpack.c.bf16 %v4437_v40, %v4429_v39  ;;  %v12260_v39 = vld [vmem:[#allocation2 + $0xf60] sm:$0xff]   ;;  %v12262_v40 = vld [vmem:[#allocation2 + $0xfa8] sm:$0xff]  }
 0x4ab   :  { %5074 = vmatprep.mubr.bf16.mxu0 %v12965_v42 }
 0x4ac   :  { %5075 = vmatmul.mubr.bf16.vlgmr.msra.gmra.mrb[56].mxu0 %v12959_v9 }
 0x4ad   :  { %11148 = vmatpush3.bf16.msra.mxu0 %v12226_v46  ;;  %5668 = vmatprep.mubr.bf16.mxu0 %v12941_v25 }
 0x4ae   :  { %11149 = vmatprep.subr.bf16.mxu0 %v12227_v47 }
 0x4b1   :  { %11150 = vmatpush3.bf16.msra.mxu0 %v12228_v41 }
 0x4b2   :  { %11151 = vmatprep.subr.bf16.mxu0 %v12229_v48  ;;  %v4383_v48 = vrot.slane %v12924_v10, %v4382_v38  ;;  %v12274_v10 = vld [vmem:[#allocation2 + $0x1080] sm:$0xff]  }
 0x4b5   :  { %11152 = vmatpush3.bf16.msra.mxu0 %v12230_v50 }
 0x4b6   :  { %11153 = vmatprep.subr.bf16.mxu0 %v12231_v51  ;;  %v12264_v51 = vld [vmem:[#allocation2 + $0xf68] sm:$0xff]  }
 0x4b9   :  { %11154 = vmatpush3.bf16.msra.mxu0 %v12232_v52 }
 0x4ba   :  { %11155 = vmatprep.subr.bf16.mxu0 %v12233_v53  ;;  %v12266_v53 = vld [vmem:[#allocation2 + $0xfb0] sm:$0xff]  }
 0x4bb   :  { %v11009_v57 = vpop.f32.mrb[44].mxu1 }
 0x4bc   :  { %v11010_v58 = vpop.f32.mrb[45].mxu1  ;;  %v11031_v59 = vpop.f32.mrb[48].mxu0 }
 0x4bd   :  { %v11011_v60 = vadd.f32 %v11010_v58, %v11009_v57  ;;  %11156 = vmatpush3.bf16.msra.mxu0 %v12234_v55  ;;  %v11012_v14 = vpop.f32.mrb[46].mxu1  ;;  %v11032_v62 = vpop.f32.mrb[49].mxu0 }
 0x4be   :  { %v11033_v0 = vadd.f32 %v11032_v62, %v11031_v59  ;;  %v11013_v1 = vpop.f32.mrb[47].mxu1  ;;  %v11034_v2 = vpop.f32.mrb[50].mxu0  ;;  %11157 = vmatprep.subr.bf16.mxu0 %v12235_v56  ;;  %v12268_v59 = vld [vmem:[#allocation2 + $0xf70] sm:$0xff]  }
 0x4bf   :  { %v4006_v15 = vadd.f32 %v11011_v60, %v10989_v21  ;;  %v11014_v4 = vadd.f32 %v11013_v1, %v11012_v14  ;;  %v11035_v5 = vpop.f32.mrb[51].mxu0  ;;  %v12244_v21 = vld [vmem:[#allocation2 + $0xf40] sm:$0xff]   ;;  %v12270_v60 = vld [vmem:[#allocation2 + $0xfb8] sm:$0xff]  }
 0x4c0   :  { %v11036_v6 = vadd.f32 %v11035_v5, %v11034_v2  ;;  %v12278_v5 = vld [vmem:[#allocation2 + $0x1088] sm:$0xff]  }
 0x4c1   :  { %v4398_v7 = vadd.f32 %v4379_v61, %v4006_v15  ;;  %v4009_v8 = vadd.f32 %v11014_v4, %v10992_v27  ;;  %11158 = vmatpush3.bf16.msra.mxu0 %v12236_v63  ;;  %v12250_v27 = vld [vmem:[#allocation2 + $0xf90] sm:$0xff]   ;;  %v12272_v63 = vld [vmem:[#allocation2 + $0xf78] sm:$0xff]   ;;  %v12276_v15 = vld [vmem:[#allocation2 + $0x1040] sm:$0xff]  }
 0x4c2   :  { %11159 = vmatprep.subr.bf16.mxu0 %v12237_v29  ;;  %v12277_v4 = vld [vmem:[#allocation2 + $0xf08] sm:$0xff]  }
 0x4c3   :  { %v4414_v16 = vmul.f32 0.01, %v4398_v7  ;;  %v4406_v17 = vadd.f32 %v4379_v61, %v4009_v8  ;;  %v12281_v8 = vld [vmem:[#allocation2 + $0xf10] sm:$0xff]  }
 0x4c5   :  { %v4422_v18 = vmul.f32 0.01, %v4406_v17  ;;  %11160 = vmatpush3.bf16.msra.mxu0 %v12238_v12  ;;  %v4430_v23 = vmax.f32 %v4398_v7, %v4414_v16  ;;  %v12280_v7 = vld [vmem:[#allocation2 + $0x1048] sm:$0xff]   ;;  %v12282_v12 = vld [vmem:[#allocation2 + $0x1090] sm:$0xff]  }
 0x4c6   :  { %11161 = vmatprep.subr.bf16.mxu0 %v12239_v13  ;;  %v12283_v13 = vld [vmem:[#allocation2 + $0xed0] sm:$0xff]  }
 0x4c7   :  { %v4438_v24 = vmax.f32 %v4406_v17, %v4422_v18  ;;  %v12284_v16 = vld [vmem:[#allocation2 + $0x1050] sm:$0xff]   ;;  %v12285_v17 = vld [vmem:[#allocation2 + $0xf18] sm:$0xff]  }
 0x4c8   :  { %v12286_v18 = vld [vmem:[#allocation2 + $0x1098] sm:$0xff]  }
 0x4c9   :  { %11162 = vmatpush3.bf16.msra.mxu0 %v12240_v19  ;;  %v12974_v26 = vpack.c.bf16 %v4438_v24, %v4430_v23  ;;  %v12287_v19 = vld [vmem:[#allocation2 + $0xed8] sm:$0xff]   ;;  %v12289_v23 = vld [vmem:[#allocation2 + $0xf20] sm:$0xff]  }
 0x4ca   :  { %11191 = vmatprep.subr.bf16.mxu0 %v12242_v20  ;;  %v12288_v20 = vld [vmem:[#allocation2 + $0x1058] sm:$0xff]   ;;  %v12290_v24 = vld [vmem:[#allocation2 + $0x10a0] sm:$0xff]  }
 0x4cc   :  { %5669 = vmatmul.mubr.bf16.vlgmr.msra.gmra.mrb[60].mxu0 %v12935_v49 }
 0x4cd   :  { %11192 = vmatpush3.bf16.msra.mxu0 %v12244_v21  ;;  %5750 = vmatprep.mubr.bf16.mxu0 %v12965_v42  ;;  %v12291_v21 = vld [vmem:[#allocation2 + $0xee0] sm:$0xff]  }
 0x4ce   :  { %11193 = vmatprep.subr.bf16.mxu0 %v12246_v30  ;;  %v12292_v30 = vld [vmem:[#allocation2 + $0x1060] sm:$0xff]  }
 0x4d1   :  { %11194 = vmatpush3.bf16.msra.mxu0 %v12248_v22  ;;  %v12293_v22 = vld [vmem:[#allocation2 + $0xf28] sm:$0xff]  }
 0x4d2   :  { %11195 = vmatprep.subr.bf16.mxu0 %v12250_v27  ;;  %v12294_v27 = vld [vmem:[#allocation2 + $0x10a8] sm:$0xff]  }
 0x4d5   :  { %11196 = vmatpush3.bf16.msra.mxu0 %v12252_v31  ;;  %v12295_v31 = vld [vmem:[#allocation2 + $0xee8] sm:$0xff]  }
 0x4d6   :  { %11197 = vmatprep.subr.bf16.mxu0 %v12254_v32  ;;  %v12296_v32 = vld [vmem:[#allocation2 + $0x1068] sm:$0xff]  }
 0x4d9   :  { %11198 = vmatpush3.bf16.msra.mxu0 %v12256_v33  ;;  %v12297_v33 = vld [vmem:[#allocation2 + $0xf30] sm:$0xff]  }
 0x4da   :  { %11199 = vmatprep.subr.bf16.mxu0 %v12258_v34  ;;  %v12298_v34 = vld [vmem:[#allocation2 + $0x10b0] sm:$0xff]  }
 0x4db   :  { %v11053_v46 = vpop.f32.mrb[48].mxu1 }
 0x4dc   :  { %v11054_v47 = vpop.f32.mrb[49].mxu1 }
 0x4dd   :  { %v11055_v41 = vadd.f32 %v11054_v47, %v11053_v46  ;;  %11200 = vmatpush3.bf16.msra.mxu0 %v12260_v39  ;;  %v11056_v50 = vpop.f32.mrb[50].mxu1  ;;  %v12299_v47 = vld [vmem:[#allocation2 + $0xef0] sm:$0xff]  }
 0x4de   :  { %v11057_v52 = vpop.f32.mrb[51].mxu1  ;;  %11201 = vmatprep.subr.bf16.mxu0 %v12262_v40 }
 0x4df   :  { %v4344_v55 = vadd.f32 %v11055_v41, %v11033_v0  ;;  %v11058_v56 = vadd.f32 %v11057_v52, %v11056_v50  ;;  %v12275_v0 = vld [vmem:[#allocation2 + $0xec0] sm:$0xff]   ;;  %v12300_v41 = vld [vmem:[#allocation2 + $0x1070] sm:$0xff]   ;;  %v12301_v50 = vld [vmem:[#allocation2 + $0xf38] sm:$0xff]  }
 0x4e1   :  { %v4399_v57 = vadd.f32 %v4383_v48, %v4344_v55  ;;  %v4347_v58 = vadd.f32 %v11058_v56, %v11036_v6  ;;  %11202 = vmatpush3.bf16.msra.mxu0 %v12264_v51  ;;  %v12279_v6 = vld [vmem:[#allocation2 + $0xec8] sm:$0xff]   ;;  %v12302_v51 = vld [vmem:[#allocation2 + $0x10b8] sm:$0xff]   ;;  %v12305_v56 = vld [vmem:[#allocation2 + $0x1000] sm:$0xff]  }
 0x4e2   :  { %11203 = vmatprep.subr.bf16.mxu0 %v12266_v53  ;;  %v12303_v53 = vld [vmem:[#allocation2 + $0xef8] sm:$0xff]  }
 0x4e3   :  { %v4415_v61 = vmul.f32 0.01, %v4399_v57  ;;  %v4407_v14 = vadd.f32 %v4383_v48, %v4347_v58  ;;  %v12304_v55 = vld [vmem:[#allocation2 + $0x1078] sm:$0xff]   ;;  %v12307_v58 = vld [vmem:[#allocation2 + $0xfc0] sm:$0xff]  }
 0x4e5   :  { %v4423_v62 = vmul.f32 0.01, %v4407_v14  ;;  %11204 = vmatpush3.bf16.msra.mxu0 %v12268_v59  ;;  %v4431_v1 = vmax.f32 %v4399_v57, %v4415_v61  ;;  %v12306_v57 = vld [vmem:[#allocation2 + $0x1180] sm:$0xff]   ;;  %v12310_v61 = vld [vmem:[#allocation2 + $0x1188] sm:$0xff]  }
 0x4e6   :  { %11205 = vmatprep.subr.bf16.mxu0 %v12270_v60  ;;  %v12308_v59 = vld [vmem:[#allocation2 + $0x1140] sm:$0xff]   ;;  %v12309_v60 = vld [vmem:[#allocation2 + $0x1008] sm:$0xff]  }
 0x4e7   :  { %v4439_v2 = vmax.f32 %v4407_v14, %v4423_v62  ;;  %v12311_v14 = vld [vmem:[#allocation2 + $0xfc8] sm:$0xff]  }
 0x4e8   :  { %v12312_v62 = vld [vmem:[#allocation2 + $0x1148] sm:$0xff]  }
 0x4e9   :  { %11206 = vmatpush3.bf16.msra.mxu0 %v12272_v63  ;;  %v12980_v29 = vpack.c.bf16 %v4439_v2, %v4431_v1  ;;  %v12313_v63 = vld [vmem:[#allocation2 + $0x1010] sm:$0xff]  }
 0x4ea   :  { %11235 = vmatprep.subr.bf16.mxu0 %v12274_v10  ;;  %v12314_v10 = vld [vmem:[#allocation2 + $0x1190] sm:$0xff]  }
 0x4eb   :  { %5115 = vmatprep.mubr.bf16.mxu1 %v12980_v29  ;;  %v12315_v1 = vld [vmem:[#allocation2 + $0xfd0] sm:$0xff]  }
 0x4ec   :  { %5751 = vmatmul.mubr.bf16.vlgmr.msra.gmra.mrb[64].mxu0 %v12959_v9  ;;  %5116 = vmatmul.mubr.bf16.vlgmr.msra.gmra.mrb[56].mxu1 %v12974_v26  ;;  %v12316_v2 = vld [vmem:[#allocation2 + $0x1150] sm:$0xff]  }
 0x4ed   :  { %11170 = vmatpush3.bf16.msra.mxu1 %v12275_v0  ;;  %11236 = vmatpush3.bf16.msra.mxu0 %v12276_v15  ;;  %v12317_v0 = vld [vmem:[#allocation2 + $0x1018] sm:$0xff]  }
 0x4ee   :  { %6344 = vmatprep.mubr.bf16.mxu0 %v12941_v25  ;;  %5709 = vmatprep.mubr.bf16.mxu1 %v12951_v28  ;;  %v12318_v15 = vld [vmem:[#allocation2 + $0x1198] sm:$0xff]  }
 0x4ef   :  { %11171 = vmatprep.subr.bf16.mxu1 %v12277_v4  ;;  %11237 = vmatprep.subr.bf16.mxu0 %v12278_v5  ;;  %v12319_v4 = vld [vmem:[#allocation2 + $0xfd8] sm:$0xff]  }
 0x4f0   :  { %v12320_v5 = vld [vmem:[#allocation2 + $0x1158] sm:$0xff]  }
 0x4f1   :  { %11172 = vmatpush3.bf16.msra.mxu1 %v12279_v6  ;;  %11238 = vmatpush3.bf16.msra.mxu0 %v12280_v7  ;;  %v12321_v6 = vld [vmem:[#allocation2 + $0x1020] sm:$0xff]  }
 0x4f2   :  { %11173 = vmatprep.subr.bf16.mxu1 %v12281_v8  ;;  %11239 = vmatprep.subr.bf16.mxu0 %v12282_v12  ;;  %v12322_v7 = vld [vmem:[#allocation2 + $0x11a0] sm:$0xff]  }
 0x4f3   :  { %v12323_v8 = vld [vmem:[#allocation2 + $0xfe0] sm:$0xff]  }
 0x4f4   :  { %v12324_v12 = vld [vmem:[#allocation2 + $0x1160] sm:$0xff]  }
 0x4f5   :  { %11174 = vmatpush3.bf16.msra.mxu1 %v12283_v13  ;;  %11240 = vmatpush3.bf16.msra.mxu0 %v12284_v16  ;;  %v12325_v13 = vld [vmem:[#allocation2 + $0x1028] sm:$0xff]  }
 0x4f6   :  { %11175 = vmatprep.subr.bf16.mxu1 %v12285_v17  ;;  %11241 = vmatprep.subr.bf16.mxu0 %v12286_v18  ;;  %v12326_v16 = vld [vmem:[#allocation2 + $0x11a8] sm:$0xff]  }
 0x4f7   :  { %v12327_v17 = vld [vmem:[#allocation2 + $0xfe8] sm:$0xff]  }
 0x4f8   :  { %v12328_v18 = vld [vmem:[#allocation2 + $0x1168] sm:$0xff]  }
 0x4f9   :  { %11176 = vmatpush3.bf16.msra.mxu1 %v12287_v19  ;;  %11242 = vmatpush3.bf16.msra.mxu0 %v12288_v20  ;;  %v12329_v19 = vld [vmem:[#allocation2 + $0x1030] sm:$0xff]  }
 0x4fa   :  { %11177 = vmatprep.subr.bf16.mxu1 %v12289_v23  ;;  %11243 = vmatprep.subr.bf16.mxu0 %v12290_v24  ;;  %v12330_v20 = vld [vmem:[#allocation2 + $0x11b0] sm:$0xff]  }
 0x4fb   :  { %v12331_v23 = vld [vmem:[#allocation2 + $0xff0] sm:$0xff]  }
 0x4fc   :  { %v12332_v24 = vld [vmem:[#allocation2 + $0x1170] sm:$0xff]  }
 0x4fd   :  { %11178 = vmatpush3.bf16.msra.mxu1 %v12291_v21  ;;  %11244 = vmatpush3.bf16.msra.mxu0 %v12292_v30  ;;  %v12333_v21 = vld [vmem:[#allocation2 + $0x1038] sm:$0xff]  }
 0x4fe   :  { %11179 = vmatprep.subr.bf16.mxu1 %v12293_v22  ;;  %11245 = vmatprep.subr.bf16.mxu0 %v12294_v27  ;;  %v12334_v30 = vld [vmem:[#allocation2 + $0x11b8] sm:$0xff]  }
 0x4ff   :  { %v11075_v38 = vpop.f32.mrb[52].mxu0  ;;  %v12335_v22 = vld [vmem:[#allocation2 + $0xff8] sm:$0xff]  }
 0x500   :  { %v11076_v39 = vpop.f32.mrb[53].mxu0  ;;  %v12336_v27 = vld [vmem:[#allocation2 + $0x1178] sm:$0xff]  }
 0x501   :  { %v12987_v40 = vadd.f32 %v11076_v39, %v11075_v38  ;;  %11180 = vmatpush3.bf16.msra.mxu1 %v12295_v31  ;;  %11246 = vmatpush3.bf16.msra.mxu0 %v12296_v32  ;;  %v11078_v46 = vpop.f32.mrb[54].mxu0  ;;  %v12337_v31 = vld [vmem:[#allocation2 + $0x1100] sm:$0xff]   ;;  %v12341_v38 = vld [vmem:[#allocation2 + $0x1108] sm:$0xff]  }
 0x502   :  { %v11079_v48 = vpop.f32.mrb[55].mxu0  ;;  %11181 = vmatprep.subr.bf16.mxu1 %v12297_v33  ;;  %11247 = vmatprep.subr.bf16.mxu0 %v12298_v34  ;;  %v12338_v32 = vld [vmem:[#allocation2 + $0x1280] sm:$0xff]   ;;  %v12342_v39 = vld [vmem:[#allocation2 + $0x1288] sm:$0xff]  }
 0x503   :  { %v12989_v52 = vadd.f32 %v11079_v48, %v11078_v46  ;;  %v12339_v33 = vld [vmem:[#allocation2 + $0x10c0] sm:$0xff]   ;;  %v12343_v46 = vld [vmem:[#allocation2 + $0x10c8] sm:$0xff]   ;;  %v12346_v48 = vld [vmem:[#allocation2 + $0x1290] sm:$0xff]  }
 0x504   :  { %v12340_v34 = vld [vmem:[#allocation2 + $0x1240] sm:$0xff]  }
 0x505   :  { %11182 = vmatpush3.bf16.msra.mxu1 %v12299_v47  ;;  %11248 = vmatpush3.bf16.msra.mxu0 %v12300_v41  ;;  %v12344_v47 = vld [vmem:[#allocation2 + $0x1248] sm:$0xff]   ;;  %v12345_v41 = vld [vmem:[#allocation2 + $0x1110] sm:$0xff]  }
 0x506   :  { %11183 = vmatprep.subr.bf16.mxu1 %v12301_v50  ;;  %11249 = vmatprep.subr.bf16.mxu0 %v12302_v51  ;;  %v12347_v50 = vld [vmem:[#allocation2 + $0x10d0] sm:$0xff]  }
 0x507   :  { %v12348_v51 = vld [vmem:[#allocation2 + $0x1250] sm:$0xff]  }
 0x509   :  { %11184 = vmatpush3.bf16.msra.mxu1 %v12303_v53  ;;  %11250 = vmatpush3.bf16.msra.mxu0 %v12304_v55  ;;  %v12349_v53 = vld [vmem:[#allocation2 + $0x1118] sm:$0xff]  }
 0x50a   :  { %11213 = vmatprep.subr.bf16.mxu1 %v12305_v56  ;;  %11279 = vmatprep.subr.bf16.mxu0 %v12306_v57  ;;  %v12350_v55 = vld [vmem:[#allocation2 + $0x1298] sm:$0xff]  }
 0x50b   :  { %v12351_v56 = vld [vmem:[#allocation2 + $0x10d8] sm:$0xff]  }
 0x50c   :  { %5710 = vmatmul.mubr.bf16.vlgmr.msra.gmra.mrb[60].mxu1 %v12947_v3  ;;  %6345 = vmatmul.mubr.bf16.vlgmr.msra.gmra.mrb[68].mxu0 %v12935_v49  ;;  %v12352_v57 = vld [vmem:[#allocation2 + $0x1258] sm:$0xff]  }
 0x50d   :  { %11214 = vmatpush3.bf16.msra.mxu1 %v12307_v58  ;;  %5791 = vmatprep.mubr.bf16.mxu1 %v12980_v29  ;;  %v12353_v58 = vld [vmem:[#allocation2 + $0x1120] sm:$0xff]  }
 0x50e   :  { %11280 = vmatpush3.bf16.msra.mxu0 %v12308_v59  ;;  %6426 = vmatprep.mubr.bf16.mxu0 %v12965_v42  ;;  %v12354_v59 = vld [vmem:[#allocation2 + $0x12a0] sm:$0xff]  }
 0x50f   :  { %11215 = vmatprep.subr.bf16.mxu1 %v12309_v60  ;;  %11281 = vmatprep.subr.bf16.mxu0 %v12310_v61  ;;  %v12356_v60 = vld [vmem:[#allocation2 + $0x1260] sm:$0xff]   ;;  %v12357_v61 = vld [vmem:[#allocation2 + $0x1128] sm:$0xff]  }
 0x511   :  { %11216 = vmatpush3.bf16.msra.mxu1 %v12311_v14  ;;  %v12358_v14 = vld [vmem:[#allocation2 + $0x12a8] sm:$0xff]  }
 0x512   :  { %11282 = vmatpush3.bf16.msra.mxu0 %v12312_v62  ;;  %11217 = vmatprep.subr.bf16.mxu1 %v12313_v63  ;;  %v12359_v62 = vld [vmem:[#allocation2 + $0x10e8] sm:$0xff]  }
 0x513   :  { %11283 = vmatprep.subr.bf16.mxu0 %v12314_v10  ;;  %v12360_v63 = vld [vmem:[#allocation2 + $0x1268] sm:$0xff]   ;;  %v12361_v10 = vld [vmem:[#allocation2 + $0x1130] sm:$0xff]  }
 0x515   :  { %11218 = vmatpush3.bf16.msra.mxu1 %v12315_v1 }
 0x516   :  { %11284 = vmatpush3.bf16.msra.mxu0 %v12316_v2  ;;  %11219 = vmatprep.subr.bf16.mxu1 %v12317_v0  ;;  %v12362_v2 = vld [vmem:[#allocation2 + $0x12b0] sm:$0xff]  }
 0x517   :  { %11285 = vmatprep.subr.bf16.mxu0 %v12318_v15 }
 0x519   :  { %11220 = vmatpush3.bf16.msra.mxu1 %v12319_v4 }
 0x51a   :  { %11286 = vmatpush3.bf16.msra.mxu0 %v12320_v5  ;;  %11221 = vmatprep.subr.bf16.mxu1 %v12321_v6  ;;  %v12363_v5 = vld [vmem:[#allocation2 + $0x10f0] sm:$0xff]  }
 0x51b   :  { %11287 = vmatprep.subr.bf16.mxu0 %v12322_v7  ;;  %v12364_v7 = vld [vmem:[#allocation2 + $0x1270] sm:$0xff]  }
 0x51d   :  { %11222 = vmatpush3.bf16.msra.mxu1 %v12323_v8  ;;  %v12365_v8 = vld [vmem:[#allocation2 + $0x1138] sm:$0xff]  }
 0x51e   :  { %11288 = vmatpush3.bf16.msra.mxu0 %v12324_v12  ;;  %11223 = vmatprep.subr.bf16.mxu1 %v12325_v13 }
 0x51f   :  { %11289 = vmatprep.subr.bf16.mxu0 %v12326_v16  ;;  %v12366_v16 = vld [vmem:[#allocation2 + $0x12b8] sm:$0xff]  }
 0x521   :  { %11224 = vmatpush3.bf16.msra.mxu1 %v12327_v17 }
 0x522   :  { %11290 = vmatpush3.bf16.msra.mxu0 %v12328_v18  ;;  %11225 = vmatprep.subr.bf16.mxu1 %v12329_v19  ;;  %v12367_v18 = vld [vmem:[#allocation2 + $0x10f8] sm:$0xff]  }
 0x523   :  { %11291 = vmatprep.subr.bf16.mxu0 %v12330_v20  ;;  %v12368_v19 = vld [vmem:[#allocation2 + $0x1278] sm:$0xff]   ;;  %v12369_v20 = vld [vmem:[#allocation2 + $0x1200] sm:$0xff]  }
 0x525   :  { %11226 = vmatpush3.bf16.msra.mxu1 %v12331_v23  ;;  %v12370_v23 = vld [vmem:[#allocation2 + $0x1380] sm:$0xff]  }
 0x526   :  { %11292 = vmatpush3.bf16.msra.mxu0 %v12332_v24  ;;  %11227 = vmatprep.subr.bf16.mxu1 %v12333_v21  ;;  %v12371_v24 = vld [vmem:[#allocation2 + $0x11c0] sm:$0xff]   ;;  %v12373_v21 = vld [vmem:[#allocation2 + $0x1208] sm:$0xff]  }
 0x527   :  { %11293 = vmatprep.subr.bf16.mxu0 %v12334_v30  ;;  %v12374_v30 = vld [vmem:[#allocation2 + $0x1388] sm:$0xff]  }
 0x529   :  { %11228 = vmatpush3.bf16.msra.mxu1 %v12335_v22  ;;  %v12376_v22 = vld [vmem:[#allocation2 + $0x1348] sm:$0xff]  }
 0x52a   :  { %11294 = vmatpush3.bf16.msra.mxu0 %v12336_v27  ;;  %11257 = vmatprep.subr.bf16.mxu1 %v12337_v31  ;;  %v12377_v27 = vld [vmem:[#allocation2 + $0x1210] sm:$0xff]  }
 0x52b   :  { %11323 = vmatprep.subr.bf16.mxu0 %v12338_v32  ;;  %v12378_v31 = vld [vmem:[#allocation2 + $0x1390] sm:$0xff]  }
 0x52c   :  { %5792 = vmatmul.mubr.bf16.vlgmr.msra.gmra.mrb[64].mxu1 %v12974_v26  ;;  %v12379_v32 = vld [vmem:[#allocation2 + $0x11d0] sm:$0xff]  }
 0x52d   :  { %6427 = vmatmul.mubr.bf16.vlgmr.msra.gmra.mrb[72].mxu0 %v12959_v9  ;;  %11258 = vmatpush3.bf16.msra.mxu1 %v12339_v33  ;;  %v12380_v33 = vld [vmem:[#allocation2 + $0x1350] sm:$0xff]  }
 0x52e   :  { %6385 = vmatprep.mubr.bf16.mxu1 %v12951_v28  ;;  %11324 = vmatpush3.bf16.msra.mxu0 %v12340_v34  ;;  %v12381_v34 = vld [vmem:[#allocation2 + $0x1218] sm:$0xff]  }
 0x52f   :  { %7020 = vmatprep.mubr.bf16.mxu0 %v12941_v25  ;;  %11259 = vmatprep.subr.bf16.mxu1 %v12341_v38  ;;  %v12355_v25 = vld [vmem:[#allocation2 + $0x10e0] sm:$0xff]   ;;  %v12383_v38 = vld [vmem:[#allocation2 + $0x11d8] sm:$0xff]  }
 0x530   :  { %11325 = vmatprep.subr.bf16.mxu0 %v12342_v39  ;;  %v12384_v39 = vld [vmem:[#allocation2 + $0x1358] sm:$0xff]  }
 0x531   :  { %11260 = vmatpush3.bf16.msra.mxu1 %v12343_v46  ;;  %v12385_v46 = vld [vmem:[#allocation2 + $0x1220] sm:$0xff]  }
 0x532   :  { %11326 = vmatpush3.bf16.msra.mxu0 %v12344_v47  ;;  %11261 = vmatprep.subr.bf16.mxu1 %v12345_v41  ;;  %v12386_v47 = vld [vmem:[#allocation2 + $0x13a0] sm:$0xff]  }
 0x533   :  { %11327 = vmatprep.subr.bf16.mxu0 %v12346_v48  ;;  %v12388_v41 = vld [vmem:[#allocation2 + $0x1360] sm:$0xff]   ;;  %v12389_v48 = vld [vmem:[#allocation2 + $0x1228] sm:$0xff]  }
 0x535   :  { %11262 = vmatpush3.bf16.msra.mxu1 %v12347_v50  ;;  %v12390_v50 = vld [vmem:[#allocation2 + $0x13a8] sm:$0xff]  }
 0x536   :  { %11328 = vmatpush3.bf16.msra.mxu0 %v12348_v51  ;;  %11263 = vmatprep.subr.bf16.mxu1 %v12349_v53  ;;  %v12391_v51 = vld [vmem:[#allocation2 + $0x11e8] sm:$0xff]  }
 0x537   :  { %11329 = vmatprep.subr.bf16.mxu0 %v12350_v55  ;;  %v12392_v53 = vld [vmem:[#allocation2 + $0x1368] sm:$0xff]   ;;  %v12393_v55 = vld [vmem:[#allocation2 + $0x1230] sm:$0xff]  }
 0x539   :  { %11264 = vmatpush3.bf16.msra.mxu1 %v12351_v56  ;;  %v12394_v56 = vld [vmem:[#allocation2 + $0x13b0] sm:$0xff]  }
 0x53a   :  { %11330 = vmatpush3.bf16.msra.mxu0 %v12352_v57  ;;  %11265 = vmatprep.subr.bf16.mxu1 %v12353_v58  ;;  %v12395_v57 = vld [vmem:[#allocation2 + $0x11f0] sm:$0xff]  }
 0x53b   :  { %11331 = vmatprep.subr.bf16.mxu0 %v12354_v59  ;;  %v12396_v58 = vld [vmem:[#allocation2 + $0x1370] sm:$0xff]   ;;  %v12397_v59 = vld [vmem:[#allocation2 + $0x1238] sm:$0xff]  }
 0x53d   :  { %11266 = vmatpush3.bf16.msra.mxu1 %v12355_v25  ;;  %v12398_v25 = vld [vmem:[#allocation2 + $0x13b8] sm:$0xff]  }
 0x53e   :  { %11332 = vmatpush3.bf16.msra.mxu0 %v12356_v60  ;;  %11267 = vmatprep.subr.bf16.mxu1 %v12357_v61  ;;  %v12399_v60 = vld [vmem:[#allocation2 + $0x11f8] sm:$0xff]  }
 0x53f   :  { %v11097_v1 = vpop.f32.mrb[52].mxu1  ;;  %11333 = vmatprep.subr.bf16.mxu0 %v12358_v14  ;;  %v12400_v61 = vld [vmem:[#allocation2 + $0x1378] sm:$0xff]   ;;  %v12401_v14 = vld [vmem:[#allocation2 + $0x1300] sm:$0xff]  }
 0x540   :  { %v11098_v0 = vpop.f32.mrb[53].mxu1 }
 0x541   :  { %v11099_v15 = vadd.f32 %v11098_v0, %v11097_v1  ;;  %11268 = vmatpush3.bf16.msra.mxu1 %v12359_v62  ;;  %v11100_v4 = vpop.f32.mrb[54].mxu1  ;;  %v12433_v62 = vld [vmem:[#allocation2 + $0x1480] sm:$0xff]   ;;  %v12404_v0 = vld [vmem:[#allocation2 + $0x12c8] sm:$0xff]  }
 0x542   :  { %11334 = vmatpush3.bf16.msra.mxu0 %v12360_v63  ;;  %v11101_v6 = vpop.f32.mrb[55].mxu1  ;;  %11269 = vmatprep.subr.bf16.mxu1 %v12361_v10  ;;  %v12402_v63 = vld [vmem:[#allocation2 + $0x12c0] sm:$0xff]   ;;  %v12403_v10 = vld [vmem:[#allocation2 + $0x1308] sm:$0xff]  }
 0x543   :  { %v13000_v12 = vadd.f32 %v11099_v15, %v12987_v40  ;;  %v11102_v13 = vadd.f32 %v11101_v6, %v11100_v4  ;;  %11335 = vmatprep.subr.bf16.mxu0 %v12362_v2  ;;  %v12372_v40 = vld [vmem:[#allocation2 + $0x1340] sm:$0xff]   ;;  %v12435_v2 = vld [vmem:[#allocation2 + $0x1488] sm:$0xff]   ;;  %v12405_v15 = vld [vmem:[#allocation2 + $0x1310] sm:$0xff]  }
 0x544   :  { %v12434_v1 = vld [vmem:[#allocation2 + $0x1440] sm:$0xff]   ;;  %v12436_v4 = vld [vmem:[#allocation2 + $0x1448] sm:$0xff]   ;;  %v12406_v6 = vld [vmem:[#allocation2 + $0x12d0] sm:$0xff]  }
 0x545   :  { %v13003_v17 = vadd.f32 %v11102_v13, %v12989_v52  ;;  %11270 = vmatpush3.bf16.msra.mxu1 %v12363_v5  ;;  %v12375_v52 = vld [vmem:[#allocation2 + $0x11c8] sm:$0xff]   ;;  %v12437_v5 = vld [vmem:[#allocation2 + $0x1490] sm:$0xff]   ;;  %v12439_v13 = vld [vmem:[#allocation2 + $0x1498] sm:$0xff]  }
 0x546   :  { %11336 = vmatpush3.bf16.msra.mxu0 %v12364_v7  ;;  %11271 = vmatprep.subr.bf16.mxu1 %v12365_v8  ;;  %v12407_v7 = vld [vmem:[#allocation2 + $0x1318] sm:$0xff]   ;;  %v12438_v8 = vld [vmem:[#allocation2 + $0x1450] sm:$0xff]  }
 0x547   :  { %11337 = vmatprep.subr.bf16.mxu0 %v12366_v16  ;;  %v12409_v16 = vld [vmem:[#allocation2 + $0x1320] sm:$0xff]  }
 0x549   :  { %11272 = vmatpush3.bf16.msra.mxu1 %v12367_v18  ;;  %v12410_v18 = vld [vmem:[#allocation2 + $0x12e0] sm:$0xff]  }
 0x54a   :  { %11338 = vmatpush3.bf16.msra.mxu0 %v12368_v19  ;;  %11301 = vmatprep.subr.bf16.mxu1 %v12369_v20  ;;  %v12411_v19 = vld [vmem:[#allocation2 + $0x1328] sm:$0xff]  }
 0x54b   :  { %11367 = vmatprep.subr.bf16.mxu0 %v12370_v23  ;;  %v12412_v20 = vld [vmem:[#allocation2 + $0x12e8] sm:$0xff]   ;;  %v12413_v23 = vld [vmem:[#allocation2 + $0x1330] sm:$0xff]  }
 0x54c   :  { %6386 = vmatmul.mubr.bf16.vlgmr.msra.gmra.mrb[68].mxu1 %v12947_v3 }
 0x54d   :  { %7021 = vmatmul.mubr.bf16.vlgmr.msra.gmra.mrb[76].mxu0 %v12935_v49  ;;  %11302 = vmatpush3.bf16.msra.mxu1 %v12371_v24  ;;  %v12382_v49 = vld [vmem:[#allocation2 + $0x1398] sm:$0xff]  }
 0x54e   :  { %6467 = vmatprep.mubr.bf16.mxu1 %v12980_v29  ;;  %11368 = vmatpush3.bf16.msra.mxu0 %v12372_v40  ;;  %v12441_v40 = vld [vmem:[#allocation2 + $0x14a0] sm:$0xff]  }
 0x54f   :  { %7102 = vmatprep.mubr.bf16.mxu0 %v12965_v42  ;;  %11303 = vmatprep.subr.bf16.mxu1 %v12373_v21  ;;  %v12387_v42 = vld [vmem:[#allocation2 + $0x11e0] sm:$0xff]  }
 0x550   :  { %11369 = vmatprep.subr.bf16.mxu0 %v12374_v30  ;;  %v12442_v30 = vld [vmem:[#allocation2 + $0x1460] sm:$0xff]  }
 0x551   :  { %11304 = vmatpush3.bf16.msra.mxu1 %v12375_v52 }
 0x552   :  { %11370 = vmatpush3.bf16.msra.mxu0 %v12376_v22  ;;  %11305 = vmatprep.subr.bf16.mxu1 %v12377_v27  ;;  %v12414_v27 = vld [vmem:[#allocation2 + $0x12f0] sm:$0xff]  }
 0x553   :  { %11371 = vmatprep.subr.bf16.mxu0 %v12378_v31 }
 0x555   :  { %11306 = vmatpush3.bf16.msra.mxu1 %v12379_v32  ;;  %v12415_v32 = vld [vmem:[#allocation2 + $0x1338] sm:$0xff]  }
 0x556   :  { %11372 = vmatpush3.bf16.msra.mxu0 %v12380_v33  ;;  %11307 = vmatprep.subr.bf16.mxu1 %v12381_v34 }
 0x557   :  { %11373 = vmatprep.subr.bf16.mxu0 %v12382_v49  ;;  %v12443_v49 = vld [vmem:[#allocation2 + $0x14a8] sm:$0xff]  }
 0x559   :  { %11308 = vmatpush3.bf16.msra.mxu1 %v12383_v38  ;;  %v12444_v38 = vld [vmem:[#allocation2 + $0x1468] sm:$0xff]  }
 0x55a   :  { %11374 = vmatpush3.bf16.msra.mxu0 %v12384_v39  ;;  %11309 = vmatprep.subr.bf16.mxu1 %v12385_v46  ;;  %v12416_v46 = vld [vmem:[#allocation2 + $0x12f8] sm:$0xff]  }
 0x55b   :  { %11375 = vmatprep.subr.bf16.mxu0 %v12386_v47  ;;  %v12417_v47 = vld [vmem:[#allocation2 + $0x1400] sm:$0xff]  }
 0x55d   :  { %11310 = vmatpush3.bf16.msra.mxu1 %v12387_v42  ;;  %v12445_v42 = vld [vmem:[#allocation2 + $0x14b0] sm:$0xff]  }
 0x55e   :  { %11376 = vmatpush3.bf16.msra.mxu0 %v12388_v41  ;;  %11311 = vmatprep.subr.bf16.mxu1 %v12389_v48  ;;  %v12446_v41 = vld [vmem:[#allocation2 + $0x1470] sm:$0xff]   ;;  %v12418_v48 = vld [vmem:[#allocation2 + $0x13c0] sm:$0xff]  }
 0x55f   :  { %11377 = vmatprep.subr.bf16.mxu0 %v12390_v50  ;;  %v12447_v50 = vld [vmem:[#allocation2 + $0x14b8] sm:$0xff]  }
 0x561   :  { %11312 = vmatpush3.bf16.msra.mxu1 %v12391_v51  ;;  %v12448_v51 = vld [vmem:[#allocation2 + $0x1478] sm:$0xff]  }
 0x562   :  { %11378 = vmatpush3.bf16.msra.mxu0 %v12392_v53  ;;  %11313 = vmatprep.subr.bf16.mxu1 %v12393_v55  ;;  %v12421_v53 = vld [vmem:[#allocation2 + $0x1410] sm:$0xff]   ;;  %v12449_v55 = vld [vmem:[#allocation2 + $0x1580] sm:$0xff]  }
 0x563   :  { %11379 = vmatprep.subr.bf16.mxu0 %v12394_v56  ;;  %v12422_v56 = vld [vmem:[#allocation2 + $0x13d0] sm:$0xff]  }
 0x565   :  { %11314 = vmatpush3.bf16.msra.mxu1 %v12395_v57  ;;  %v12423_v57 = vld [vmem:[#allocation2 + $0x1418] sm:$0xff]  }
 0x566   :  { %11380 = vmatpush3.bf16.msra.mxu0 %v12396_v58  ;;  %11315 = vmatprep.subr.bf16.mxu1 %v12397_v59  ;;  %v12424_v58 = vld [vmem:[#allocation2 + $0x13d8] sm:$0xff]   ;;  %v12425_v59 = vld [vmem:[#allocation2 + $0x1420] sm:$0xff]  }
 0x567   :  { %11381 = vmatprep.subr.bf16.mxu0 %v12398_v25  ;;  %v12427_v25 = vld [vmem:[#allocation2 + $0x1428] sm:$0xff]  }
 0x569   :  { %11316 = vmatpush3.bf16.msra.mxu1 %v12399_v60  ;;  %v12429_v60 = vld [vmem:[#allocation2 + $0x1430] sm:$0xff]  }
 0x56a   :  { %11382 = vmatpush3.bf16.msra.mxu0 %v12400_v61  ;;  %11345 = vmatprep.subr.bf16.mxu1 %v12401_v14 }
 0x56b   :  { %11411 = vmatprep.subr.bf16.mxu0 %v12433_v62 }
 0x56c   :  { %6468 = vmatmul.mubr.bf16.vlgmr.msra.gmra.mrb[72].mxu1 %v12974_v26 }
 0x56d   :  { %7103 = vmatmul.mubr.bf16.vlgmr.msra.gmra.mrb[80].mxu0 %v12959_v9  ;;  %11346 = vmatpush3.bf16.msra.mxu1 %v12402_v63  ;;  %v12408_v9 = vld [vmem:[#allocation2 + $0x12d8] sm:$0xff]  }
 0x56e   :  { %7061 = vmatprep.mubr.bf16.mxu1 %v12951_v28  ;;  %11347 = vmatprep.subr.bf16.mxu1 %v12403_v10  ;;  %v12440_v28 = vld [vmem:[#allocation2 + $0x1458] sm:$0xff]   ;;  %v12430_v10 = vld [vmem:[#allocation2 + $0x13f0] sm:$0xff]  }
 0x56f   :  { %11412 = vmatpush3.bf16.msra.mxu0 %v12434_v1 }
 0x570   :  { %11413 = vmatprep.subr.bf16.mxu0 %v12435_v2  ;;  %v12431_v2 = vld [vmem:[#allocation2 + $0x1438] sm:$0xff]  }
 0x571   :  { %11348 = vmatpush3.bf16.msra.mxu1 %v12404_v0 }
 0x572   :  { %11349 = vmatprep.subr.bf16.mxu1 %v12405_v15  ;;  %v12432_v15 = vld [vmem:[#allocation2 + $0x13f8] sm:$0xff]  }
 0x573   :  { %11414 = vmatpush3.bf16.msra.mxu0 %v12436_v4  ;;  %v13021_v4 = vld [vmem:[#allocation4 + $0xf] sm:$0xf] }
 0x574   :  { %11415 = vmatprep.subr.bf16.mxu0 %v12437_v5 }
 0x575   :  { %11350 = vmatpush3.bf16.msra.mxu1 %v12406_v6 }
 0x576   :  { %11351 = vmatprep.subr.bf16.mxu1 %v12407_v7 }
 0x577   :  { %11416 = vmatpush3.bf16.msra.mxu0 %v12438_v8 }
 0x578   :  { %11417 = vmatprep.subr.bf16.mxu0 %v12439_v13 }
 0x579   :  { %11352 = vmatpush3.bf16.msra.mxu1 %v12408_v9 }
 0x57a   :  { %11353 = vmatprep.subr.bf16.mxu1 %v12409_v16  ;;  %v7157_v16 = vrot.slane %v13021_v4, %v12858_v36 }
 0x57b   :  { %11418 = vmatpush3.bf16.msra.mxu0 %v12440_v28 }
 0x57c   :  { %11419 = vmatprep.subr.bf16.mxu0 %v12441_v40 }
 0x57d   :  { %11354 = vmatpush3.bf16.msra.mxu1 %v12410_v18 }
 0x57e   :  { %11355 = vmatprep.subr.bf16.mxu1 %v12411_v19 }
 0x57f   :  { %v11119_v24 = vpop.f32.mrb[56].mxu0  ;;  %11420 = vmatpush3.bf16.msra.mxu0 %v12442_v30 }
 0x580   :  { %v11120_v21 = vpop.f32.mrb[57].mxu0  ;;  %11421 = vmatprep.subr.bf16.mxu0 %v12443_v49 }
 0x581   :  { %v11121_v52 = vadd.f32 %v11120_v21, %v11119_v24  ;;  %11356 = vmatpush3.bf16.msra.mxu1 %v12412_v20  ;;  %v11122_v22 = vpop.f32.mrb[58].mxu0 }
 0x582   :  { %v11123_v31 = vpop.f32.mrb[59].mxu0  ;;  %11357 = vmatprep.subr.bf16.mxu1 %v12413_v23 }
 0x583   :  { %v13013_v33 = vadd.f32 %v11121_v52, %v13000_v12  ;;  %v11124_v34 = vadd.f32 %v11123_v31, %v11122_v22  ;;  %11422 = vmatpush3.bf16.msra.mxu0 %v12444_v38  ;;  %v12419_v12 = vld [vmem:[#allocation2 + $0x1408] sm:$0xff]  }
 0x584   :  { %11423 = vmatprep.subr.bf16.mxu0 %v12445_v42 }
 0x585   :  { %v13016_v39 = vadd.f32 %v11124_v34, %v13003_v17  ;;  %11358 = vmatpush3.bf16.msra.mxu1 %v12414_v27  ;;  %v12420_v17 = vld [vmem:[#allocation2 + $0x13c8] sm:$0xff]  }
 0x586   :  { %11359 = vmatprep.subr.bf16.mxu1 %v12415_v32 }
 0x587   :  { %11424 = vmatpush3.bf16.msra.mxu0 %v12446_v41 }
 0x588   :  { %11425 = vmatprep.subr.bf16.mxu0 %v12447_v50 }
 0x589   :  { %11360 = vmatpush3.bf16.msra.mxu1 %v12416_v46 }
 0x58a   :  { %11389 = vmatprep.subr.bf16.mxu1 %v12417_v47 }
 0x58b   :  { %11426 = vmatpush3.bf16.msra.mxu0 %v12448_v51 }
 0x58c   :  { %7062 = vmatmul.mubr.bf16.vlgmr.msra.gmra.mrb[76].mxu1 %v12947_v3  ;;  %11455 = vmatprep.subr.bf16.mxu0 %v12449_v55  ;;  %v12426_v3 = vld [vmem:[#allocation2 + $0x13e0] sm:$0xff]  }
 0x58d   :  { %11390 = vmatpush3.bf16.msra.mxu1 %v12418_v48  ;;  %7143 = vmatprep.mubr.bf16.mxu1 %v12980_v29  ;;  %v12428_v29 = vld [vmem:[#allocation2 + $0x13e8] sm:$0xff]  }
 0x58e   :  { %11391 = vmatprep.subr.bf16.mxu1 %v12419_v12 }
 0x591   :  { %11392 = vmatpush3.bf16.msra.mxu1 %v12420_v17 }
 0x592   :  { %11393 = vmatprep.subr.bf16.mxu1 %v12421_v53 }
 0x595   :  { %11394 = vmatpush3.bf16.msra.mxu1 %v12422_v56  ;;  %v12497_v56 = vld [vmem:[#allocation2 + $0x1500] sm:$0xff]  }
 0x596   :  { %11395 = vmatprep.subr.bf16.mxu1 %v12423_v57  ;;  %v12499_v57 = vld [vmem:[#allocation2 + $0x14c0] sm:$0xff]  }
 0x599   :  { %11396 = vmatpush3.bf16.msra.mxu1 %v12424_v58  ;;  %v12501_v58 = vld [vmem:[#allocation2 + $0x1508] sm:$0xff]  }
 0x59a   :  { %11397 = vmatprep.subr.bf16.mxu1 %v12425_v59  ;;  %v12503_v59 = vld [vmem:[#allocation2 + $0x14c8] sm:$0xff]  }
 0x59d   :  { %11398 = vmatpush3.bf16.msra.mxu1 %v12426_v3  ;;  %v12505_v3 = vld [vmem:[#allocation2 + $0x1510] sm:$0xff]  }
 0x59e   :  { %11399 = vmatprep.subr.bf16.mxu1 %v12427_v25  ;;  %v12507_v25 = vld [vmem:[#allocation2 + $0x14d0] sm:$0xff]  }
 0x59f   :  { %v11163_v61 = vpop.f32.mrb[60].mxu0 }
 0x5a0   :  { %v11164_v14 = vpop.f32.mrb[61].mxu0 }
 0x5a1   :  { %v11165_v62 = vadd.f32 %v11164_v14, %v11163_v61  ;;  %v11166_v63 = vpop.f32.mrb[62].mxu0  ;;  %11400 = vmatpush3.bf16.msra.mxu1 %v12428_v29  ;;  %v12509_v29 = vld [vmem:[#allocation2 + $0x1518] sm:$0xff]   ;;  %v12513_v14 = vld [vmem:[#allocation2 + $0x1520] sm:$0xff]  }
 0x5a2   :  { %v11167_v1 = vpop.f32.mrb[63].mxu0  ;;  %11401 = vmatprep.subr.bf16.mxu1 %v12429_v60  ;;  %v12511_v60 = vld [vmem:[#allocation2 + $0x14d8] sm:$0xff]  }
 0x5a3   :  { %v11168_v0 = vadd.f32 %v11167_v1, %v11166_v63 }
 0x5a5   :  { %11402 = vmatpush3.bf16.msra.mxu1 %v12430_v10  ;;  %v12515_v10 = vld [vmem:[#allocation2 + $0x14e0] sm:$0xff]  }
 0x5a6   :  { %11403 = vmatprep.subr.bf16.mxu1 %v12431_v2  ;;  %v7161_v2 = vrot.slane %v13021_v4, %v12861_v37 }
 0x5a9   :  { %11404 = vmatpush3.bf16.msra.mxu1 %v12432_v15 }
 0x5aa   :  { %11433 = vmatprep.subr.bf16.mxu1 %v12497_v56 }
 0x5ac   :  { %7144 = vmatmul.mubr.bf16.vlgmr.msra.gmra.mrb[80].mxu1 %v12974_v26 }
 0x5ad   :  { %11434 = vmatpush3.bf16.msra.mxu1 %v12499_v57 }
 0x5ae   :  { %11435 = vmatprep.subr.bf16.mxu1 %v12501_v58 }
 0x5b1   :  { %11436 = vmatpush3.bf16.msra.mxu1 %v12503_v59  ;;  %v12460_v59 = vld [vmem:[#allocation2 + $0x1568] sm:$0xff]  }
 0x5b2   :  { %11437 = vmatprep.subr.bf16.mxu1 %v12505_v3 }
 0x5b5   :  { %11438 = vmatpush3.bf16.msra.mxu1 %v12507_v25 }
 0x5b6   :  { %11439 = vmatprep.subr.bf16.mxu1 %v12509_v29 }
 0x5b9   :  { %11440 = vmatpush3.bf16.msra.mxu1 %v12511_v60  ;;  %v12461_v60 = vld [vmem:[#allocation2 + $0x15b0] sm:$0xff]  }
 0x5ba   :  { %11441 = vmatprep.subr.bf16.mxu1 %v12513_v14 }
 0x5bd   :  { %11442 = vmatpush3.bf16.msra.mxu1 %v12515_v10 }
 0x5bf   :  { %v11207_v5 = vpop.f32.mrb[64].mxu0  ;;  %v11141_v6 = vpop.f32.mrb[56].mxu1 }
 0x5c0   :  { %v11208_v7 = vpop.f32.mrb[65].mxu0  ;;  %v11142_v8 = vpop.f32.mrb[57].mxu1 }
 0x5c1   :  { %v11209_v13 = vadd.f32 %v11208_v7, %v11207_v5  ;;  %v11143_v9 = vadd.f32 %v11142_v8, %v11141_v6  ;;  %v11210_v28 = vpop.f32.mrb[66].mxu0  ;;  %v11144_v18 = vpop.f32.mrb[58].mxu1 }
 0x5c2   :  { %v11211_v19 = vpop.f32.mrb[67].mxu0  ;;  %v11145_v20 = vpop.f32.mrb[59].mxu1 }
 0x5c3   :  { %v5118_v23 = vadd.f32 %v11143_v9, %v13013_v33  ;;  %v11212_v24 = vadd.f32 %v11211_v19, %v11210_v28  ;;  %v11146_v40 = vadd.f32 %v11145_v20, %v11144_v18  ;;  %v12519_v18 = vld [vmem:[#allocation2 + $0x14e8] sm:$0xff]  }
 0x5c5   :  { %v7174_v26 = vadd.f32 %v7157_v16, %v5118_v23  ;;  %v5121_v21 = vadd.f32 %v11146_v40, %v13016_v39  ;;  %v12521_v40 = vld [vmem:[#allocation2 + $0x1530] sm:$0xff]  }
 0x5c7   :  { %v7182_v30 = vmul.f32 0.01, %v7174_v26  ;;  %v7178_v52 = vadd.f32 %v7157_v16, %v5121_v21  ;;  %v12517_v16 = vld [vmem:[#allocation2 + $0x1528] sm:$0xff]  }
 0x5c8   :  { %11443 = vmatprep.subr.bf16.mxu1 %v12517_v16  ;;  %v12472_v16 = vld [vmem:[#allocation2 + $0x1658] sm:$0xff]  }
 0x5c9   :  { %v7186_v22 = vmul.f32 0.01, %v7178_v52  ;;  %v7190_v27 = vmax.f32 %v7174_v26, %v7182_v30  ;;  %11444 = vmatpush3.bf16.msra.mxu1 %v12519_v18  ;;  %v12523_v26 = vld [vmem:[#allocation2 + $0x14f0] sm:$0xff]   ;;  %v12474_v18 = vld [vmem:[#allocation2 + $0x1660] sm:$0xff]  }
 0x5ca   :  { %11445 = vmatprep.subr.bf16.mxu1 %v12521_v40 }
 0x5cb   :  { %v7194_v31 = vmax.f32 %v7178_v52, %v7186_v22  ;;  %v12525_v22 = vld [vmem:[#allocation2 + $0x1538] sm:$0xff]  }
 0x5cd   :  { %v13027_v32 = vpack.c.bf16 %v7194_v31, %v7190_v27  ;;  %11446 = vmatpush3.bf16.msra.mxu1 %v12523_v26  ;;  %v12527_v27 = vld [vmem:[#allocation2 + $0x14f8] sm:$0xff]   ;;  %v7165_v26 = vrot.slane %v13021_v4, %v12881_v43 }
 0x5ce   :  { %11447 = vmatprep.subr.bf16.mxu1 %v12525_v22 }
 0x5d1   :  { %11448 = vmatpush3.bf16.msra.mxu1 %v12527_v27 }
 0x5df   :  { %v11185_v34 = vpop.f32.mrb[60].mxu1  ;;  %v11251_v49 = vpop.f32.mrb[68].mxu0 }
 0x5e0   :  { %v11186_v38 = vpop.f32.mrb[61].mxu1  ;;  %v11252_v46 = vpop.f32.mrb[69].mxu0 }
 0x5e1   :  { %v11187_v47 = vadd.f32 %v11186_v38, %v11185_v34  ;;  %v13029_v42 = vadd.f32 %v11252_v46, %v11251_v49  ;;  %v11188_v33 = vpop.f32.mrb[62].mxu1  ;;  %v11254_v41 = vpop.f32.mrb[70].mxu0  ;;  %v12450_v34 = vld [vmem:[#allocation2 + $0x1540] sm:$0xff]   ;;  %v12451_v49 = vld [vmem:[#allocation2 + $0x1588] sm:$0xff]  }
 0x5e2   :  { %v11189_v48 = vpop.f32.mrb[63].mxu1  ;;  %v11255_v12 = vpop.f32.mrb[71].mxu0  ;;  %v12529_v38 = vld [vmem:[#allocation2 + $0x1600] sm:$0xff]   ;;  %v12452_v46 = vld [vmem:[#allocation2 + $0x1548] sm:$0xff]  }
 0x5e3   :  { %v5712_v50 = vadd.f32 %v11187_v47, %v11165_v62  ;;  %v11190_v39 = vadd.f32 %v11189_v48, %v11188_v33  ;;  %v13031_v51 = vadd.f32 %v11255_v12, %v11254_v41  ;;  %v12453_v47 = vld [vmem:[#allocation2 + $0x1590] sm:$0xff]   ;;  %11477 = vmatprep.subr.bf16.mxu1 %v12529_v38  ;;  %v12455_v41 = vld [vmem:[#allocation2 + $0x1598] sm:$0xff]   ;;  %v12457_v12 = vld [vmem:[#allocation2 + $0x15a0] sm:$0xff]  }
 0x5e4   :  { %v12454_v33 = vld [vmem:[#allocation2 + $0x1550] sm:$0xff]   ;;  %v12456_v48 = vld [vmem:[#allocation2 + $0x1558] sm:$0xff]  }
 0x5e5   :  { %v5715_v17 = vadd.f32 %v11190_v39, %v11168_v0  ;;  %v5753_v53 = vadd.f32 %v11209_v13, %v5712_v50  ;;  %v12458_v50 = vld [vmem:[#allocation2 + $0x1560] sm:$0xff]   ;;  %v12459_v39 = vld [vmem:[#allocation2 + $0x15a8] sm:$0xff]  }
 0x5e7   :  { %v5756_v55 = vadd.f32 %v11212_v24, %v5715_v17 }
 0x5ff   :  { %v11229_v61 = vpop.f32.mrb[64].mxu1 }
 0x600   :  { %v11295_v62 = vpop.f32.mrb[72].mxu0  ;;  %v11230_v63 = vpop.f32.mrb[65].mxu1 }
 0x601   :  { %v11231_v1 = vadd.f32 %v11230_v63, %v11229_v61  ;;  %v11296_v0 = vpop.f32.mrb[73].mxu0  ;;  %v11232_v15 = vpop.f32.mrb[66].mxu1 }
 0x602   :  { %v13035_v5 = vadd.f32 %v11296_v0, %v11295_v62  ;;  %v11298_v6 = vpop.f32.mrb[74].mxu0  ;;  %v11233_v7 = vpop.f32.mrb[67].mxu1  ;;  %v12463_v0 = vld [vmem:[#allocation2 + $0x15b8] sm:$0xff]  }
 0x603   :  { %v5794_v8 = vadd.f32 %v11231_v1, %v5753_v53  ;;  %v11234_v13 = vadd.f32 %v11233_v7, %v11232_v15  ;;  %v11299_v9 = vpop.f32.mrb[75].mxu0  ;;  %v12462_v1 = vld [vmem:[#allocation2 + $0x1570] sm:$0xff]   ;;  %v12465_v7 = vld [vmem:[#allocation2 + $0x1680] sm:$0xff]  }
 0x604   :  { %v13037_v28 = vadd.f32 %v11299_v9, %v11298_v6  ;;  %v12464_v6 = vld [vmem:[#allocation2 + $0x1578] sm:$0xff]  }
 0x605   :  { %v7175_v19 = vadd.f32 %v7161_v2, %v5794_v8  ;;  %v5797_v20 = vadd.f32 %v11234_v13, %v5756_v55  ;;  %v12467_v8 = vld [vmem:[#allocation2 + $0x1688] sm:$0xff]   ;;  %v12470_v13 = vld [vmem:[#allocation2 + $0x1650] sm:$0xff]   ;;  %v12471_v9 = vld [vmem:[#allocation2 + $0x1698] sm:$0xff]  }
 0x607   :  { %v7183_v23 = vmul.f32 0.01, %v7175_v19  ;;  %v7179_v24 = vadd.f32 %v7161_v2, %v5797_v20 }
 0x609   :  { %v7187_v21 = vmul.f32 0.01, %v7179_v24  ;;  %v7191_v30 = vmax.f32 %v7175_v19, %v7183_v23  ;;  %v12475_v19 = vld [vmem:[#allocation2 + $0x16a8] sm:$0xff]  }
 0x60b   :  { %v7195_v52 = vmax.f32 %v7179_v24, %v7187_v21 }
 0x60d   :  { %v13039_v31 = vpack.c.bf16 %v7195_v52, %v7191_v30  ;;  %v12476_v52 = vld [vmem:[#allocation2 + $0x1668] sm:$0xff]  }
 0x60f   :  { %7490 = vmatprep.mubr.bf16.mxu0 %v13039_v31 }
 0x610   :  { %7491 = vmatmul.mubr.bf16.vlgmr.msra.gmra.mrb[84].mxu0 %v13027_v32 }
 0x611   :  { %11456 = vmatpush3.bf16.msra.mxu0 %v12450_v34  ;;  %7828 = vmatprep.mubr.bf16.mxu0 %v13039_v31 }
 0x612   :  { %11457 = vmatprep.subr.bf16.mxu0 %v12451_v49  ;;  %v12477_v49 = vld [vmem:[#allocation2 + $0x16b0] sm:$0xff]  }
 0x615   :  { %11458 = vmatpush3.bf16.msra.mxu0 %v12452_v46 }
 0x616   :  { %11459 = vmatprep.subr.bf16.mxu0 %v12453_v47 }
 0x619   :  { %11460 = vmatpush3.bf16.msra.mxu0 %v12454_v33 }
 0x61a   :  { %11461 = vmatprep.subr.bf16.mxu0 %v12455_v41 }
 0x61d   :  { %11462 = vmatpush3.bf16.msra.mxu0 %v12456_v48 }
 0x61e   :  { %11463 = vmatprep.subr.bf16.mxu0 %v12457_v12  ;;  %v12478_v12 = vld [vmem:[#allocation2 + $0x1670] sm:$0xff]  }
 0x61f   :  { %v11273_v17 = vpop.f32.mrb[68].mxu1 }
 0x620   :  { %v11339_v53 = vpop.f32.mrb[76].mxu0  ;;  %v11274_v55 = vpop.f32.mrb[69].mxu1 }
 0x621   :  { %v11275_v56 = vadd.f32 %v11274_v55, %v11273_v17  ;;  %v11340_v57 = vpop.f32.mrb[77].mxu0  ;;  %11464 = vmatpush3.bf16.msra.mxu0 %v12458_v50  ;;  %v11276_v58 = vpop.f32.mrb[70].mxu1  ;;  %v12479_v50 = vld [vmem:[#allocation2 + $0x16b8] sm:$0xff]  }
 0x622   :  { %v13044_v3 = vadd.f32 %v11340_v57, %v11339_v53  ;;  %v11342_v25 = vpop.f32.mrb[78].mxu0  ;;  %v11277_v29 = vpop.f32.mrb[71].mxu1  ;;  %11465 = vmatprep.subr.bf16.mxu0 %v12459_v39  ;;  %v12480_v55 = vld [vmem:[#allocation2 + $0x1678] sm:$0xff]  }
 0x623   :  { %v6388_v61 = vadd.f32 %v11275_v56, %v13029_v42  ;;  %v11278_v14 = vadd.f32 %v11277_v29, %v11276_v58  ;;  %v11343_v62 = vpop.f32.mrb[79].mxu0  ;;  %v12466_v42 = vld [vmem:[#allocation2 + $0x1640] sm:$0xff]   ;;  %v12483_v29 = vld [vmem:[#allocation2 + $0x1788] sm:$0xff]  }
 0x624   :  { %v13047_v63 = vadd.f32 %v11343_v62, %v11342_v25  ;;  %v12481_v56 = vld [vmem:[#allocation2 + $0x1780] sm:$0xff]   ;;  %v12487_v62 = vld [vmem:[#allocation2 + $0x1798] sm:$0xff]  }
 0x625   :  { %v6391_v10 = vadd.f32 %v11278_v14, %v13031_v51  ;;  %11466 = vmatpush3.bf16.msra.mxu0 %v12460_v59  ;;  %v6429_v2 = vadd.f32 %v13035_v5, %v6388_v61  ;;  %v12468_v51 = vld [vmem:[#allocation2 + $0x1648] sm:$0xff]   ;;  %v12469_v5 = vld [vmem:[#allocation2 + $0x1690] sm:$0xff]   ;;  %v12482_v25 = vld [vmem:[#allocation2 + $0x1740] sm:$0xff]  }
 0x626   :  { %11467 = vmatprep.subr.bf16.mxu0 %v12461_v60  ;;  %v12484_v60 = vld [vmem:[#allocation2 + $0x1748] sm:$0xff]   ;;  %v12485_v61 = vld [vmem:[#allocation2 + $0x1790] sm:$0xff]  }
 0x627   :  { %v6432_v15 = vadd.f32 %v13037_v28, %v6391_v10  ;;  %v12473_v28 = vld [vmem:[#allocation2 + $0x16a0] sm:$0xff]   ;;  %v12486_v14 = vld [vmem:[#allocation2 + $0x1750] sm:$0xff]   ;;  %v12488_v10 = vld [vmem:[#allocation2 + $0x1758] sm:$0xff]  }
 0x629   :  { %11468 = vmatpush3.bf16.msra.mxu0 %v12462_v1  ;;  %v12489_v1 = vld [vmem:[#allocation2 + $0x17a0] sm:$0xff]  }
 0x62a   :  { %11469 = vmatprep.subr.bf16.mxu0 %v12463_v0  ;;  %v12491_v0 = vld [vmem:[#allocation2 + $0x17a8] sm:$0xff]  }
 0x62d   :  { %11470 = vmatpush3.bf16.msra.mxu0 %v12464_v6 }
 0x62e   :  { %11499 = vmatprep.subr.bf16.mxu0 %v12465_v7 }
 0x630   :  { %7829 = vmatmul.mubr.bf16.vlgmr.msra.gmra.mrb[88].mxu0 %v13027_v32 }
 0x631   :  { %11500 = vmatpush3.bf16.msra.mxu0 %v12466_v42  ;;  %8166 = vmatprep.mubr.bf16.mxu0 %v13039_v31 }
 0x632   :  { %11501 = vmatprep.subr.bf16.mxu0 %v12467_v8  ;;  %v12492_v8 = vld [vmem:[#allocation2 + $0x1768] sm:$0xff]  }
 0x635   :  { %11502 = vmatpush3.bf16.msra.mxu0 %v12468_v51 }
 0x636   :  { %11503 = vmatprep.subr.bf16.mxu0 %v12469_v5  ;;  %v12493_v5 = vld [vmem:[#allocation2 + $0x17b0] sm:$0xff]  }
 0x639   :  { %11504 = vmatpush3.bf16.msra.mxu0 %v12470_v13 }
 0x63a   :  { %11505 = vmatprep.subr.bf16.mxu0 %v12471_v9 }
 0x63d   :  { %11506 = vmatpush3.bf16.msra.mxu0 %v12472_v16 }
 0x63e   :  { %11507 = vmatprep.subr.bf16.mxu0 %v12473_v28  ;;  %v12494_v28 = vld [vmem:[#allocation2 + $0x1770] sm:$0xff]  }
 0x63f   :  { %v11317_v20 = vpop.f32.mrb[72].mxu1 }
 0x640   :  { %v11383_v23 = vpop.f32.mrb[80].mxu0  ;;  %v11318_v24 = vpop.f32.mrb[73].mxu1 }
 0x641   :  { %v11319_v40 = vadd.f32 %v11318_v24, %v11317_v20  ;;  %v11384_v21 = vpop.f32.mrb[81].mxu0  ;;  %11508 = vmatpush3.bf16.msra.mxu0 %v12474_v18  ;;  %v11320_v30 = vpop.f32.mrb[74].mxu1  ;;  %v12498_v24 = vld [vmem:[#allocation2 + $0x1880] sm:$0xff]  }
 0x642   :  { %v11385_v22 = vadd.f32 %v11384_v21, %v11383_v23  ;;  %v11386_v27 = vpop.f32.mrb[82].mxu0  ;;  %v11321_v34 = vpop.f32.mrb[75].mxu1  ;;  %11509 = vmatprep.subr.bf16.mxu0 %v12475_v19  ;;  %v12495_v19 = vld [vmem:[#allocation2 + $0x17b8] sm:$0xff]   ;;  %v12508_v21 = vld [vmem:[#allocation2 + $0x1850] sm:$0xff]  }
 0x643   :  { %v6470_v38 = vadd.f32 %v11319_v40, %v6429_v2  ;;  %v11322_v46 = vadd.f32 %v11321_v34, %v11320_v30  ;;  %v11387_v47 = vpop.f32.mrb[83].mxu0  ;;  %v12490_v2 = vld [vmem:[#allocation2 + $0x1760] sm:$0xff]   ;;  %v12496_v23 = vld [vmem:[#allocation2 + $0x1778] sm:$0xff]   ;;  %v12518_v34 = vld [vmem:[#allocation2 + $0x18a8] sm:$0xff]  }
 0x644   :  { %v11388_v33 = vadd.f32 %v11387_v47, %v11386_v27  ;;  %v12500_v40 = vld [vmem:[#allocation2 + $0x1840] sm:$0xff]   ;;  %v12510_v30 = vld [vmem:[#allocation2 + $0x1898] sm:$0xff]   ;;  %v7169_v47 = vrot.slane %v13021_v4, %v12884_v44 }
 0x645   :  { %v7176_v41 = vadd.f32 %v7165_v26, %v6470_v38  ;;  %v6473_v48 = vadd.f32 %v11322_v46, %v6432_v15  ;;  %11510 = vmatpush3.bf16.msra.mxu0 %v12476_v52  ;;  %v12512_v52 = vld [vmem:[#allocation2 + $0x1858] sm:$0xff]   ;;  %v12516_v27 = vld [vmem:[#allocation2 + $0x1860] sm:$0xff]  }
 0x646   :  { %11511 = vmatprep.subr.bf16.mxu0 %v12477_v49  ;;  %v12530_v4 = vld [vmem:[#allocation2 + $0x1980] sm:$0xff]  }
 0x647   :  { %v7184_v39 = vmul.f32 0.01, %v7176_v41  ;;  %v7180_v17 = vadd.f32 %v7165_v26, %v6473_v48  ;;  %v12502_v26 = vld [vmem:[#allocation2 + $0x1888] sm:$0xff]  }
 0x649   :  { %v7188_v53 = vmul.f32 0.01, %v7180_v17  ;;  %11512 = vmatpush3.bf16.msra.mxu0 %v12478_v12  ;;  %v7192_v57 = vmax.f32 %v7176_v41, %v7184_v39  ;;  %v12520_v41 = vld [vmem:[#allocation2 + $0x1868] sm:$0xff]   ;;  %v12522_v12 = vld [vmem:[#allocation2 + $0x18b0] sm:$0xff]  }
 0x64a   :  { %11513 = vmatprep.subr.bf16.mxu0 %v12479_v50 }
 0x64b   :  { %v7196_v58 = vmax.f32 %v7180_v17, %v7188_v53 }
 0x64d   :  { %v13056_v59 = vpack.c.bf16 %v7196_v58, %v7192_v57  ;;  %11514 = vmatpush3.bf16.msra.mxu0 %v12480_v55  ;;  %v12524_v55 = vld [vmem:[#allocation2 + $0x1870] sm:$0xff]  }
 0x64e   :  { %11543 = vmatprep.subr.bf16.mxu0 %v12481_v56  ;;  %v12526_v56 = vld [vmem:[#allocation2 + $0x18b8] sm:$0xff]  }
 0x650   :  { %8167 = vmatmul.mubr.bf16.vlgmr.msra.gmra.mrb[92].mxu0 %v13027_v32 }
 0x651   :  { %11544 = vmatpush3.bf16.msra.mxu0 %v12482_v25  ;;  %8504 = vmatprep.mubr.bf16.mxu0 %v13039_v31 }
 0x652   :  { %11545 = vmatprep.subr.bf16.mxu0 %v12483_v29  ;;  %v12528_v29 = vld [vmem:[#allocation2 + $0x1878] sm:$0xff]  }
 0x655   :  { %11546 = vmatpush3.bf16.msra.mxu0 %v12484_v60 }
 0x656   :  { %11547 = vmatprep.subr.bf16.mxu0 %v12485_v61 }
 0x659   :  { %11548 = vmatpush3.bf16.msra.mxu0 %v12486_v14 }
 0x65a   :  { %11549 = vmatprep.subr.bf16.mxu0 %v12487_v62  ;;  %v12531_v62 = vld [vmem:[#allocation2 + $0x15c0] sm:$0xff]  }
 0x65d   :  { %11550 = vmatpush3.bf16.msra.mxu0 %v12488_v10  ;;  %v12532_v10 = vld [vmem:[#allocation2 + $0x1940] sm:$0xff]  }
 0x65e   :  { %11551 = vmatprep.subr.bf16.mxu0 %v12489_v1  ;;  %v12533_v1 = vld [vmem:[#allocation2 + $0x1608] sm:$0xff]  }
 0x65f   :  { %v11361_v15 = vpop.f32.mrb[76].mxu1 }
 0x660   :  { %v11362_v6 = vpop.f32.mrb[77].mxu1 }
 0x661   :  { %v11363_v7 = vadd.f32 %v11362_v6, %v11361_v15  ;;  %11552 = vmatpush3.bf16.msra.mxu0 %v12490_v2  ;;  %v11364_v42 = vpop.f32.mrb[78].mxu1  ;;  %v12534_v2 = vld [vmem:[#allocation2 + $0x1988] sm:$0xff]   ;;  %v12537_v6 = vld [vmem:[#allocation2 + $0x1610] sm:$0xff]  }
 0x662   :  { %v11365_v51 = vpop.f32.mrb[79].mxu1  ;;  %11553 = vmatprep.subr.bf16.mxu0 %v12491_v0  ;;  %v12535_v0 = vld [vmem:[#allocation2 + $0x15c8] sm:$0xff]  }
 0x663   :  { %v7064_v13 = vadd.f32 %v11363_v7, %v13044_v3  ;;  %v11366_v9 = vadd.f32 %v11365_v51, %v11364_v42  ;;  %v12504_v3 = vld [vmem:[#allocation2 + $0x1848] sm:$0xff]   ;;  %v12538_v7 = vld [vmem:[#allocation2 + $0x1990] sm:$0xff]   ;;  %v12541_v51 = vld [vmem:[#allocation2 + $0x1618] sm:$0xff]  }
 0x664   :  { %v12536_v15 = vld [vmem:[#allocation2 + $0x1948] sm:$0xff]   ;;  %v12539_v42 = vld [vmem:[#allocation2 + $0x15d0] sm:$0xff]  }
 0x665   :  { %v7067_v16 = vadd.f32 %v11366_v9, %v13047_v63  ;;  %11554 = vmatpush3.bf16.msra.mxu0 %v12492_v8  ;;  %v7105_v18 = vadd.f32 %v11385_v22, %v7064_v13  ;;  %v12506_v63 = vld [vmem:[#allocation2 + $0x1890] sm:$0xff]   ;;  %v12514_v22 = vld [vmem:[#allocation2 + $0x18a0] sm:$0xff]   ;;  %v12543_v13 = vld [vmem:[#allocation2 + $0x15d8] sm:$0xff]  }
 0x666   :  { %11555 = vmatprep.subr.bf16.mxu0 %v12493_v5  ;;  %v12540_v8 = vld [vmem:[#allocation2 + $0x1950] sm:$0xff]   ;;  %v12542_v5 = vld [vmem:[#allocation2 + $0x1998] sm:$0xff]  }
 0x667   :  { %v7108_v20 = vadd.f32 %v11388_v33, %v7067_v16  ;;  %v12544_v9 = vld [vmem:[#allocation2 + $0x1958] sm:$0xff]   ;;  %v12545_v16 = vld [vmem:[#allocation2 + $0x1620] sm:$0xff]  }
 0x669   :  { %11556 = vmatpush3.bf16.msra.mxu0 %v12494_v28  ;;  %v12546_v28 = vld [vmem:[#allocation2 + $0x19a0] sm:$0xff]  }
 0x66a   :  { %11557 = vmatprep.subr.bf16.mxu0 %v12495_v19  ;;  %v12548_v19 = vld [vmem:[#allocation2 + $0x1960] sm:$0xff]  }
 0x66d   :  { %11558 = vmatpush3.bf16.msra.mxu0 %v12496_v23  ;;  %v12550_v23 = vld [vmem:[#allocation2 + $0x19a8] sm:$0xff]  }
 0x66e   :  { %11587 = vmatprep.subr.bf16.mxu0 %v12498_v24  ;;  %v12551_v24 = vld [vmem:[#allocation2 + $0x15e8] sm:$0xff]  }
 0x670   :  { %8505 = vmatmul.mubr.bf16.vlgmr.msra.gmra.mrb[96].mxu0 %v13027_v32 }
 0x671   :  { %11588 = vmatpush3.bf16.msra.mxu0 %v12500_v40  ;;  %8842 = vmatprep.mubr.bf16.mxu0 %v13039_v31  ;;  %v12552_v40 = vld [vmem:[#allocation2 + $0x1968] sm:$0xff]  }
 0x672   :  { %11589 = vmatprep.subr.bf16.mxu0 %v12502_v26  ;;  %v12553_v26 = vld [vmem:[#allocation2 + $0x1630] sm:$0xff]  }
 0x675   :  { %11590 = vmatpush3.bf16.msra.mxu0 %v12504_v3  ;;  %v12554_v3 = vld [vmem:[#allocation2 + $0x19b0] sm:$0xff]  }
 0x676   :  { %11591 = vmatprep.subr.bf16.mxu0 %v12506_v63  ;;  %v12555_v63 = vld [vmem:[#allocation2 + $0x15f0] sm:$0xff]  }
 0x679   :  { %11592 = vmatpush3.bf16.msra.mxu0 %v12508_v21  ;;  %v12556_v21 = vld [vmem:[#allocation2 + $0x1970] sm:$0xff]  }
 0x67a   :  { %11593 = vmatprep.subr.bf16.mxu0 %v12510_v30  ;;  %v12557_v30 = vld [vmem:[#allocation2 + $0x1638] sm:$0xff]  }
 0x67d   :  { %11594 = vmatpush3.bf16.msra.mxu0 %v12512_v52  ;;  %v12558_v52 = vld [vmem:[#allocation2 + $0x19b8] sm:$0xff]  }
 0x67e   :  { %11595 = vmatprep.subr.bf16.mxu0 %v12514_v22  ;;  %v12559_v22 = vld [vmem:[#allocation2 + $0x15f8] sm:$0xff]  }
 0x67f   :  { %v11405_v49 = vpop.f32.mrb[80].mxu1 }
 0x680   :  { %v11406_v38 = vpop.f32.mrb[81].mxu1 }
 0x681   :  { %v11407_v46 = vadd.f32 %v11406_v38, %v11405_v49  ;;  %11596 = vmatpush3.bf16.msra.mxu0 %v12516_v27  ;;  %v11408_v33 = vpop.f32.mrb[82].mxu1  ;;  %v12560_v27 = vld [vmem:[#allocation2 + $0x1978] sm:$0xff]   ;;  %v12562_v49 = vld [vmem:[#allocation2 + $0x1a80] sm:$0xff]  }
 0x682   :  { %v11409_v48 = vpop.f32.mrb[83].mxu1  ;;  %11597 = vmatprep.subr.bf16.mxu0 %v12518_v34  ;;  %v12561_v34 = vld [vmem:[#allocation2 + $0x1700] sm:$0xff]  }
 0x683   :  { %v7146_v50 = vadd.f32 %v11407_v46, %v7105_v18  ;;  %v11410_v39 = vadd.f32 %v11409_v48, %v11408_v33  ;;  %v12547_v18 = vld [vmem:[#allocation2 + $0x15e0] sm:$0xff]   ;;  %v12566_v33 = vld [vmem:[#allocation2 + $0x1a88] sm:$0xff]  }
 0x684   :  { %v12563_v38 = vld [vmem:[#allocation2 + $0x16c0] sm:$0xff]   ;;  %v12568_v48 = vld [vmem:[#allocation2 + $0x1a48] sm:$0xff]  }
 0x685   :  { %v7177_v17 = vadd.f32 %v7169_v47, %v7146_v50  ;;  %v7149_v53 = vadd.f32 %v11410_v39, %v7108_v20  ;;  %11598 = vmatpush3.bf16.msra.mxu0 %v12520_v41  ;;  %v12549_v20 = vld [vmem:[#allocation2 + $0x1628] sm:$0xff]   ;;  %v12564_v46 = vld [vmem:[#allocation2 + $0x1a40] sm:$0xff]   ;;  %v12570_v50 = vld [vmem:[#allocation2 + $0x1a90] sm:$0xff]  }
 0x686   :  { %11599 = vmatprep.subr.bf16.mxu0 %v12522_v12  ;;  %v12567_v41 = vld [vmem:[#allocation2 + $0x16c8] sm:$0xff]   ;;  %v12569_v12 = vld [vmem:[#allocation2 + $0x1710] sm:$0xff]  }
 0x687   :  { %v7185_v57 = vmul.f32 0.01, %v7177_v17  ;;  %v7181_v58 = vadd.f32 %v7169_v47, %v7149_v53  ;;  %v12565_v47 = vld [vmem:[#allocation2 + $0x1708] sm:$0xff]   ;;  %v12571_v39 = vld [vmem:[#allocation2 + $0x16d0] sm:$0xff]   ;;  %v12573_v53 = vld [vmem:[#allocation2 + $0x1718] sm:$0xff]  }
 0x689   :  { %v7189_v25 = vmul.f32 0.01, %v7181_v58  ;;  %11600 = vmatpush3.bf16.msra.mxu0 %v12524_v55  ;;  %v7193_v60 = vmax.f32 %v7177_v17, %v7185_v57  ;;  %v12572_v17 = vld [vmem:[#allocation2 + $0x1a50] sm:$0xff]   ;;  %v12574_v55 = vld [vmem:[#allocation2 + $0x1a98] sm:$0xff]  }
 0x68a   :  { %11601 = vmatprep.subr.bf16.mxu0 %v12526_v56  ;;  %v12575_v56 = vld [vmem:[#allocation2 + $0x16d8] sm:$0xff]  }
 0x68b   :  { %v7197_v61 = vmax.f32 %v7181_v58, %v7189_v25  ;;  %v12576_v57 = vld [vmem:[#allocation2 + $0x1a58] sm:$0xff]   ;;  %v12577_v58 = vld [vmem:[#allocation2 + $0x1720] sm:$0xff]  }
 0x68c   :  { %v12579_v25 = vld [vmem:[#allocation2 + $0x16e0] sm:$0xff]  }
 0x68d   :  { %v13066_v14 = vpack.c.bf16 %v7197_v61, %v7193_v60  ;;  %11602 = vmatpush3.bf16.msra.mxu0 %v12528_v29  ;;  %v12580_v29 = vld [vmem:[#allocation2 + $0x1a60] sm:$0xff]   ;;  %v12582_v60 = vld [vmem:[#allocation2 + $0x1aa8] sm:$0xff]  }
 0x68e   :  { %11631 = vmatprep.subr.bf16.mxu0 %v12530_v4  ;;  %v12581_v4 = vld [vmem:[#allocation2 + $0x1728] sm:$0xff]  }
 0x68f   :  { %7531 = vmatprep.mubr.bf16.mxu1 %v13066_v14  ;;  %v12583_v61 = vld [vmem:[#allocation2 + $0x16e8] sm:$0xff]  }
 0x690   :  { %8843 = vmatmul.mubr.bf16.vlgmr.msra.gmra.mrb[100].mxu0 %v13027_v32  ;;  %7532 = vmatmul.mubr.bf16.vlgmr.msra.gmra.mrb[84].mxu1 %v13056_v59 }
 0x691   :  { %11478 = vmatpush3.bf16.msra.mxu1 %v12531_v62  ;;  %11632 = vmatpush3.bf16.msra.mxu0 %v12532_v10  ;;  %v12584_v62 = vld [vmem:[#allocation2 + $0x1a68] sm:$0xff]   ;;  %v12585_v10 = vld [vmem:[#allocation2 + $0x1730] sm:$0xff]  }
 0x692   :  { %9180 = vmatprep.mubr.bf16.mxu0 %v13039_v31  ;;  %7869 = vmatprep.mubr.bf16.mxu1 %v13066_v14 }
 0x693   :  { %11479 = vmatprep.subr.bf16.mxu1 %v12533_v1  ;;  %11633 = vmatprep.subr.bf16.mxu0 %v12534_v2  ;;  %v12586_v1 = vld [vmem:[#allocation2 + $0x1ab0] sm:$0xff]  }
 0x694   :  { %v12587_v2 = vld [vmem:[#allocation2 + $0x16f0] sm:$0xff]  }
 0x695   :  { %11480 = vmatpush3.bf16.msra.mxu1 %v12535_v0  ;;  %11634 = vmatpush3.bf16.msra.mxu0 %v12536_v15  ;;  %v12588_v0 = vld [vmem:[#allocation2 + $0x1a70] sm:$0xff]   ;;  %v12589_v15 = vld [vmem:[#allocation2 + $0x1738] sm:$0xff]  }
 0x696   :  { %11481 = vmatprep.subr.bf16.mxu1 %v12537_v6  ;;  %11635 = vmatprep.subr.bf16.mxu0 %v12538_v7  ;;  %v12590_v6 = vld [vmem:[#allocation2 + $0x1ab8] sm:$0xff]  }
 0x697   :  { %v12591_v7 = vld [vmem:[#allocation2 + $0x16f8] sm:$0xff]  }
 0x699   :  { %11482 = vmatpush3.bf16.msra.mxu1 %v12539_v42  ;;  %11636 = vmatpush3.bf16.msra.mxu0 %v12540_v8  ;;  %v12592_v42 = vld [vmem:[#allocation2 + $0x1a78] sm:$0xff]   ;;  %v12593_v8 = vld [vmem:[#allocation2 + $0x1800] sm:$0xff]  }
 0x69a   :  { %11483 = vmatprep.subr.bf16.mxu1 %v12541_v51  ;;  %11637 = vmatprep.subr.bf16.mxu0 %v12542_v5  ;;  %v12594_v51 = vld [vmem:[#allocation2 + $0x17c0] sm:$0xff]   ;;  %v12595_v5 = vld [vmem:[#allocation2 + $0x1808] sm:$0xff]  }
 0x69d   :  { %11484 = vmatpush3.bf16.msra.mxu1 %v12543_v13  ;;  %11638 = vmatpush3.bf16.msra.mxu0 %v12544_v9  ;;  %v12596_v13 = vld [vmem:[#allocation2 + $0x17c8] sm:$0xff]   ;;  %v12597_v9 = vld [vmem:[#allocation2 + $0x1810] sm:$0xff]  }
 0x69e   :  { %11485 = vmatprep.subr.bf16.mxu1 %v12545_v16  ;;  %11639 = vmatprep.subr.bf16.mxu0 %v12546_v28  ;;  %v12598_v16 = vld [vmem:[#allocation2 + $0x17d0] sm:$0xff]   ;;  %v12599_v28 = vld [vmem:[#allocation2 + $0x1818] sm:$0xff]  }
 0x6a1   :  { %11486 = vmatpush3.bf16.msra.mxu1 %v12547_v18  ;;  %11640 = vmatpush3.bf16.msra.mxu0 %v12548_v19  ;;  %v12600_v18 = vld [vmem:[#allocation2 + $0x17d8] sm:$0xff]   ;;  %v12601_v19 = vld [vmem:[#allocation2 + $0x1820] sm:$0xff]  }
 0x6a2   :  { %11487 = vmatprep.subr.bf16.mxu1 %v12549_v20  ;;  %11641 = vmatprep.subr.bf16.mxu0 %v12550_v23  ;;  %v12602_v20 = vld [vmem:[#allocation2 + $0x17e0] sm:$0xff]   ;;  %v12603_v23 = vld [vmem:[#allocation2 + $0x1828] sm:$0xff]  }
 0x6a5   :  { %11488 = vmatpush3.bf16.msra.mxu1 %v12551_v24  ;;  %11642 = vmatpush3.bf16.msra.mxu0 %v12552_v40  ;;  %v12605_v24 = vld [vmem:[#allocation2 + $0x1830] sm:$0xff]  }
 0x6a6   :  { %11489 = vmatprep.subr.bf16.mxu1 %v12553_v26  ;;  %11643 = vmatprep.subr.bf16.mxu0 %v12554_v3 }
 0x6a9   :  { %11490 = vmatpush3.bf16.msra.mxu1 %v12555_v63  ;;  %11644 = vmatpush3.bf16.msra.mxu0 %v12556_v21  ;;  %v12606_v21 = vld [vmem:[#allocation2 + $0x17f0] sm:$0xff]  }
 0x6aa   :  { %11491 = vmatprep.subr.bf16.mxu1 %v12557_v30  ;;  %11645 = vmatprep.subr.bf16.mxu0 %v12558_v52  ;;  %v12607_v52 = vld [vmem:[#allocation2 + $0x1838] sm:$0xff]  }
 0x6ad   :  { %11492 = vmatpush3.bf16.msra.mxu1 %v12559_v22  ;;  %11646 = vmatpush3.bf16.msra.mxu0 %v12560_v27  ;;  %v12608_v27 = vld [vmem:[#allocation2 + $0x17f8] sm:$0xff]  }
 0x6ae   :  { %11521 = vmatprep.subr.bf16.mxu1 %v12561_v34  ;;  %11675 = vmatprep.subr.bf16.mxu0 %v12562_v49  ;;  %v12609_v34 = vld [vmem:[#allocation2 + $0x1900] sm:$0xff]  }
 0x6af   :  { %v12610_v49 = vld [vmem:[#allocation2 + $0x18c0] sm:$0xff]  }
 0x6b0   :  { %7870 = vmatmul.mubr.bf16.vlgmr.msra.gmra.mrb[88].mxu1 %v13056_v59  ;;  %9181 = vmatmul.mubr.bf16.vlgmr.msra.gmra.mrb[104].mxu0 %v13027_v32 }
 0x6b1   :  { %11522 = vmatpush3.bf16.msra.mxu1 %v12563_v38  ;;  %8207 = vmatprep.mubr.bf16.mxu1 %v13066_v14  ;;  %v12611_v38 = vld [vmem:[#allocation2 + $0x1908] sm:$0xff]  }
 0x6b2   :  { %11676 = vmatpush3.bf16.msra.mxu0 %v12564_v46  ;;  %9518 = vmatprep.mubr.bf16.mxu0 %v13039_v31  ;;  %v12578_v31 = vld [vmem:[#allocation2 + $0x1aa0] sm:$0xff]   ;;  %v12612_v46 = vld [vmem:[#allocation2 + $0x18c8] sm:$0xff]  }
 0x6b3   :  { %11523 = vmatprep.subr.bf16.mxu1 %v12565_v47  ;;  %11677 = vmatprep.subr.bf16.mxu0 %v12566_v33  ;;  %v12613_v47 = vld [vmem:[#allocation2 + $0x1910] sm:$0xff]  }
 0x6b4   :  { %v12614_v33 = vld [vmem:[#allocation2 + $0x18d0] sm:$0xff]  }
 0x6b5   :  { %11524 = vmatpush3.bf16.msra.mxu1 %v12567_v41  ;;  %v12615_v41 = vld [vmem:[#allocation2 + $0x1918] sm:$0xff]  }
 0x6b6   :  { %11678 = vmatpush3.bf16.msra.mxu0 %v12568_v48  ;;  %11525 = vmatprep.subr.bf16.mxu1 %v12569_v12  ;;  %v12616_v48 = vld [vmem:[#allocation2 + $0x18d8] sm:$0xff]   ;;  %v12617_v12 = vld [vmem:[#allocation2 + $0x1920] sm:$0xff]  }
 0x6b7   :  { %11679 = vmatprep.subr.bf16.mxu0 %v12570_v50  ;;  %v12618_v50 = vld [vmem:[#allocation2 + $0x18e0] sm:$0xff]  }
 0x6b9   :  { %11526 = vmatpush3.bf16.msra.mxu1 %v12571_v39  ;;  %v12619_v39 = vld [vmem:[#allocation2 + $0x1928] sm:$0xff]  }
 0x6ba   :  { %11680 = vmatpush3.bf16.msra.mxu0 %v12572_v17  ;;  %11527 = vmatprep.subr.bf16.mxu1 %v12573_v53  ;;  %v12620_v17 = vld [vmem:[#allocation2 + $0x18e8] sm:$0xff]   ;;  %v12621_v53 = vld [vmem:[#allocation2 + $0x1930] sm:$0xff]  }
 0x6bb   :  { %11681 = vmatprep.subr.bf16.mxu0 %v12574_v55 }
 0x6bd   :  { %11528 = vmatpush3.bf16.msra.mxu1 %v12575_v56 }
 0x6be   :  { %11682 = vmatpush3.bf16.msra.mxu0 %v12576_v57  ;;  %11529 = vmatprep.subr.bf16.mxu1 %v12577_v58 }
 0x6bf   :  { %11683 = vmatprep.subr.bf16.mxu0 %v12578_v31  ;;  %v12622_v31 = vld [vmem:[#allocation2 + $0x18f0] sm:$0xff]  }
 0x6c1   :  { %11530 = vmatpush3.bf16.msra.mxu1 %v12579_v25 }
 0x6c2   :  { %11684 = vmatpush3.bf16.msra.mxu0 %v12580_v29  ;;  %11531 = vmatprep.subr.bf16.mxu1 %v12581_v4  ;;  %v12623_v29 = vld [vmem:[#allocation2 + $0x1938] sm:$0xff]  }
 0x6c3   :  { %11685 = vmatprep.subr.bf16.mxu0 %v12582_v60  ;;  %v12624_v60 = vld [vmem:[#allocation2 + $0x18f8] sm:$0xff]  }
 0x6c5   :  { %11532 = vmatpush3.bf16.msra.mxu1 %v12583_v61  ;;  %v12625_v61 = vld [vmem:[#allocation2 + $0x1a00] sm:$0xff]  }
 0x6c6   :  { %11686 = vmatpush3.bf16.msra.mxu0 %v12584_v62  ;;  %11533 = vmatprep.subr.bf16.mxu1 %v12585_v10  ;;  %v12626_v62 = vld [vmem:[#allocation2 + $0x19c0] sm:$0xff]   ;;  %v12627_v10 = vld [vmem:[#allocation2 + $0x1a08] sm:$0xff]  }
 0x6c7   :  { %11687 = vmatprep.subr.bf16.mxu0 %v12586_v1  ;;  %v12628_v1 = vld [vmem:[#allocation2 + $0x19c8] sm:$0xff]  }
 0x6c9   :  { %11534 = vmatpush3.bf16.msra.mxu1 %v12587_v2  ;;  %v12629_v2 = vld [vmem:[#allocation2 + $0x1a10] sm:$0xff]  }
 0x6ca   :  { %11688 = vmatpush3.bf16.msra.mxu0 %v12588_v0  ;;  %11535 = vmatprep.subr.bf16.mxu1 %v12589_v15  ;;  %v12630_v0 = vld [vmem:[#allocation2 + $0x19d0] sm:$0xff]   ;;  %v12631_v15 = vld [vmem:[#allocation2 + $0x1a18] sm:$0xff]  }
 0x6cb   :  { %11689 = vmatprep.subr.bf16.mxu0 %v12590_v6  ;;  %v12632_v6 = vld [vmem:[#allocation2 + $0x19d8] sm:$0xff]  }
 0x6cd   :  { %11536 = vmatpush3.bf16.msra.mxu1 %v12591_v7  ;;  %v12633_v7 = vld [vmem:[#allocation2 + $0x1a20] sm:$0xff]  }
 0x6ce   :  { %11690 = vmatpush3.bf16.msra.mxu0 %v12592_v42  ;;  %11565 = vmatprep.subr.bf16.mxu1 %v12593_v8  ;;  %v12634_v42 = vld [vmem:[#allocation2 + $0x19e0] sm:$0xff]   ;;  %v12635_v8 = vld [vmem:[#allocation2 + $0x1a28] sm:$0xff]  }
 0x6d0   :  { %8208 = vmatmul.mubr.bf16.vlgmr.msra.gmra.mrb[92].mxu1 %v13056_v59 }
 0x6d1   :  { %9519 = vmatmul.mubr.bf16.vlgmr.msra.gmra.mrb[108].mxu0 %v13027_v32  ;;  %11566 = vmatpush3.bf16.msra.mxu1 %v12594_v51  ;;  %v12604_v32 = vld [vmem:[#allocation2 + $0x17e8] sm:$0xff]  }
 0x6d2   :  { %8545 = vmatprep.mubr.bf16.mxu1 %v13066_v14  ;;  %11567 = vmatprep.subr.bf16.mxu1 %v12595_v5  ;;  %v12636_v51 = vld [vmem:[#allocation2 + $0x19e8] sm:$0xff]   ;;  %v12637_v5 = vld [vmem:[#allocation2 + $0x1a30] sm:$0xff]  }
 0x6d5   :  { %11568 = vmatpush3.bf16.msra.mxu1 %v12596_v13 }
 0x6d6   :  { %11569 = vmatprep.subr.bf16.mxu1 %v12597_v9 }
 0x6d9   :  { %11570 = vmatpush3.bf16.msra.mxu1 %v12598_v16 }
 0x6da   :  { %11571 = vmatprep.subr.bf16.mxu1 %v12599_v28 }
 0x6dd   :  { %11572 = vmatpush3.bf16.msra.mxu1 %v12600_v18  ;;  %v12638_v18 = vld [vmem:[#allocation2 + $0x19f0] sm:$0xff]  }
 0x6de   :  { %11573 = vmatprep.subr.bf16.mxu1 %v12601_v19 }
 0x6e1   :  { %11574 = vmatpush3.bf16.msra.mxu1 %v12602_v20  ;;  %v12639_v20 = vld [vmem:[#allocation2 + $0x1a38] sm:$0xff]  }
 0x6e2   :  { %11575 = vmatprep.subr.bf16.mxu1 %v12603_v23 }
 0x6e3   :  { %v11427_v40 = vpop.f32.mrb[84].mxu0 }
 0x6e4   :  { %v11428_v26 = vpop.f32.mrb[85].mxu0 }
 0x6e5   :  { %v13080_v3 = vadd.f32 %v11428_v26, %v11427_v40  ;;  %11576 = vmatpush3.bf16.msra.mxu1 %v12604_v32  ;;  %v11430_v63 = vpop.f32.mrb[86].mxu0  ;;  %v12640_v32 = vld [vmem:[#allocation2 + $0x19f8] sm:$0xff]   ;;  %v12642_v40 = vld [vmem:[#allocation2 + $0x1ac0] sm:$0xff]   ;;  %v12643_v26 = vld [vmem:[#allocation2 + $0x1b08] sm:$0xff]  }
 0x6e6   :  { %v11431_v30 = vpop.f32.mrb[87].mxu0  ;;  %11577 = vmatprep.subr.bf16.mxu1 %v12605_v24  ;;  %v12641_v24 = vld [vmem:[#allocation2 + $0x1b00] sm:$0xff]  }
 0x6e7   :  { %v13082_v22 = vadd.f32 %v11431_v30, %v11430_v63  ;;  %v12644_v63 = vld [vmem:[#allocation2 + $0x1ac8] sm:$0xff]   ;;  %v12646_v30 = vld [vmem:[#allocation2 + $0x1ad0] sm:$0xff]  }
 0x6e9   :  { %11578 = vmatpush3.bf16.msra.mxu1 %v12606_v21  ;;  %v12645_v21 = vld [vmem:[#allocation2 + $0x1b10] sm:$0xff]  }
 0x6ea   :  { %11579 = vmatprep.subr.bf16.mxu1 %v12607_v52  ;;  %v12647_v52 = vld [vmem:[#allocation2 + $0x1b18] sm:$0xff]  }
 0x6ed   :  { %11580 = vmatpush3.bf16.msra.mxu1 %v12608_v27  ;;  %v12648_v27 = vld [vmem:[#allocation2 + $0x1ad8] sm:$0xff]  }
 0x6ee   :  { %11609 = vmatprep.subr.bf16.mxu1 %v12609_v34  ;;  %v12649_v34 = vld [vmem:[#allocation2 + $0x1b20] sm:$0xff]  }
 0x6f0   :  { %8546 = vmatmul.mubr.bf16.vlgmr.msra.gmra.mrb[96].mxu1 %v13056_v59 }
 0x6f1   :  { %11610 = vmatpush3.bf16.msra.mxu1 %v12610_v49  ;;  %8883 = vmatprep.mubr.bf16.mxu1 %v13066_v14  ;;  %v12650_v49 = vld [vmem:[#allocation2 + $0x1ae0] sm:$0xff]  }
 0x6f2   :  { %11611 = vmatprep.subr.bf16.mxu1 %v12611_v38  ;;  %v12651_v38 = vld [vmem:[#allocation2 + $0x1b28] sm:$0xff]  }
 0x6f5   :  { %11612 = vmatpush3.bf16.msra.mxu1 %v12612_v46  ;;  %v12652_v46 = vld [vmem:[#allocation2 + $0x1ae8] sm:$0xff]  }
 0x6f6   :  { %11613 = vmatprep.subr.bf16.mxu1 %v12613_v47  ;;  %v12653_v47 = vld [vmem:[#allocation2 + $0x1b30] sm:$0xff]  }
 0x6f9   :  { %11614 = vmatpush3.bf16.msra.mxu1 %v12614_v33 }
 0x6fa   :  { %11615 = vmatprep.subr.bf16.mxu1 %v12615_v41 }
 0x6fd   :  { %11616 = vmatpush3.bf16.msra.mxu1 %v12616_v48 }
 0x6fe   :  { %11617 = vmatprep.subr.bf16.mxu1 %v12617_v12  ;;  %v12654_v12 = vld [vmem:[#allocation2 + $0x1af0] sm:$0xff]  }
 0x701   :  { %11618 = vmatpush3.bf16.msra.mxu1 %v12618_v50 }
 0x702   :  { %11619 = vmatprep.subr.bf16.mxu1 %v12619_v39  ;;  %v12655_v39 = vld [vmem:[#allocation2 + $0x1b38] sm:$0xff]  }
 0x703   :  { %v11471_v55 = vpop.f32.mrb[88].mxu0 }
 0x704   :  { %v11472_v56 = vpop.f32.mrb[89].mxu0 }
 0x705   :  { %v13086_v57 = vadd.f32 %v11472_v56, %v11471_v55  ;;  %v11474_v58 = vpop.f32.mrb[90].mxu0  ;;  %11620 = vmatpush3.bf16.msra.mxu1 %v12620_v17  ;;  %v13103_v55 = vld [vmem:[#allocation4 + $0x13] sm:$0xff] }
 0x706   :  { %v11475_v25 = vpop.f32.mrb[91].mxu0  ;;  %11621 = vmatprep.subr.bf16.mxu1 %v12621_v53  ;;  %v12656_v53 = vld [vmem:[#allocation2 + $0x1af8] sm:$0xff]  }
 0x707   :  { %v13088_v4 = vadd.f32 %v11475_v25, %v11474_v58 }
 0x709   :  { %11622 = vmatpush3.bf16.msra.mxu1 %v12622_v31 }
 0x70a   :  { %11623 = vmatprep.subr.bf16.mxu1 %v12623_v29 }
 0x70d   :  { %11624 = vmatpush3.bf16.msra.mxu1 %v12624_v60 }
 0x70e   :  { %11653 = vmatprep.subr.bf16.mxu1 %v12625_v61  ;;  %v9573_v61 = vrot.slane %v13103_v55, %v12858_v36 }
 0x710   :  { %8884 = vmatmul.mubr.bf16.vlgmr.msra.gmra.mrb[100].mxu1 %v13056_v59 }
 0x711   :  { %11654 = vmatpush3.bf16.msra.mxu1 %v12626_v62  ;;  %9221 = vmatprep.mubr.bf16.mxu1 %v13066_v14 }
 0x712   :  { %11655 = vmatprep.subr.bf16.mxu1 %v12627_v10 }
 0x715   :  { %11656 = vmatpush3.bf16.msra.mxu1 %v12628_v1 }
 0x716   :  { %11657 = vmatprep.subr.bf16.mxu1 %v12629_v2 }
 0x719   :  { %11658 = vmatpush3.bf16.msra.mxu1 %v12630_v0 }
 0x71a   :  { %11659 = vmatprep.subr.bf16.mxu1 %v12631_v15 }
 0x71d   :  { %11660 = vmatpush3.bf16.msra.mxu1 %v12632_v6 }
 0x71e   :  { %11661 = vmatprep.subr.bf16.mxu1 %v12633_v7 }
 0x721   :  { %11662 = vmatpush3.bf16.msra.mxu1 %v12634_v42 }
 0x722   :  { %11663 = vmatprep.subr.bf16.mxu1 %v12635_v8 }
 0x723   :  { %v11515_v13 = vpop.f32.mrb[92].mxu0 }
 0x724   :  { %v11516_v9 = vpop.f32.mrb[93].mxu0 }
 0x725   :  { %v13092_v16 = vadd.f32 %v11516_v9, %v11515_v13  ;;  %v11518_v28 = vpop.f32.mrb[94].mxu0  ;;  %11664 = vmatpush3.bf16.msra.mxu1 %v12636_v51 }
 0x726   :  { %v11519_v19 = vpop.f32.mrb[95].mxu0  ;;  %11665 = vmatprep.subr.bf16.mxu1 %v12637_v5 }
 0x727   :  { %v13094_v23 = vadd.f32 %v11519_v19, %v11518_v28 }
 0x729   :  { %11666 = vmatpush3.bf16.msra.mxu1 %v12638_v18 }
 0x72a   :  { %11667 = vmatprep.subr.bf16.mxu1 %v12639_v20 }
 0x72d   :  { %11668 = vmatpush3.bf16.msra.mxu1 %v12640_v32 }
 0x72e   :  { %11697 = vmatprep.subr.bf16.mxu1 %v12641_v24 }
 0x730   :  { %9222 = vmatmul.mubr.bf16.vlgmr.msra.gmra.mrb[104].mxu1 %v13056_v59 }
 0x731   :  { %11698 = vmatpush3.bf16.msra.mxu1 %v12642_v40  ;;  %9559 = vmatprep.mubr.bf16.mxu1 %v13066_v14 }
 0x732   :  { %11699 = vmatprep.subr.bf16.mxu1 %v12643_v26 }
 0x735   :  { %11700 = vmatpush3.bf16.msra.mxu1 %v12644_v63 }
 0x736   :  { %11701 = vmatprep.subr.bf16.mxu1 %v12645_v21 }
 0x739   :  { %11702 = vmatpush3.bf16.msra.mxu1 %v12646_v30 }
 0x73a   :  { %11703 = vmatprep.subr.bf16.mxu1 %v12647_v52 }
 0x73d   :  { %11704 = vmatpush3.bf16.msra.mxu1 %v12648_v27 }
 0x73e   :  { %11705 = vmatprep.subr.bf16.mxu1 %v12649_v34 }
 0x741   :  { %11706 = vmatpush3.bf16.msra.mxu1 %v12650_v49 }
 0x742   :  { %11707 = vmatprep.subr.bf16.mxu1 %v12651_v38 }
 0x743   :  { %v11559_v14 = vpop.f32.mrb[96].mxu0 }
 0x744   :  { %v11560_v33 = vpop.f32.mrb[97].mxu0 }
 0x745   :  { %v13098_v41 = vadd.f32 %v11560_v33, %v11559_v14  ;;  %v11562_v48 = vpop.f32.mrb[98].mxu0  ;;  %11708 = vmatpush3.bf16.msra.mxu1 %v12652_v46 }
 0x746   :  { %v11563_v50 = vpop.f32.mrb[99].mxu0  ;;  %11709 = vmatprep.subr.bf16.mxu1 %v12653_v47 }
 0x747   :  { %v13100_v17 = vadd.f32 %v11563_v50, %v11562_v48 }
 0x749   :  { %11710 = vmatpush3.bf16.msra.mxu1 %v12654_v12 }
 0x74a   :  { %11711 = vmatprep.subr.bf16.mxu1 %v12655_v39 }
 0x74d   :  { %11712 = vmatpush3.bf16.msra.mxu1 %v12656_v53 }
 0x750   :  { %9560 = vmatmul.mubr.bf16.vlgmr.msra.gmra.mrb[108].mxu1 %v13056_v59 }
 0x763   :  { %v11603_v56 = vpop.f32.mrb[100].mxu0  ;;  %v11449_v58 = vpop.f32.mrb[84].mxu1 }
 0x764   :  { %v11604_v31 = vpop.f32.mrb[101].mxu0  ;;  %v11450_v25 = vpop.f32.mrb[85].mxu1 }
 0x765   :  { %v13105_v29 = vadd.f32 %v11604_v31, %v11603_v56  ;;  %v11451_v60 = vadd.f32 %v11450_v25, %v11449_v58  ;;  %v11606_v62 = vpop.f32.mrb[102].mxu0  ;;  %v11452_v10 = vpop.f32.mrb[86].mxu1 }
 0x766   :  { %v11607_v1 = vpop.f32.mrb[103].mxu0  ;;  %v11453_v2 = vpop.f32.mrb[87].mxu1 }
 0x767   :  { %v7534_v0 = vadd.f32 %v11451_v60, %v13080_v3  ;;  %v13110_v15 = vadd.f32 %v11607_v1, %v11606_v62  ;;  %v11454_v59 = vadd.f32 %v11453_v2, %v11452_v10 }
 0x769   :  { %v9605_v6 = vadd.f32 %v9573_v61, %v7534_v0  ;;  %v7537_v7 = vadd.f32 %v11454_v59, %v13082_v22  ;;  %v9577_v22 = vrot.slane %v13103_v55, %v12861_v37 }
 0x76b   :  { %12657 = vtanh.f32 %v9605_v6  ;;  %v9612_v42 = vadd.f32 %v9573_v61, %v7537_v7  ;;  %v9585_v61 = vrot.slane %v13103_v55, %v12884_v44 }
 0x76d   :  { %12659 = vtanh.f32 %v9612_v42 }
 0x775   :  { %v12658_v8 = vpop.eup %12657 }
 0x776   :  { %9633 = vst [vmem:[%s13193_s3] sm:$0xff] %v12658_v8 }
 0x777   :  { %v12660_v36 = vpop.eup %12659 }
 0x778   :  { %9640 = vst [vmem:[%s13193_s3 + $0x38] sm:$0xff] %v12660_v36 }
 0x783   :  { %v11493_v3 = vpop.f32.mrb[88].mxu1  ;;  %v11647_v51 = vpop.f32.mrb[104].mxu0 }
 0x784   :  { %v11494_v5 = vpop.f32.mrb[89].mxu1  ;;  %v11648_v13 = vpop.f32.mrb[105].mxu0 }
 0x785   :  { %v11495_v9 = vadd.f32 %v11494_v5, %v11493_v3  ;;  %v13121_v28 = vadd.f32 %v11648_v13, %v11647_v51  ;;  %v11496_v18 = vpop.f32.mrb[90].mxu1  ;;  %v11650_v19 = vpop.f32.mrb[106].mxu0 }
 0x786   :  { %v11497_v20 = vpop.f32.mrb[91].mxu1  ;;  %v11651_v32 = vpop.f32.mrb[107].mxu0 }
 0x787   :  { %v7872_v24 = vadd.f32 %v11495_v9, %v13086_v57  ;;  %v11498_v40 = vadd.f32 %v11497_v20, %v11496_v18  ;;  %v13124_v26 = vadd.f32 %v11651_v32, %v11650_v19 }
 0x789   :  { %v9606_v63 = vadd.f32 %v9577_v22, %v7872_v24  ;;  %v7875_v21 = vadd.f32 %v11498_v40, %v13088_v4  ;;  %v9581_v4 = vrot.slane %v13103_v55, %v12881_v43 }
 0x78b   :  { %12661 = vtanh.f32 %v9606_v63  ;;  %v9613_v30 = vadd.f32 %v9577_v22, %v7875_v21 }
 0x78d   :  { %12663 = vtanh.f32 %v9613_v30 }
 0x795   :  { %v12662_v52 = vpop.eup %12661 }
 0x796   :  { %9634 = vst [vmem:[%s13193_s3 + $0x8] sm:$0xff] %v12662_v52 }
 0x797   :  { %v12664_v37 = vpop.eup %12663 }
 0x798   :  { %9641 = vst [vmem:[%s13193_s3 + $0x40] sm:$0xff] %v12664_v37 }
 0x7a3   :  { %v11537_v57 = vpop.f32.mrb[92].mxu1 }
 0x7a4   :  { %v11691_v27 = vpop.f32.mrb[108].mxu0  ;;  %v11538_v34 = vpop.f32.mrb[93].mxu1 }
 0x7a5   :  { %v11539_v49 = vadd.f32 %v11538_v34, %v11537_v57  ;;  %v11692_v38 = vpop.f32.mrb[109].mxu0  ;;  %v11540_v46 = vpop.f32.mrb[94].mxu1 }
 0x7a6   :  { %v13135_v47 = vadd.f32 %v11692_v38, %v11691_v27  ;;  %v11694_v14 = vpop.f32.mrb[110].mxu0  ;;  %v11541_v33 = vpop.f32.mrb[95].mxu1 }
 0x7a7   :  { %v8210_v48 = vadd.f32 %v11539_v49, %v13092_v16  ;;  %v11542_v12 = vadd.f32 %v11541_v33, %v11540_v46  ;;  %v11695_v50 = vpop.f32.mrb[111].mxu0 }
 0x7a8   :  { %v13138_v39 = vadd.f32 %v11695_v50, %v11694_v14 }
 0x7a9   :  { %v9607_v53 = vadd.f32 %v9581_v4, %v8210_v48  ;;  %v8213_v56 = vadd.f32 %v11542_v12, %v13094_v23 }
 0x7ab   :  { %12665 = vtanh.f32 %v9607_v53  ;;  %v9614_v58 = vadd.f32 %v9581_v4, %v8213_v56 }
 0x7ad   :  { %12667 = vtanh.f32 %v9614_v58 }
 0x7b5   :  { %v12666_v31 = vpop.eup %12665 }
 0x7b6   :  { %9635 = vst [vmem:[%s13193_s3 + $0x10] sm:$0xff] %v12666_v31 }
 0x7b7   :  { %v12668_v43 = vpop.eup %12667 }
 0x7b8   :  { %9642 = vst [vmem:[%s13193_s3 + $0x48] sm:$0xff] %v12668_v43 }
 0x7c3   :  { %v11581_v16 = vpop.f32.mrb[96].mxu1 }
 0x7c4   :  { %v11582_v25 = vpop.f32.mrb[97].mxu1 }
 0x7c5   :  { %v11583_v60 = vadd.f32 %v11582_v25, %v11581_v16  ;;  %v11584_v23 = vpop.f32.mrb[98].mxu1 }
 0x7c6   :  { %v11585_v62 = vpop.f32.mrb[99].mxu1 }
 0x7c7   :  { %v8548_v10 = vadd.f32 %v11583_v60, %v13098_v41  ;;  %v11586_v1 = vadd.f32 %v11585_v62, %v11584_v23 }
 0x7c9   :  { %v9608_v2 = vadd.f32 %v9585_v61, %v8548_v10  ;;  %v8551_v0 = vadd.f32 %v11586_v1, %v13100_v17  ;;  %v9589_v17 = vrot.slane %v13103_v55, %v4370_v45 }
 0x7cb   :  { %12669 = vtanh.f32 %v9608_v2  ;;  %v9615_v59 = vadd.f32 %v9585_v61, %v8551_v0 }
 0x7cd   :  { %12671 = vtanh.f32 %v9615_v59 }
 0x7d5   :  { %v12670_v6 = vpop.eup %12669 }
 0x7d6   :  { %9636 = vst [vmem:[%s13193_s3 + $0x18] sm:$0xff] %v12670_v6 }
 0x7d7   :  { %v12672_v7 = vpop.eup %12671 }
 0x7d8   :  { %9643 = vst [vmem:[%s13193_s3 + $0x50] sm:$0xff] %v12672_v7 }
 0x7e3   :  { %v11625_v44 = vpop.f32.mrb[100].mxu1 }
 0x7e4   :  { %v11626_v42 = vpop.f32.mrb[101].mxu1 }
 0x7e5   :  { %v11627_v41 = vadd.f32 %v11626_v42, %v11625_v44  ;;  %v11628_v8 = vpop.f32.mrb[102].mxu1 }
 0x7e6   :  { %v11629_v36 = vpop.f32.mrb[103].mxu1 }
 0x7e7   :  { %v8886_v3 = vadd.f32 %v11627_v41, %v13105_v29  ;;  %v11630_v51 = vadd.f32 %v11629_v36, %v11628_v8 }
 0x7e9   :  { %v9609_v5 = vadd.f32 %v9589_v17, %v8886_v3  ;;  %v8889_v13 = vadd.f32 %v11630_v51, %v13110_v15  ;;  %v9593_v15 = vrot.slane %v13103_v55, %v4374_v11 }
 0x7eb   :  { %12673 = vtanh.f32 %v9609_v5  ;;  %v9616_v9 = vadd.f32 %v9589_v17, %v8889_v13 }
 0x7ed   :  { %12675 = vtanh.f32 %v9616_v9 }
 0x7f5   :  { %v12674_v22 = vpop.eup %12673 }
 0x7f6   :  { %9637 = vst [vmem:[%s13193_s3 + $0x20] sm:$0xff] %v12674_v22 }
 0x7f7   :  { %v12676_v18 = vpop.eup %12675 }
 0x7f8   :  { %9644 = vst [vmem:[%s13193_s3 + $0x58] sm:$0xff] %v12676_v18 }
 0x803   :  { %v11669_v45 = vpop.f32.mrb[104].mxu1 }
 0x804   :  { %v11670_v19 = vpop.f32.mrb[105].mxu1 }
 0x805   :  { %v11671_v29 = vadd.f32 %v11670_v19, %v11669_v45  ;;  %v11672_v20 = vpop.f32.mrb[106].mxu1 }
 0x806   :  { %v11673_v32 = vpop.f32.mrb[107].mxu1 }
 0x807   :  { %v9224_v24 = vadd.f32 %v11671_v29, %v13121_v28  ;;  %v11674_v40 = vadd.f32 %v11673_v32, %v11672_v20 }
 0x809   :  { %v9610_v63 = vadd.f32 %v9593_v15, %v9224_v24  ;;  %v9227_v21 = vadd.f32 %v11674_v40, %v13124_v26  ;;  %v9597_v26 = vrot.slane %v13103_v55, %v4378_v54 }
 0x80b   :  { %12677 = vtanh.f32 %v9610_v63  ;;  %v9617_v30 = vadd.f32 %v9593_v15, %v9227_v21 }
 0x80d   :  { %12679 = vtanh.f32 %v9617_v30 }
 0x815   :  { %v12678_v52 = vpop.eup %12677 }
 0x816   :  { %9638 = vst [vmem:[%s13193_s3 + $0x28] sm:$0xff] %v12678_v52 }
 0x817   :  { %v12680_v37 = vpop.eup %12679 }
 0x818   :  { %9645 = vst [vmem:[%s13193_s3 + $0x60] sm:$0xff] %v12680_v37 }
 0x823   :  { %v11713_v11 = vpop.f32.mrb[108].mxu1 }
 0x824   :  { %v11714_v57 = vpop.f32.mrb[109].mxu1 }
 0x825   :  { %v11715_v28 = vadd.f32 %v11714_v57, %v11713_v11  ;;  %v11716_v27 = vpop.f32.mrb[110].mxu1 }
 0x826   :  { %v11717_v34 = vpop.f32.mrb[111].mxu1 }
 0x827   :  { %v9562_v49 = vadd.f32 %v11715_v28, %v13135_v47  ;;  %v11718_v4 = vadd.f32 %v11717_v34, %v11716_v27 }
 0x829   :  { %v9611_v38 = vadd.f32 %v9597_v26, %v9562_v49  ;;  %v9565_v46 = vadd.f32 %v11718_v4, %v13138_v39 }
 0x82b   :  { %12681 = vtanh.f32 %v9611_v38  ;;  %v9618_v14 = vadd.f32 %v9597_v26, %v9565_v46 }
 0x82d   :  { %12683 = vtanh.f32 %v9618_v14 }
 0x835   :  { %v12682_v33 = vpop.eup %12681 }
 0x836   :  { %9639 = vst [vmem:[%s13193_s3 + $0x30] sm:$0xff] %v12682_v33 }
 0x837   :  { %v12684_v48 = vpop.eup %12683 }
 0x838   :  { %9646 = vst [vmem:[%s13193_s3 + $0x68] sm:$0xff] %v12684_v48 }
 0x839   :  { %9651 = vsyncpa [#allocation3], 1 }
 0x83a   :  { %9652 = vsyncpa [#allocation5], 1 }

</bundles_post_ra>
